<compile_context>
chip_gen: v5e
topology: v5e:2x2
jax: 0.10.0
libtpu: 0.0.40
codegen_flags: <defaults>
</compile_context>

<pallas_src>
import jax
import jax.numpy as jnp
from jax import lax
from jax.experimental import pallas as pl
from jax.experimental.pallas import tpu as pltpu


def _round_up(x, m):
    return (x + m - 1) // m * m


# ----------------------------------------------------------------------------
# Fused kernel: stacked LSTM (all layers, time-blocked) + sel capture + MLP heads
# ----------------------------------------------------------------------------
def _rnn_judge_kernel(x_ref, tsel_ref, glab_ref, h0_ref, c0_ref, w_ref, b_ref,
                      w1_ref, b1_ref, w2_ref, b2_ref,
                      w3a_ref, w3b_ref, b3_ref, w4_ref, b4_ref,
                      out_ref,
                      h_sc, c_sc, sel_sc, act_sc):
    layer = pl.program_id(0)
    tb = pl.program_id(1)
    n_layers = pl.num_programs(0)
    n_tb = pl.num_programs(1)

    T_blk, Bp, P = x_ref.shape
    Hp = h_sc.shape[-1]
    f32 = jnp.float32
    bf16 = jnp.bfloat16

    # Start of each layer: load that layer's initial hidden / cell state.
    @pl.when(tb == 0)
    def _():
        h_sc[...] = h0_ref[0]
        c_sc[...] = c0_ref[0]

    @pl.when(jnp.logical_and(layer == 0, tb == 0))
    def _():
        sel_sc[...] = jnp.zeros_like(sel_sc)

    w = w_ref[0]            # (P + Hp, 4*Hp)  bf16, [W_ih^T ; W_hh^T], gate-padded
    b = b_ref[0]            # (1, 4*Hp)       f32,  b_ih + b_hh
    tsel = tsel_ref[...]    # (Bp, 1)         int32, clipped last_location - 2
    t0 = tb * T_blk

    def step(i, carry):
        h, c, sel = carry
        # Layer 0 reads the embedding block; deeper layers read the previous
        # layer's output, which stays resident in VMEM (act_sc).
        x_first = x_ref[i]                 # (Bp, P) bf16
        x_carry = act_sc[t0 + i]           # (Bp, P) bf16
        xt = jnp.where(layer == 0, x_first, x_carry)

        # Single fused gate matmul: (Bp, P+Hp) @ (P+Hp, 4Hp), f32 accumulation.
        xh = jnp.concatenate([xt, h.astype(bf16)], axis=-1)
        gates = jnp.dot(xh, w, preferred_element_type=f32) + b   # (Bp, 4Hp)

        # Gate slices are lane-aligned (Hp is a multiple of 128): whole-vreg selects.
        i_g = jax.nn.sigmoid(gates[:, 0 * Hp:1 * Hp])
        f_g = jax.nn.sigmoid(gates[:, 1 * Hp:2 * Hp])
        g_g = jnp.tanh(gates[:, 2 * Hp:3 * Hp])
        o_g = jax.nn.sigmoid(gates[:, 3 * Hp:4 * Hp])
        c_new = f_g * c + i_g * g_g
        h_new = o_g * jnp.tanh(c_new)

        # Stash this layer's output as the next layer's input (VMEM only).
        if P > Hp:
            h_store = jnp.concatenate(
                [h_new.astype(bf16), jnp.zeros((Bp, P - Hp), bf16)], axis=-1)
        else:
            h_store = h_new.astype(bf16)
        act_sc[t0 + i] = h_store

        # Capture output[last_location - 2, b] in-register (no full-seq HBM write).
        hit = tsel == (t0 + i)                       # (Bp, 1) bool
        sel = jnp.where(hit, h_new, sel)
        return h_new, c_new, sel

    h, c, sel = lax.fori_loop(
        0, T_blk, step, (h_sc[...], c_sc[...], sel_sc[...]), unroll=True)
    h_sc[...] = h
    c_sc[...] = c
    sel_sc[...] = sel

    # Final grid step of the last layer: fused judge1_out + judge_out heads.
    # concat(decoded, g_label) @ W3 == decoded @ W3a + g_label @ W3b.
    @pl.when(jnp.logical_and(layer == n_layers - 1, tb == n_tb - 1))
    def _():
        s = sel.astype(bf16)
        h1 = jnp.maximum(
            jnp.dot(s, w1_ref[...], preferred_element_type=f32) + b1_ref[...],
            0.0)                                                     # (Bp, NCLp)
        # dropout_out: identity in eval mode
        dec = (jnp.dot(h1.astype(bf16), w2_ref[...], preferred_element_type=f32)
               + b2_ref[...])                                        # (Bp, Cp)
        z = jnp.maximum(
            jnp.dot(dec.astype(bf16), w3a_ref[...], preferred_element_type=f32)
            + jnp.dot(glab_ref[...].astype(bf16), w3b_ref[...],
                      preferred_element_type=f32)
            + b3_ref[...], 0.0)                                      # (Bp, C2p)
        logit = (jnp.dot(z.astype(bf16), w4_ref[...], preferred_element_type=f32)
                 + b4_ref[...])                                      # (Bp, OUTp)
        out_ref[...] = jax.nn.sigmoid(logit)


# ----------------------------------------------------------------------------
# Parameter init (PyTorch layout) and packing into padded / stacked kernel layout
# ----------------------------------------------------------------------------
def init_raw_params(key, ntoken, ninp, nhid, nlayers, nclass, n_cl_hidden):
    n_keys = 1 + 4 * nlayers + 4
    keys = jax.random.split(key, n_keys)
    ki = iter(keys)
    u = lambda k, shape, lim: jax.random.uniform(k, shape, jnp.float32, -lim, lim)

    raw = {"encoder": u(next(ki), (ntoken, ninp), 0.1)}
    lim = 1.0 / (nhid ** 0.5)
    lstm = []
    for layer in range(nlayers):
        in_dim = ninp if layer == 0 else nhid
        lstm.append({
            "w_ih": u(next(ki), (4 * nhid, in_dim), lim),   # PyTorch layout (4H, in)
            "w_hh": u(next(ki), (4 * nhid, nhid), lim),
            "b_ih": u(next(ki), (4 * nhid,), lim),
            "b_hh": u(next(ki), (4 * nhid,), lim),
        })
    raw["lstm"] = lstm
    # judge heads: weights uniform(-0.1, 0.1), biases zero (weights_init)
    raw["w1"] = u(next(ki), (n_cl_hidden, nhid), 0.1)
    raw["b1"] = jnp.zeros((n_cl_hidden,), jnp.float32)
    raw["w2"] = u(next(ki), (nclass, n_cl_hidden), 0.1)
    raw["b2"] = jnp.zeros((nclass,), jnp.float32)
    raw["w3"] = u(next(ki), (2 * nclass, 2 * nclass), 0.1)
    raw["b3"] = jnp.zeros((2 * nclass,), jnp.float32)
    raw["w4"] = u(next(ki), (1, 2 * nclass), 0.1)
    raw["b4"] = jnp.zeros((1,), jnp.float32)
    return raw


def pack_params(raw):
    bf16 = jnp.bfloat16
    ninp = raw["encoder"].shape[1]
    nhid = raw["lstm"][0]["w_hh"].shape[1]
    n_cl = raw["w1"].shape[0]
    nclass = raw["w2"].shape[0]

    Hp = _round_up(nhid, 128)
    Ip = _round_up(ninp, 128)
    P = max(Ip, Hp)
    NCLp = _round_up(n_cl, 128)
    Cp = _round_up(nclass, 128)
    C2p = _round_up(2 * nclass, 128)
    OUTp = 128                                # lane-dense output slab

    def pad_gates_cols(m):
        # (rows, 4*nhid) -> (rows, 4*Hp), each i/f/g/o gate padded to Hp lanes.
        rows = m.shape[0]
        m4 = m.reshape(rows, 4, nhid)
        out = jnp.zeros((rows, 4, Hp), m.dtype).at[:, :, :nhid].set(m4)
        return out.reshape(rows, 4 * Hp)

    ws, bs = [], []
    for lp in raw["lstm"]:
        in_dim = lp["w_ih"].shape[1]
        w_x = pad_gates_cols(lp["w_ih"].T)            # (in_dim, 4Hp)
        w_h = pad_gates_cols(lp["w_hh"].T)            # (nhid, 4Hp)
        W = jnp.zeros((P + Hp, 4 * Hp), jnp.float32)
        W = W.at[:in_dim].set(w_x).at[P:P + nhid].set(w_h)
        ws.append(W.astype(bf16))
        bs.append(pad_gates_cols((lp["b_ih"] + lp["b_hh"])[None, :]))   # (1, 4Hp)

    def pad2(m, r, c):
        return jnp.zeros((r, c), jnp.float32).at[:m.shape[0], :m.shape[1]].set(m)

    w3t = raw["w3"].T
    packed = {
        "encoder": raw["encoder"],
        "w": jnp.stack(ws, 0),                         # (nlayers, P+Hp, 4Hp) bf16
        "b": jnp.stack(bs, 0),                         # (nlayers, 1, 4Hp)   f32
        "w1": pad2(raw["w1"].T, Hp, NCLp).astype(bf16),
        "b1": pad2(raw["b1"][None, :], 1, NCLp),
        "w2": pad2(raw["w2"].T, NCLp, Cp).astype(bf16),
        "b2": pad2(raw["b2"][None, :], 1, Cp),
        "w3a": pad2(w3t[:nclass], Cp, C2p).astype(bf16),
        "w3b": pad2(w3t[nclass:], Cp, C2p).astype(bf16),
        "b3": pad2(raw["b3"][None, :], 1, C2p),
        "w4": pad2(raw["w4"].T, C2p, OUTp).astype(bf16),
        "b4": pad2(raw["b4"][None, :], 1, OUTp),
    }
    return packed


# ----------------------------------------------------------------------------
# Forward wrapper
# ----------------------------------------------------------------------------
def _forward_impl(packed, tokens, h0, c0, last_location, g_label):
    S, B = tokens.shape
    nlayers = packed["w"].shape[0]
    Hp = packed["b"].shape[-1] // 4
    P = packed["w"].shape[1] - Hp
    Cp = packed["w2"].shape[1]
    OUTp = packed["w4"].shape[1]
    Bp = _round_up(B, 8)
    T_blk = S if S <= 64 else 64
    S_pad = _round_up(S, T_blk)
    n_tb = S_pad // T_blk

    ninp = packed["encoder"].shape[1]
    nhid = h0.shape[-1]
    nclass = g_label.shape[-1]

    # TODO(synk): embedding token gather (nn.Embedding) stays in plain JAX; a
    # data-dependent row gather would need a manual-DMA gather kernel.
    emb = packed["encoder"][tokens]                    # (S, B, ninp); dropout_em = id
    x = jnp.zeros((S_pad, Bp, P), jnp.bfloat16)
    x = x.at[:S, :B, :ninp].set(emb.astype(jnp.bfloat16))

    h0p = jnp.zeros((nlayers, Bp, Hp), jnp.float32).at[:, :B, :nhid].set(h0)
    c0p = jnp.zeros((nlayers, Bp, Hp), jnp.float32).at[:, :B, :nhid].set(c0)

    # Guard last_location - 2 explicitly (no runtime bounds check in-kernel).
    tsel = jnp.zeros((Bp, 1), jnp.int32)
    tsel = tsel.at[:B, 0].set(
        jnp.clip(last_location - 2, 0, S - 1).astype(jnp.int32))

    glabp = jnp.zeros((Bp, Cp), jnp.float32).at[:B, :nclass].set(g_label)

    const2 = lambda l, t: (0, 0)
    per_layer3 = lambda l, t: (l, 0, 0)

    out = pl.pallas_call(
        _rnn_judge_kernel,
        out_shape=jax.ShapeDtypeStruct((Bp, OUTp), jnp.float32),
        grid_spec=pltpu.PrefetchScalarGridSpec(
            num_scalar_prefetch=0,
            grid=(nlayers, n_tb),
            in_specs=[
                pl.BlockSpec((T_blk, Bp, P), lambda l, t: (t, 0, 0)),   # emb block
                pl.BlockSpec((Bp, 1), const2),                          # tsel
                pl.BlockSpec((Bp, Cp), const2),                         # g_label
                pl.BlockSpec((1, Bp, Hp), per_layer3),                  # h0
                pl.BlockSpec((1, Bp, Hp), per_layer3),                  # c0
                pl.BlockSpec((1, P + Hp, 4 * Hp), per_layer3),          # LSTM W
                pl.BlockSpec((1, 1, 4 * Hp), per_layer3),               # LSTM b
                pl.BlockSpec(packed["w1"].shape, const2),               # head w1
                pl.BlockSpec(packed["b1"].shape, const2),
                pl.BlockSpec(packed["w2"].shape, const2),
                pl.BlockSpec(packed["b2"].shape, const2),
                pl.BlockSpec(packed["w3a"].shape, const2),
                pl.BlockSpec(packed["w3b"].shape, const2),
                pl.BlockSpec(packed["b3"].shape, const2),
                pl.BlockSpec(packed["w4"].shape, const2),
                pl.BlockSpec(packed["b4"].shape, const2),
            ],
            out_specs=pl.BlockSpec((Bp, OUTp), const2),
            scratch_shapes=[
                pltpu.VMEM((Bp, Hp), jnp.float32),          # h state
                pltpu.VMEM((Bp, Hp), jnp.float32),          # c state
                pltpu.VMEM((Bp, Hp), jnp.float32),          # sel capture
                pltpu.VMEM((S_pad, Bp, P), jnp.bfloat16),   # inter-layer activations
            ],
        ),
        compiler_params=pltpu.CompilerParams(
            dimension_semantics=("arbitrary", "arbitrary"),
            vmem_limit_bytes=32 * 1024 * 1024),
    )(x, tsel, glabp, h0p, c0p, packed["w"], packed["b"],
      packed["w1"], packed["b1"], packed["w2"], packed["b2"],
      packed["w3a"], packed["w3b"], packed["b3"], packed["w4"], packed["b4"])
    return out[:B, :1]


rnn_model_forward = jax.jit(_forward_impl)


# ----------------------------------------------------------------------------
# Pure-JAX reference (same bf16-weights / f32-accumulation discipline)
# ----------------------------------------------------------------------------
def reference_forward(raw, tokens, h0, c0, last_location, g_label):
    bf16, f32 = jnp.bfloat16, jnp.float32
    S, B = tokens.shape
    x = raw["encoder"][tokens]                         # (S, B, ninp)
    for layer, lp in enumerate(raw["lstm"]):
        H = lp["w_hh"].shape[1]
        w = jnp.concatenate([lp["w_ih"].T, lp["w_hh"].T], axis=0).astype(bf16)
        b = (lp["b_ih"] + lp["b_hh"])[None, :]
        h, c = h0[layer], c0[layer]
        outs = []
        for t in range(S):
            xh = jnp.concatenate([x[t], h], axis=-1).astype(bf16)
            gates = jnp.dot(xh, w, preferred_element_type=f32) + b
            i_g = jax.nn.sigmoid(gates[:, 0 * H:1 * H])
            f_g = jax.nn.sigmoid(gates[:, 1 * H:2 * H])
            g_g = jnp.tanh(gates[:, 2 * H:3 * H])
            o_g = jax.nn.sigmoid(gates[:, 3 * H:4 * H])
            c = f_g * c + i_g * g_g
            h = o_g * jnp.tanh(c)
            outs.append(h)
        x = jnp.stack(outs, axis=0)
    idx = jnp.clip(last_location - 2, 0, S - 1)
    sel = x[idx, jnp.arange(B)]

    def lin(v, w_pt, b_pt):
        return (jnp.dot(v.astype(bf16), w_pt.T.astype(bf16),
                        preferred_element_type=f32) + b_pt[None, :])

    h1 = jnp.maximum(lin(sel, raw["w1"], raw["b1"]), 0.0)
    dec = lin(h1, raw["w2"], raw["b2"])
    nclass = g_label.shape[-1]
    w3t = raw["w3"].T
    z = jnp.maximum(
        jnp.dot(dec.astype(bf16), w3t[:nclass].astype(bf16),
                preferred_element_type=f32)
        + jnp.dot(g_label.astype(bf16), w3t[nclass:].astype(bf16),
                  preferred_element_type=f32)
        + raw["b3"][None, :], 0.0)
    return jax.nn.sigmoid(lin(z, raw["w4"], raw["b4"]))


if __name__ == "__main__":
    NTOKEN, NINP, NHID, NLAYERS = 50, 32, 32, 2
    NCLASS, N_CL_HIDDEN = 4, 30
    SEQ, BATCH = 8, 4

    key = jax.random.PRNGKey(0)
    k_param, k_tok, k_loc, k_lab = jax.random.split(key, 4)

    raw = init_raw_params(k_param, NTOKEN, NINP, NHID, NLAYERS, NCLASS,
                          N_CL_HIDDEN)
    packed = pack_params(raw)

    tokens = jax.random.randint(k_tok, (SEQ, BATCH), 0, NTOKEN, jnp.int32)
    last_location = jax.random.randint(k_loc, (BATCH,), 2, SEQ + 1, jnp.int32)
    g_label = jax.random.uniform(k_lab, (BATCH, NCLASS), jnp.float32)
    h0 = jnp.zeros((NLAYERS, BATCH, NHID), jnp.float32)   # init_hidden (LSTM)
    c0 = jnp.zeros((NLAYERS, BATCH, NHID), jnp.float32)

    out = rnn_model_forward(packed, tokens, h0, c0, last_location, g_label)
    out = jax.block_until_ready(out)

    ref = reference_forward(raw, tokens, h0, c0, last_location, g_label)
    assert out.shape == (BATCH, 1), out.shape
    assert jnp.allclose(out, ref, rtol=1e-3, atol=1e-3), (out, ref)

    print("KERNEL_OK")
</pallas_src>

<mosaic_0001>
module attributes {stable_mosaic.version = 11 : i64} {
  func.func @_rnn_judge_kernel(%arg0: i32, %arg1: i32, %arg2: memref<8x8x128xbf16, #tpu.memory_space<vmem>>, %arg3: memref<8x1xi32, #tpu.memory_space<vmem>>, %arg4: memref<8x128xf32, #tpu.memory_space<vmem>>, %arg5: memref<1x8x128xf32, #tpu.memory_space<vmem>>, %arg6: memref<1x8x128xf32, #tpu.memory_space<vmem>>, %arg7: memref<1x256x512xbf16, #tpu.memory_space<vmem>>, %arg8: memref<1x1x512xf32, #tpu.memory_space<vmem>>, %arg9: memref<128x128xbf16, #tpu.memory_space<vmem>>, %arg10: memref<1x128xf32, #tpu.memory_space<vmem>>, %arg11: memref<128x128xbf16, #tpu.memory_space<vmem>>, %arg12: memref<1x128xf32, #tpu.memory_space<vmem>>, %arg13: memref<128x128xbf16, #tpu.memory_space<vmem>>, %arg14: memref<128x128xbf16, #tpu.memory_space<vmem>>, %arg15: memref<1x128xf32, #tpu.memory_space<vmem>>, %arg16: memref<128x128xbf16, #tpu.memory_space<vmem>>, %arg17: memref<1x128xf32, #tpu.memory_space<vmem>>, %arg18: memref<8x128xf32, #tpu.memory_space<vmem>>, %arg19: memref<8x128xf32, #tpu.memory_space<vmem>>, %arg20: memref<8x128xf32, #tpu.memory_space<vmem>>, %arg21: memref<8x128xf32, #tpu.memory_space<vmem>>, %arg22: memref<8x8x128xbf16, #tpu.memory_space<vmem>>) attributes {dimension_semantics = [#tpu.dimension_semantics<arbitrary>, #tpu.dimension_semantics<arbitrary>], iteration_bounds = array<i64: 2, 1>, scalar_prefetch = 0 : i64, scratch_operands = 4 : i64, tpu.core_type = #tpu.core_type<tc>, window_params = [{transform_indices = @transform_0, window_bounds = array<i64: 8, 8, 128>}, {pipeline_mode = #tpu.pipeline_mode<synchronous>, transform_indices = @transform_1, window_bounds = array<i64: 8, 1>}, {pipeline_mode = #tpu.pipeline_mode<synchronous>, transform_indices = @transform_2, window_bounds = array<i64: 8, 128>}, {transform_indices = @transform_3, window_bounds = array<i64: 1, 8, 128>}, {transform_indices = @transform_4, window_bounds = array<i64: 1, 8, 128>}, {transform_indices = @transform_5, window_bounds = array<i64: 1, 256, 512>}, {transform_indices = @transform_6, window_bounds = array<i64: 1, 1, 512>}, {pipeline_mode = #tpu.pipeline_mode<synchronous>, transform_indices = @transform_7, window_bounds = array<i64: 128, 128>}, {pipeline_mode = #tpu.pipeline_mode<synchronous>, transform_indices = @transform_8, window_bounds = array<i64: 1, 128>}, {pipeline_mode = #tpu.pipeline_mode<synchronous>, transform_indices = @transform_9, window_bounds = array<i64: 128, 128>}, {pipeline_mode = #tpu.pipeline_mode<synchronous>, transform_indices = @transform_10, window_bounds = array<i64: 1, 128>}, {pipeline_mode = #tpu.pipeline_mode<synchronous>, transform_indices = @transform_11, window_bounds = array<i64: 128, 128>}, {pipeline_mode = #tpu.pipeline_mode<synchronous>, transform_indices = @transform_12, window_bounds = array<i64: 128, 128>}, {pipeline_mode = #tpu.pipeline_mode<synchronous>, transform_indices = @transform_13, window_bounds = array<i64: 1, 128>}, {pipeline_mode = #tpu.pipeline_mode<synchronous>, transform_indices = @transform_14, window_bounds = array<i64: 128, 128>}, {pipeline_mode = #tpu.pipeline_mode<synchronous>, transform_indices = @transform_15, window_bounds = array<i64: 1, 128>}, {pipeline_mode = #tpu.pipeline_mode<synchronous>, transform_indices = @transform_16, window_bounds = array<i64: 8, 128>}]} {
    %c0_i32 = arith.constant 0 : i32
    %0 = arith.cmpi eq, %arg1, %c0_i32 : i32
    %1 = arith.extui %0 : i1 to i32
    %c0_i32_0 = arith.constant 0 : i32
    %2 = arith.cmpi ne, %1, %c0_i32_0 : i32
    scf.if %2 {
      %c0_115 = arith.constant 0 : index
      %c0_116 = arith.constant 0 : index
      %c0_117 = arith.constant 0 : index
      %433 = vector.load %arg5[%c0_115, %c0_116, %c0_117] : memref<1x8x128xf32, #tpu.memory_space<vmem>>, vector<1x8x128xf32>
      %434 = vector.shape_cast %433 : vector<1x8x128xf32> to vector<8x128xf32>
      %c0_118 = arith.constant 0 : index
      %c0_119 = arith.constant 0 : index
      %435 = vector.load %arg19[%c0_118, %c0_119] : memref<8x128xf32, #tpu.memory_space<vmem>>, vector<8x128xf32>
      tpu.vector_store %arg19[%c0_118, %c0_119], %434 {strides = array<i32>} : memref<8x128xf32, #tpu.memory_space<vmem>>, vector<8x128xf32>,
      %c0_120 = arith.constant 0 : index
      %c0_121 = arith.constant 0 : index
      %c0_122 = arith.constant 0 : index
      %436 = vector.load %arg6[%c0_120, %c0_121, %c0_122] : memref<1x8x128xf32, #tpu.memory_space<vmem>>, vector<1x8x128xf32>
      %437 = vector.shape_cast %436 : vector<1x8x128xf32> to vector<8x128xf32>
      %c0_123 = arith.constant 0 : index
      %c0_124 = arith.constant 0 : index
      %438 = vector.load %arg20[%c0_123, %c0_124] : memref<8x128xf32, #tpu.memory_space<vmem>>, vector<8x128xf32>
      tpu.vector_store %arg20[%c0_123, %c0_124], %437 {strides = array<i32>} : memref<8x128xf32, #tpu.memory_space<vmem>>, vector<8x128xf32>,
    } else {
    }
    %c0_i32_1 = arith.constant 0 : i32
    %3 = arith.cmpi eq, %arg0, %c0_i32_1 : i32
    %c0_i32_2 = arith.constant 0 : i32
    %4 = arith.cmpi eq, %arg1, %c0_i32_2 : i32
    %5 = arith.andi %3, %4 : i1
    %6 = arith.extui %5 : i1 to i32
    %c0_i32_3 = arith.constant 0 : i32
    %7 = arith.cmpi ne, %6, %c0_i32_3 : i32
    scf.if %7 {
      %cst_115 = arith.constant 0.000000e+00 : f32
      %433 = vector.broadcast %cst_115 : f32 to vector<8x128xf32>
      %c0_116 = arith.constant 0 : index
      %c0_117 = arith.constant 0 : index
      %434 = vector.load %arg21[%c0_116, %c0_117] : memref<8x128xf32, #tpu.memory_space<vmem>>, vector<8x128xf32>
      tpu.vector_store %arg21[%c0_116, %c0_117], %433 {strides = array<i32>} : memref<8x128xf32, #tpu.memory_space<vmem>>, vector<8x128xf32>,
    } else {
    }
    %c0 = arith.constant 0 : index
    %c0_4 = arith.constant 0 : index
    %c0_5 = arith.constant 0 : index
    %8 = vector.load %arg7[%c0, %c0_4, %c0_5] : memref<1x256x512xbf16, #tpu.memory_space<vmem>>, vector<1x256x512xbf16>
    %9 = vector.shape_cast %8 : vector<1x256x512xbf16> to vector<256x512xbf16>
    %c0_6 = arith.constant 0 : index
    %c0_7 = arith.constant 0 : index
    %c0_8 = arith.constant 0 : index
    %10 = vector.load %arg8[%c0_6, %c0_7, %c0_8] : memref<1x1x512xf32, #tpu.memory_space<vmem>>, vector<1x1x512xf32>
    %11 = vector.shape_cast %10 : vector<1x1x512xf32> to vector<1x512xf32>
    %c0_9 = arith.constant 0 : index
    %c0_10 = arith.constant 0 : index
    %12 = vector.load %arg3[%c0_9, %c0_10] : memref<8x1xi32, #tpu.memory_space<vmem>>, vector<8x1xi32>
    %c8_i32 = arith.constant 8 : i32
    %13 = arith.muli %arg1, %c8_i32 : i32
    %c0_11 = arith.constant 0 : index
    %c0_12 = arith.constant 0 : index
    %14 = vector.load %arg19[%c0_11, %c0_12] : memref<8x128xf32, #tpu.memory_space<vmem>>, vector<8x128xf32>
    %c0_13 = arith.constant 0 : index
    %c0_14 = arith.constant 0 : index
    %15 = vector.load %arg20[%c0_13, %c0_14] : memref<8x128xf32, #tpu.memory_space<vmem>>, vector<8x128xf32>
    %c0_15 = arith.constant 0 : index
    %c0_16 = arith.constant 0 : index
    %16 = vector.load %arg21[%c0_15, %c0_16] : memref<8x128xf32, #tpu.memory_space<vmem>>, vector<8x128xf32>
    %c0_i32_17 = arith.constant 0 : i32
    %17 = arith.index_cast %c0_i32_17 : i32 to index
    %c0_18 = arith.constant 0 : index
    %c0_19 = arith.constant 0 : index
    %18 = vector.load %arg2[%17, %c0_18, %c0_19] : memref<8x8x128xbf16, #tpu.memory_space<vmem>>, vector<1x8x128xbf16>
    %19 = vector.shape_cast %18 : vector<1x8x128xbf16> to vector<8x128xbf16>
    %20 = arith.addi %13, %c0_i32_17 : i32
    %21 = arith.index_cast %20 : i32 to index
    %c0_20 = arith.constant 0 : index
    %c0_21 = arith.constant 0 : index
    %22 = vector.load %arg22[%21, %c0_20, %c0_21] : memref<8x8x128xbf16, #tpu.memory_space<vmem>>, vector<1x8x128xbf16>
    %23 = vector.shape_cast %22 : vector<1x8x128xbf16> to vector<8x128xbf16>
    %c0_i32_22 = arith.constant 0 : i32
    %24 = arith.cmpi eq, %arg0, %c0_i32_22 : i32
    %25 = arith.select %24, %19, %23 : vector<8x128xbf16>
    %26 = arith.truncf %14 : vector<8x128xf32> to vector<8x128xbf16>
    %27 = tpu.concatenate %25, %26 in 1 : vector<8x128xbf16>, vector<8x128xbf16> -> vector<8x256xbf16>
    %cst = arith.constant dense<0.000000e+00> : vector<8x512xf32>
    %28 = tpu.matmul %27, %9, %cst {dimension_numbers = #tpu.dot_dimension_numbers<[1], [0], [0], [1], [0, 0, 1, 1], [], []>} : vector<8x256xbf16>, vector<256x512xbf16>, vector<8x512xf32> -> vector<8x512xf32>
    %29 = vector.broadcast %11 : vector<1x512xf32> to vector<8x512xf32>
    %30 = arith.addf %28, %29 : vector<8x512xf32>
    %31 = vector.extract_strided_slice %30 {offsets = [0, 0], sizes = [8, 128], strides = [1, 1]} : vector<8x512xf32> to vector<8x128xf32>
    %32 = arith.negf %31 : vector<8x128xf32>
    %33 = math.exp %32 : vector<8x128xf32>
    %cst_23 = arith.constant 1.000000e+00 : f32
    %34 = vector.broadcast %cst_23 : f32 to vector<8x128xf32>
    %35 = arith.addf %34, %33 : vector<8x128xf32>
    %36 = arith.divf %34, %35 : vector<8x128xf32>
    %37 = vector.extract_strided_slice %30 {offsets = [0, 128], sizes = [8, 128], strides = [1, 1]} : vector<8x512xf32> to vector<8x128xf32>
    %38 = arith.negf %37 : vector<8x128xf32>
    %39 = math.exp %38 : vector<8x128xf32>
    %cst_24 = arith.constant 1.000000e+00 : f32
    %40 = vector.broadcast %cst_24 : f32 to vector<8x128xf32>
    %41 = arith.addf %40, %39 : vector<8x128xf32>
    %42 = arith.divf %40, %41 : vector<8x128xf32>
    %43 = vector.extract_strided_slice %30 {offsets = [0, 256], sizes = [8, 128], strides = [1, 1]} : vector<8x512xf32> to vector<8x128xf32>
    %44 = math.tanh %43 : vector<8x128xf32>
    %45 = vector.extract_strided_slice %30 {offsets = [0, 384], sizes = [8, 128], strides = [1, 1]} : vector<8x512xf32> to vector<8x128xf32>
    %46 = arith.negf %45 : vector<8x128xf32>
    %47 = math.exp %46 : vector<8x128xf32>
    %cst_25 = arith.constant 1.000000e+00 : f32
    %48 = vector.broadcast %cst_25 : f32 to vector<8x128xf32>
    %49 = arith.addf %48, %47 : vector<8x128xf32>
    %50 = arith.divf %48, %49 : vector<8x128xf32>
    %51 = arith.mulf %42, %15 : vector<8x128xf32>
    %52 = arith.mulf %36, %44 : vector<8x128xf32>
    %53 = arith.addf %51, %52 : vector<8x128xf32>
    %54 = math.tanh %53 : vector<8x128xf32>
    %55 = arith.mulf %50, %54 : vector<8x128xf32>
    %56 = arith.truncf %55 : vector<8x128xf32> to vector<8x128xbf16>
    %57 = arith.addi %13, %c0_i32_17 : i32
    %58 = arith.index_cast %57 : i32 to index
    %c0_26 = arith.constant 0 : index
    %c0_27 = arith.constant 0 : index
    %59 = vector.load %arg22[%58, %c0_26, %c0_27] : memref<8x8x128xbf16, #tpu.memory_space<vmem>>, vector<1x8x128xbf16>
    %60 = vector.shape_cast %59 : vector<1x8x128xbf16> to vector<8x128xbf16>
    %61 = vector.shape_cast %56 : vector<8x128xbf16> to vector<1x8x128xbf16>
    tpu.vector_store %arg22[%58, %c0_26, %c0_27], %61 {strides = array<i32>} : memref<8x8x128xbf16, #tpu.memory_space<vmem>>, vector<1x8x128xbf16>,
    %62 = arith.addi %13, %c0_i32_17 : i32
    %63 = vector.broadcast %62 : i32 to vector<8x1xi32>
    %64 = arith.cmpi eq, %12, %63 : vector<8x1xi32>
    %65 = vector.shape_cast %64 : vector<8x1xi1> to vector<8x1xi1>
    %66 = vector.broadcast %65 : vector<8x1xi1> to vector<8x128xi1>
    %67 = arith.select %66, %55, %16 : vector<8x128xi1>, vector<8x128xf32>
    %c1_i32 = arith.constant 1 : i32
    %68 = arith.index_cast %c1_i32 : i32 to index
    %c0_28 = arith.constant 0 : index
    %c0_29 = arith.constant 0 : index
    %69 = vector.load %arg2[%68, %c0_28, %c0_29] : memref<8x8x128xbf16, #tpu.memory_space<vmem>>, vector<1x8x128xbf16>
    %70 = vector.shape_cast %69 : vector<1x8x128xbf16> to vector<8x128xbf16>
    %71 = arith.addi %13, %c1_i32 : i32
    %72 = arith.index_cast %71 : i32 to index
    %c0_30 = arith.constant 0 : index
    %c0_31 = arith.constant 0 : index
    %73 = vector.load %arg22[%72, %c0_30, %c0_31] : memref<8x8x128xbf16, #tpu.memory_space<vmem>>, vector<1x8x128xbf16>
    %74 = vector.shape_cast %73 : vector<1x8x128xbf16> to vector<8x128xbf16>
    %c0_i32_32 = arith.constant 0 : i32
    %75 = arith.cmpi eq, %arg0, %c0_i32_32 : i32
    %76 = arith.select %75, %70, %74 : vector<8x128xbf16>
    %77 = arith.truncf %55 : vector<8x128xf32> to vector<8x128xbf16>
    %78 = tpu.concatenate %76, %77 in 1 : vector<8x128xbf16>, vector<8x128xbf16> -> vector<8x256xbf16>
    %cst_33 = arith.constant dense<0.000000e+00> : vector<8x512xf32>
    %79 = tpu.matmul %78, %9, %cst_33 {dimension_numbers = #tpu.dot_dimension_numbers<[1], [0], [0], [1], [0, 0, 1, 1], [], []>} : vector<8x256xbf16>, vector<256x512xbf16>, vector<8x512xf32> -> vector<8x512xf32>
    %80 = vector.broadcast %11 : vector<1x512xf32> to vector<8x512xf32>
    %81 = arith.addf %79, %80 : vector<8x512xf32>
    %82 = vector.extract_strided_slice %81 {offsets = [0, 0], sizes = [8, 128], strides = [1, 1]} : vector<8x512xf32> to vector<8x128xf32>
    %83 = arith.negf %82 : vector<8x128xf32>
    %84 = math.exp %83 : vector<8x128xf32>
    %cst_34 = arith.constant 1.000000e+00 : f32
    %85 = vector.broadcast %cst_34 : f32 to vector<8x128xf32>
    %86 = arith.addf %85, %84 : vector<8x128xf32>
    %87 = arith.divf %85, %86 : vector<8x128xf32>
    %88 = vector.extract_strided_slice %81 {offsets = [0, 128], sizes = [8, 128], strides = [1, 1]} : vector<8x512xf32> to vector<8x128xf32>
    %89 = arith.negf %88 : vector<8x128xf32>
    %90 = math.exp %89 : vector<8x128xf32>
    %cst_35 = arith.constant 1.000000e+00 : f32
    %91 = vector.broadcast %cst_35 : f32 to vector<8x128xf32>
    %92 = arith.addf %91, %90 : vector<8x128xf32>
    %93 = arith.divf %91, %92 : vector<8x128xf32>
    %94 = vector.extract_strided_slice %81 {offsets = [0, 256], sizes = [8, 128], strides = [1, 1]} : vector<8x512xf32> to vector<8x128xf32>
    %95 = math.tanh %94 : vector<8x128xf32>
    %96 = vector.extract_strided_slice %81 {offsets = [0, 384], sizes = [8, 128], strides = [1, 1]} : vector<8x512xf32> to vector<8x128xf32>
    %97 = arith.negf %96 : vector<8x128xf32>
    %98 = math.exp %97 : vector<8x128xf32>
    %cst_36 = arith.constant 1.000000e+00 : f32
    %99 = vector.broadcast %cst_36 : f32 to vector<8x128xf32>
    %100 = arith.addf %99, %98 : vector<8x128xf32>
    %101 = arith.divf %99, %100 : vector<8x128xf32>
    %102 = arith.mulf %93, %53 : vector<8x128xf32>
    %103 = arith.mulf %87, %95 : vector<8x128xf32>
    %104 = arith.addf %102, %103 : vector<8x128xf32>
    %105 = math.tanh %104 : vector<8x128xf32>
    %106 = arith.mulf %101, %105 : vector<8x128xf32>
    %107 = arith.truncf %106 : vector<8x128xf32> to vector<8x128xbf16>
    %108 = arith.addi %13, %c1_i32 : i32
    %109 = arith.index_cast %108 : i32 to index
    %c0_37 = arith.constant 0 : index
    %c0_38 = arith.constant 0 : index
    %110 = vector.load %arg22[%109, %c0_37, %c0_38] : memref<8x8x128xbf16, #tpu.memory_space<vmem>>, vector<1x8x128xbf16>
    %111 = vector.shape_cast %110 : vector<1x8x128xbf16> to vector<8x128xbf16>
    %112 = vector.shape_cast %107 : vector<8x128xbf16> to vector<1x8x128xbf16>
    tpu.vector_store %arg22[%109, %c0_37, %c0_38], %112 {strides = array<i32>} : memref<8x8x128xbf16, #tpu.memory_space<vmem>>, vector<1x8x128xbf16>,
    %113 = arith.addi %13, %c1_i32 : i32
    %114 = vector.broadcast %113 : i32 to vector<8x1xi32>
    %115 = arith.cmpi eq, %12, %114 : vector<8x1xi32>
    %116 = vector.shape_cast %115 : vector<8x1xi1> to vector<8x1xi1>
    %117 = vector.broadcast %116 : vector<8x1xi1> to vector<8x128xi1>
    %118 = arith.select %117, %106, %67 : vector<8x128xi1>, vector<8x128xf32>
    %c2_i32 = arith.constant 2 : i32
    %119 = arith.index_cast %c2_i32 : i32 to index
    %c0_39 = arith.constant 0 : index
    %c0_40 = arith.constant 0 : index
    %120 = vector.load %arg2[%119, %c0_39, %c0_40] : memref<8x8x128xbf16, #tpu.memory_space<vmem>>, vector<1x8x128xbf16>
    %121 = vector.shape_cast %120 : vector<1x8x128xbf16> to vector<8x128xbf16>
    %122 = arith.addi %13, %c2_i32 : i32
    %123 = arith.index_cast %122 : i32 to index
    %c0_41 = arith.constant 0 : index
    %c0_42 = arith.constant 0 : index
    %124 = vector.load %arg22[%123, %c0_41, %c0_42] : memref<8x8x128xbf16, #tpu.memory_space<vmem>>, vector<1x8x128xbf16>
    %125 = vector.shape_cast %124 : vector<1x8x128xbf16> to vector<8x128xbf16>
    %c0_i32_43 = arith.constant 0 : i32
    %126 = arith.cmpi eq, %arg0, %c0_i32_43 : i32
    %127 = arith.select %126, %121, %125 : vector<8x128xbf16>
    %128 = arith.truncf %106 : vector<8x128xf32> to vector<8x128xbf16>
    %129 = tpu.concatenate %127, %128 in 1 : vector<8x128xbf16>, vector<8x128xbf16> -> vector<8x256xbf16>
    %cst_44 = arith.constant dense<0.000000e+00> : vector<8x512xf32>
    %130 = tpu.matmul %129, %9, %cst_44 {dimension_numbers = #tpu.dot_dimension_numbers<[1], [0], [0], [1], [0, 0, 1, 1], [], []>} : vector<8x256xbf16>, vector<256x512xbf16>, vector<8x512xf32> -> vector<8x512xf32>
    %131 = vector.broadcast %11 : vector<1x512xf32> to vector<8x512xf32>
    %132 = arith.addf %130, %131 : vector<8x512xf32>
    %133 = vector.extract_strided_slice %132 {offsets = [0, 0], sizes = [8, 128], strides = [1, 1]} : vector<8x512xf32> to vector<8x128xf32>
    %134 = arith.negf %133 : vector<8x128xf32>
    %135 = math.exp %134 : vector<8x128xf32>
    %cst_45 = arith.constant 1.000000e+00 : f32
    %136 = vector.broadcast %cst_45 : f32 to vector<8x128xf32>
    %137 = arith.addf %136, %135 : vector<8x128xf32>
    %138 = arith.divf %136, %137 : vector<8x128xf32>
    %139 = vector.extract_strided_slice %132 {offsets = [0, 128], sizes = [8, 128], strides = [1, 1]} : vector<8x512xf32> to vector<8x128xf32>
    %140 = arith.negf %139 : vector<8x128xf32>
    %141 = math.exp %140 : vector<8x128xf32>
    %cst_46 = arith.constant 1.000000e+00 : f32
    %142 = vector.broadcast %cst_46 : f32 to vector<8x128xf32>
    %143 = arith.addf %142, %141 : vector<8x128xf32>
    %144 = arith.divf %142, %143 : vector<8x128xf32>
    %145 = vector.extract_strided_slice %132 {offsets = [0, 256], sizes = [8, 128], strides = [1, 1]} : vector<8x512xf32> to vector<8x128xf32>
    %146 = math.tanh %145 : vector<8x128xf32>
    %147 = vector.extract_strided_slice %132 {offsets = [0, 384], sizes = [8, 128], strides = [1, 1]} : vector<8x512xf32> to vector<8x128xf32>
    %148 = arith.negf %147 : vector<8x128xf32>
    %149 = math.exp %148 : vector<8x128xf32>
    %cst_47 = arith.constant 1.000000e+00 : f32
    %150 = vector.broadcast %cst_47 : f32 to vector<8x128xf32>
    %151 = arith.addf %150, %149 : vector<8x128xf32>
    %152 = arith.divf %150, %151 : vector<8x128xf32>
    %153 = arith.mulf %144, %104 : vector<8x128xf32>
    %154 = arith.mulf %138, %146 : vector<8x128xf32>
    %155 = arith.addf %153, %154 : vector<8x128xf32>
    %156 = math.tanh %155 : vector<8x128xf32>
    %157 = arith.mulf %152, %156 : vector<8x128xf32>
    %158 = arith.truncf %157 : vector<8x128xf32> to vector<8x128xbf16>
    %159 = arith.addi %13, %c2_i32 : i32
    %160 = arith.index_cast %159 : i32 to index
    %c0_48 = arith.constant 0 : index
    %c0_49 = arith.constant 0 : index
    %161 = vector.load %arg22[%160, %c0_48, %c0_49] : memref<8x8x128xbf16, #tpu.memory_space<vmem>>, vector<1x8x128xbf16>
    %162 = vector.shape_cast %161 : vector<1x8x128xbf16> to vector<8x128xbf16>
    %163 = vector.shape_cast %158 : vector<8x128xbf16> to vector<1x8x128xbf16>
    tpu.vector_store %arg22[%160, %c0_48, %c0_49], %163 {strides = array<i32>} : memref<8x8x128xbf16, #tpu.memory_space<vmem>>, vector<1x8x128xbf16>,
    %164 = arith.addi %13, %c2_i32 : i32
    %165 = vector.broadcast %164 : i32 to vector<8x1xi32>
    %166 = arith.cmpi eq, %12, %165 : vector<8x1xi32>
    %167 = vector.shape_cast %166 : vector<8x1xi1> to vector<8x1xi1>
    %168 = vector.broadcast %167 : vector<8x1xi1> to vector<8x128xi1>
    %169 = arith.select %168, %157, %118 : vector<8x128xi1>, vector<8x128xf32>
    %c3_i32 = arith.constant 3 : i32
    %170 = arith.index_cast %c3_i32 : i32 to index
    %c0_50 = arith.constant 0 : index
    %c0_51 = arith.constant 0 : index
    %171 = vector.load %arg2[%170, %c0_50, %c0_51] : memref<8x8x128xbf16, #tpu.memory_space<vmem>>, vector<1x8x128xbf16>
    %172 = vector.shape_cast %171 : vector<1x8x128xbf16> to vector<8x128xbf16>
    %173 = arith.addi %13, %c3_i32 : i32
    %174 = arith.index_cast %173 : i32 to index
    %c0_52 = arith.constant 0 : index
    %c0_53 = arith.constant 0 : index
    %175 = vector.load %arg22[%174, %c0_52, %c0_53] : memref<8x8x128xbf16, #tpu.memory_space<vmem>>, vector<1x8x128xbf16>
    %176 = vector.shape_cast %175 : vector<1x8x128xbf16> to vector<8x128xbf16>
    %c0_i32_54 = arith.constant 0 : i32
    %177 = arith.cmpi eq, %arg0, %c0_i32_54 : i32
    %178 = arith.select %177, %172, %176 : vector<8x128xbf16>
    %179 = arith.truncf %157 : vector<8x128xf32> to vector<8x128xbf16>
    %180 = tpu.concatenate %178, %179 in 1 : vector<8x128xbf16>, vector<8x128xbf16> -> vector<8x256xbf16>
    %cst_55 = arith.constant dense<0.000000e+00> : vector<8x512xf32>
    %181 = tpu.matmul %180, %9, %cst_55 {dimension_numbers = #tpu.dot_dimension_numbers<[1], [0], [0], [1], [0, 0, 1, 1], [], []>} : vector<8x256xbf16>, vector<256x512xbf16>, vector<8x512xf32> -> vector<8x512xf32>
    %182 = vector.broadcast %11 : vector<1x512xf32> to vector<8x512xf32>
    %183 = arith.addf %181, %182 : vector<8x512xf32>
    %184 = vector.extract_strided_slice %183 {offsets = [0, 0], sizes = [8, 128], strides = [1, 1]} : vector<8x512xf32> to vector<8x128xf32>
    %185 = arith.negf %184 : vector<8x128xf32>
    %186 = math.exp %185 : vector<8x128xf32>
    %cst_56 = arith.constant 1.000000e+00 : f32
    %187 = vector.broadcast %cst_56 : f32 to vector<8x128xf32>
    %188 = arith.addf %187, %186 : vector<8x128xf32>
    %189 = arith.divf %187, %188 : vector<8x128xf32>
    %190 = vector.extract_strided_slice %183 {offsets = [0, 128], sizes = [8, 128], strides = [1, 1]} : vector<8x512xf32> to vector<8x128xf32>
    %191 = arith.negf %190 : vector<8x128xf32>
    %192 = math.exp %191 : vector<8x128xf32>
    %cst_57 = arith.constant 1.000000e+00 : f32
    %193 = vector.broadcast %cst_57 : f32 to vector<8x128xf32>
    %194 = arith.addf %193, %192 : vector<8x128xf32>
    %195 = arith.divf %193, %194 : vector<8x128xf32>
    %196 = vector.extract_strided_slice %183 {offsets = [0, 256], sizes = [8, 128], strides = [1, 1]} : vector<8x512xf32> to vector<8x128xf32>
    %197 = math.tanh %196 : vector<8x128xf32>
    %198 = vector.extract_strided_slice %183 {offsets = [0, 384], sizes = [8, 128], strides = [1, 1]} : vector<8x512xf32> to vector<8x128xf32>
    %199 = arith.negf %198 : vector<8x128xf32>
    %200 = math.exp %199 : vector<8x128xf32>
    %cst_58 = arith.constant 1.000000e+00 : f32
    %201 = vector.broadcast %cst_58 : f32 to vector<8x128xf32>
    %202 = arith.addf %201, %200 : vector<8x128xf32>
    %203 = arith.divf %201, %202 : vector<8x128xf32>
    %204 = arith.mulf %195, %155 : vector<8x128xf32>
    %205 = arith.mulf %189, %197 : vector<8x128xf32>
    %206 = arith.addf %204, %205 : vector<8x128xf32>
    %207 = math.tanh %206 : vector<8x128xf32>
    %208 = arith.mulf %203, %207 : vector<8x128xf32>
    %209 = arith.truncf %208 : vector<8x128xf32> to vector<8x128xbf16>
    %210 = arith.addi %13, %c3_i32 : i32
    %211 = arith.index_cast %210 : i32 to index
    %c0_59 = arith.constant 0 : index
    %c0_60 = arith.constant 0 : index
    %212 = vector.load %arg22[%211, %c0_59, %c0_60] : memref<8x8x128xbf16, #tpu.memory_space<vmem>>, vector<1x8x128xbf16>
    %213 = vector.shape_cast %212 : vector<1x8x128xbf16> to vector<8x128xbf16>
    %214 = vector.shape_cast %209 : vector<8x128xbf16> to vector<1x8x128xbf16>
    tpu.vector_store %arg22[%211, %c0_59, %c0_60], %214 {strides = array<i32>} : memref<8x8x128xbf16, #tpu.memory_space<vmem>>, vector<1x8x128xbf16>,
    %215 = arith.addi %13, %c3_i32 : i32
    %216 = vector.broadcast %215 : i32 to vector<8x1xi32>
    %217 = arith.cmpi eq, %12, %216 : vector<8x1xi32>
    %218 = vector.shape_cast %217 : vector<8x1xi1> to vector<8x1xi1>
    %219 = vector.broadcast %218 : vector<8x1xi1> to vector<8x128xi1>
    %220 = arith.select %219, %208, %169 : vector<8x128xi1>, vector<8x128xf32>
    %c4_i32 = arith.constant 4 : i32
    %221 = arith.index_cast %c4_i32 : i32 to index
    %c0_61 = arith.constant 0 : index
    %c0_62 = arith.constant 0 : index
    %222 = vector.load %arg2[%221, %c0_61, %c0_62] : memref<8x8x128xbf16, #tpu.memory_space<vmem>>, vector<1x8x128xbf16>
    %223 = vector.shape_cast %222 : vector<1x8x128xbf16> to vector<8x128xbf16>
    %224 = arith.addi %13, %c4_i32 : i32
    %225 = arith.index_cast %224 : i32 to index
    %c0_63 = arith.constant 0 : index
    %c0_64 = arith.constant 0 : index
    %226 = vector.load %arg22[%225, %c0_63, %c0_64] : memref<8x8x128xbf16, #tpu.memory_space<vmem>>, vector<1x8x128xbf16>
    %227 = vector.shape_cast %226 : vector<1x8x128xbf16> to vector<8x128xbf16>
    %c0_i32_65 = arith.constant 0 : i32
    %228 = arith.cmpi eq, %arg0, %c0_i32_65 : i32
    %229 = arith.select %228, %223, %227 : vector<8x128xbf16>
    %230 = arith.truncf %208 : vector<8x128xf32> to vector<8x128xbf16>
    %231 = tpu.concatenate %229, %230 in 1 : vector<8x128xbf16>, vector<8x128xbf16> -> vector<8x256xbf16>
    %cst_66 = arith.constant dense<0.000000e+00> : vector<8x512xf32>
    %232 = tpu.matmul %231, %9, %cst_66 {dimension_numbers = #tpu.dot_dimension_numbers<[1], [0], [0], [1], [0, 0, 1, 1], [], []>} : vector<8x256xbf16>, vector<256x512xbf16>, vector<8x512xf32> -> vector<8x512xf32>
    %233 = vector.broadcast %11 : vector<1x512xf32> to vector<8x512xf32>
    %234 = arith.addf %232, %233 : vector<8x512xf32>
    %235 = vector.extract_strided_slice %234 {offsets = [0, 0], sizes = [8, 128], strides = [1, 1]} : vector<8x512xf32> to vector<8x128xf32>
    %236 = arith.negf %235 : vector<8x128xf32>
    %237 = math.exp %236 : vector<8x128xf32>
    %cst_67 = arith.constant 1.000000e+00 : f32
    %238 = vector.broadcast %cst_67 : f32 to vector<8x128xf32>
    %239 = arith.addf %238, %237 : vector<8x128xf32>
    %240 = arith.divf %238, %239 : vector<8x128xf32>
    %241 = vector.extract_strided_slice %234 {offsets = [0, 128], sizes = [8, 128], strides = [1, 1]} : vector<8x512xf32> to vector<8x128xf32>
    %242 = arith.negf %241 : vector<8x128xf32>
    %243 = math.exp %242 : vector<8x128xf32>
    %cst_68 = arith.constant 1.000000e+00 : f32
    %244 = vector.broadcast %cst_68 : f32 to vector<8x128xf32>
    %245 = arith.addf %244, %243 : vector<8x128xf32>
    %246 = arith.divf %244, %245 : vector<8x128xf32>
    %247 = vector.extract_strided_slice %234 {offsets = [0, 256], sizes = [8, 128], strides = [1, 1]} : vector<8x512xf32> to vector<8x128xf32>
    %248 = math.tanh %247 : vector<8x128xf32>
    %249 = vector.extract_strided_slice %234 {offsets = [0, 384], sizes = [8, 128], strides = [1, 1]} : vector<8x512xf32> to vector<8x128xf32>
    %250 = arith.negf %249 : vector<8x128xf32>
    %251 = math.exp %250 : vector<8x128xf32>
    %cst_69 = arith.constant 1.000000e+00 : f32
    %252 = vector.broadcast %cst_69 : f32 to vector<8x128xf32>
    %253 = arith.addf %252, %251 : vector<8x128xf32>
    %254 = arith.divf %252, %253 : vector<8x128xf32>
    %255 = arith.mulf %246, %206 : vector<8x128xf32>
    %256 = arith.mulf %240, %248 : vector<8x128xf32>
    %257 = arith.addf %255, %256 : vector<8x128xf32>
    %258 = math.tanh %257 : vector<8x128xf32>
    %259 = arith.mulf %254, %258 : vector<8x128xf32>
    %260 = arith.truncf %259 : vector<8x128xf32> to vector<8x128xbf16>
    %261 = arith.addi %13, %c4_i32 : i32
    %262 = arith.index_cast %261 : i32 to index
    %c0_70 = arith.constant 0 : index
    %c0_71 = arith.constant 0 : index
    %263 = vector.load %arg22[%262, %c0_70, %c0_71] : memref<8x8x128xbf16, #tpu.memory_space<vmem>>, vector<1x8x128xbf16>
    %264 = vector.shape_cast %263 : vector<1x8x128xbf16> to vector<8x128xbf16>
    %265 = vector.shape_cast %260 : vector<8x128xbf16> to vector<1x8x128xbf16>
    tpu.vector_store %arg22[%262, %c0_70, %c0_71], %265 {strides = array<i32>} : memref<8x8x128xbf16, #tpu.memory_space<vmem>>, vector<1x8x128xbf16>,
    %266 = arith.addi %13, %c4_i32 : i32
    %267 = vector.broadcast %266 : i32 to vector<8x1xi32>
    %268 = arith.cmpi eq, %12, %267 : vector<8x1xi32>
    %269 = vector.shape_cast %268 : vector<8x1xi1> to vector<8x1xi1>
    %270 = vector.broadcast %269 : vector<8x1xi1> to vector<8x128xi1>
    %271 = arith.select %270, %259, %220 : vector<8x128xi1>, vector<8x128xf32>
    %c5_i32 = arith.constant 5 : i32
    %272 = arith.index_cast %c5_i32 : i32 to index
    %c0_72 = arith.constant 0 : index
    %c0_73 = arith.constant 0 : index
    %273 = vector.load %arg2[%272, %c0_72, %c0_73] : memref<8x8x128xbf16, #tpu.memory_space<vmem>>, vector<1x8x128xbf16>
    %274 = vector.shape_cast %273 : vector<1x8x128xbf16> to vector<8x128xbf16>
    %275 = arith.addi %13, %c5_i32 : i32
    %276 = arith.index_cast %275 : i32 to index
    %c0_74 = arith.constant 0 : index
    %c0_75 = arith.constant 0 : index
    %277 = vector.load %arg22[%276, %c0_74, %c0_75] : memref<8x8x128xbf16, #tpu.memory_space<vmem>>, vector<1x8x128xbf16>
    %278 = vector.shape_cast %277 : vector<1x8x128xbf16> to vector<8x128xbf16>
    %c0_i32_76 = arith.constant 0 : i32
    %279 = arith.cmpi eq, %arg0, %c0_i32_76 : i32
    %280 = arith.select %279, %274, %278 : vector<8x128xbf16>
    %281 = arith.truncf %259 : vector<8x128xf32> to vector<8x128xbf16>
    %282 = tpu.concatenate %280, %281 in 1 : vector<8x128xbf16>, vector<8x128xbf16> -> vector<8x256xbf16>
    %cst_77 = arith.constant dense<0.000000e+00> : vector<8x512xf32>
    %283 = tpu.matmul %282, %9, %cst_77 {dimension_numbers = #tpu.dot_dimension_numbers<[1], [0], [0], [1], [0, 0, 1, 1], [], []>} : vector<8x256xbf16>, vector<256x512xbf16>, vector<8x512xf32> -> vector<8x512xf32>
    %284 = vector.broadcast %11 : vector<1x512xf32> to vector<8x512xf32>
    %285 = arith.addf %283, %284 : vector<8x512xf32>
    %286 = vector.extract_strided_slice %285 {offsets = [0, 0], sizes = [8, 128], strides = [1, 1]} : vector<8x512xf32> to vector<8x128xf32>
    %287 = arith.negf %286 : vector<8x128xf32>
    %288 = math.exp %287 : vector<8x128xf32>
    %cst_78 = arith.constant 1.000000e+00 : f32
    %289 = vector.broadcast %cst_78 : f32 to vector<8x128xf32>
    %290 = arith.addf %289, %288 : vector<8x128xf32>
    %291 = arith.divf %289, %290 : vector<8x128xf32>
    %292 = vector.extract_strided_slice %285 {offsets = [0, 128], sizes = [8, 128], strides = [1, 1]} : vector<8x512xf32> to vector<8x128xf32>
    %293 = arith.negf %292 : vector<8x128xf32>
    %294 = math.exp %293 : vector<8x128xf32>
    %cst_79 = arith.constant 1.000000e+00 : f32
    %295 = vector.broadcast %cst_79 : f32 to vector<8x128xf32>
    %296 = arith.addf %295, %294 : vector<8x128xf32>
    %297 = arith.divf %295, %296 : vector<8x128xf32>
    %298 = vector.extract_strided_slice %285 {offsets = [0, 256], sizes = [8, 128], strides = [1, 1]} : vector<8x512xf32> to vector<8x128xf32>
    %299 = math.tanh %298 : vector<8x128xf32>
    %300 = vector.extract_strided_slice %285 {offsets = [0, 384], sizes = [8, 128], strides = [1, 1]} : vector<8x512xf32> to vector<8x128xf32>
    %301 = arith.negf %300 : vector<8x128xf32>
    %302 = math.exp %301 : vector<8x128xf32>
    %cst_80 = arith.constant 1.000000e+00 : f32
    %303 = vector.broadcast %cst_80 : f32 to vector<8x128xf32>
    %304 = arith.addf %303, %302 : vector<8x128xf32>
    %305 = arith.divf %303, %304 : vector<8x128xf32>
    %306 = arith.mulf %297, %257 : vector<8x128xf32>
    %307 = arith.mulf %291, %299 : vector<8x128xf32>
    %308 = arith.addf %306, %307 : vector<8x128xf32>
    %309 = math.tanh %308 : vector<8x128xf32>
    %310 = arith.mulf %305, %309 : vector<8x128xf32>
    %311 = arith.truncf %310 : vector<8x128xf32> to vector<8x128xbf16>
    %312 = arith.addi %13, %c5_i32 : i32
    %313 = arith.index_cast %312 : i32 to index
    %c0_81 = arith.constant 0 : index
    %c0_82 = arith.constant 0 : index
    %314 = vector.load %arg22[%313, %c0_81, %c0_82] : memref<8x8x128xbf16, #tpu.memory_space<vmem>>, vector<1x8x128xbf16>
    %315 = vector.shape_cast %314 : vector<1x8x128xbf16> to vector<8x128xbf16>
    %316 = vector.shape_cast %311 : vector<8x128xbf16> to vector<1x8x128xbf16>
    tpu.vector_store %arg22[%313, %c0_81, %c0_82], %316 {strides = array<i32>} : memref<8x8x128xbf16, #tpu.memory_space<vmem>>, vector<1x8x128xbf16>,
    %317 = arith.addi %13, %c5_i32 : i32
    %318 = vector.broadcast %317 : i32 to vector<8x1xi32>
    %319 = arith.cmpi eq, %12, %318 : vector<8x1xi32>
    %320 = vector.shape_cast %319 : vector<8x1xi1> to vector<8x1xi1>
    %321 = vector.broadcast %320 : vector<8x1xi1> to vector<8x128xi1>
    %322 = arith.select %321, %310, %271 : vector<8x128xi1>, vector<8x128xf32>
    %c6_i32 = arith.constant 6 : i32
    %323 = arith.index_cast %c6_i32 : i32 to index
    %c0_83 = arith.constant 0 : index
    %c0_84 = arith.constant 0 : index
    %324 = vector.load %arg2[%323, %c0_83, %c0_84] : memref<8x8x128xbf16, #tpu.memory_space<vmem>>, vector<1x8x128xbf16>
    %325 = vector.shape_cast %324 : vector<1x8x128xbf16> to vector<8x128xbf16>
    %326 = arith.addi %13, %c6_i32 : i32
    %327 = arith.index_cast %326 : i32 to index
    %c0_85 = arith.constant 0 : index
    %c0_86 = arith.constant 0 : index
    %328 = vector.load %arg22[%327, %c0_85, %c0_86] : memref<8x8x128xbf16, #tpu.memory_space<vmem>>, vector<1x8x128xbf16>
    %329 = vector.shape_cast %328 : vector<1x8x128xbf16> to vector<8x128xbf16>
    %c0_i32_87 = arith.constant 0 : i32
    %330 = arith.cmpi eq, %arg0, %c0_i32_87 : i32
    %331 = arith.select %330, %325, %329 : vector<8x128xbf16>
    %332 = arith.truncf %310 : vector<8x128xf32> to vector<8x128xbf16>
    %333 = tpu.concatenate %331, %332 in 1 : vector<8x128xbf16>, vector<8x128xbf16> -> vector<8x256xbf16>
    %cst_88 = arith.constant dense<0.000000e+00> : vector<8x512xf32>
    %334 = tpu.matmul %333, %9, %cst_88 {dimension_numbers = #tpu.dot_dimension_numbers<[1], [0], [0], [1], [0, 0, 1, 1], [], []>} : vector<8x256xbf16>, vector<256x512xbf16>, vector<8x512xf32> -> vector<8x512xf32>
    %335 = vector.broadcast %11 : vector<1x512xf32> to vector<8x512xf32>
    %336 = arith.addf %334, %335 : vector<8x512xf32>
    %337 = vector.extract_strided_slice %336 {offsets = [0, 0], sizes = [8, 128], strides = [1, 1]} : vector<8x512xf32> to vector<8x128xf32>
    %338 = arith.negf %337 : vector<8x128xf32>
    %339 = math.exp %338 : vector<8x128xf32>
    %cst_89 = arith.constant 1.000000e+00 : f32
    %340 = vector.broadcast %cst_89 : f32 to vector<8x128xf32>
    %341 = arith.addf %340, %339 : vector<8x128xf32>
    %342 = arith.divf %340, %341 : vector<8x128xf32>
    %343 = vector.extract_strided_slice %336 {offsets = [0, 128], sizes = [8, 128], strides = [1, 1]} : vector<8x512xf32> to vector<8x128xf32>
    %344 = arith.negf %343 : vector<8x128xf32>
    %345 = math.exp %344 : vector<8x128xf32>
    %cst_90 = arith.constant 1.000000e+00 : f32
    %346 = vector.broadcast %cst_90 : f32 to vector<8x128xf32>
    %347 = arith.addf %346, %345 : vector<8x128xf32>
    %348 = arith.divf %346, %347 : vector<8x128xf32>
    %349 = vector.extract_strided_slice %336 {offsets = [0, 256], sizes = [8, 128], strides = [1, 1]} : vector<8x512xf32> to vector<8x128xf32>
    %350 = math.tanh %349 : vector<8x128xf32>
    %351 = vector.extract_strided_slice %336 {offsets = [0, 384], sizes = [8, 128], strides = [1, 1]} : vector<8x512xf32> to vector<8x128xf32>
    %352 = arith.negf %351 : vector<8x128xf32>
    %353 = math.exp %352 : vector<8x128xf32>
    %cst_91 = arith.constant 1.000000e+00 : f32
    %354 = vector.broadcast %cst_91 : f32 to vector<8x128xf32>
    %355 = arith.addf %354, %353 : vector<8x128xf32>
    %356 = arith.divf %354, %355 : vector<8x128xf32>
    %357 = arith.mulf %348, %308 : vector<8x128xf32>
    %358 = arith.mulf %342, %350 : vector<8x128xf32>
    %359 = arith.addf %357, %358 : vector<8x128xf32>
    %360 = math.tanh %359 : vector<8x128xf32>
    %361 = arith.mulf %356, %360 : vector<8x128xf32>
    %362 = arith.truncf %361 : vector<8x128xf32> to vector<8x128xbf16>
    %363 = arith.addi %13, %c6_i32 : i32
    %364 = arith.index_cast %363 : i32 to index
    %c0_92 = arith.constant 0 : index
    %c0_93 = arith.constant 0 : index
    %365 = vector.load %arg22[%364, %c0_92, %c0_93] : memref<8x8x128xbf16, #tpu.memory_space<vmem>>, vector<1x8x128xbf16>
    %366 = vector.shape_cast %365 : vector<1x8x128xbf16> to vector<8x128xbf16>
    %367 = vector.shape_cast %362 : vector<8x128xbf16> to vector<1x8x128xbf16>
    tpu.vector_store %arg22[%364, %c0_92, %c0_93], %367 {strides = array<i32>} : memref<8x8x128xbf16, #tpu.memory_space<vmem>>, vector<1x8x128xbf16>,
    %368 = arith.addi %13, %c6_i32 : i32
    %369 = vector.broadcast %368 : i32 to vector<8x1xi32>
    %370 = arith.cmpi eq, %12, %369 : vector<8x1xi32>
    %371 = vector.shape_cast %370 : vector<8x1xi1> to vector<8x1xi1>
    %372 = vector.broadcast %371 : vector<8x1xi1> to vector<8x128xi1>
    %373 = arith.select %372, %361, %322 : vector<8x128xi1>, vector<8x128xf32>
    %c7_i32 = arith.constant 7 : i32
    %374 = arith.index_cast %c7_i32 : i32 to index
    %c0_94 = arith.constant 0 : index
    %c0_95 = arith.constant 0 : index
    %375 = vector.load %arg2[%374, %c0_94, %c0_95] : memref<8x8x128xbf16, #tpu.memory_space<vmem>>, vector<1x8x128xbf16>
    %376 = vector.shape_cast %375 : vector<1x8x128xbf16> to vector<8x128xbf16>
    %377 = arith.addi %13, %c7_i32 : i32
    %378 = arith.index_cast %377 : i32 to index
    %c0_96 = arith.constant 0 : index
    %c0_97 = arith.constant 0 : index
    %379 = vector.load %arg22[%378, %c0_96, %c0_97] : memref<8x8x128xbf16, #tpu.memory_space<vmem>>, vector<1x8x128xbf16>
    %380 = vector.shape_cast %379 : vector<1x8x128xbf16> to vector<8x128xbf16>
    %c0_i32_98 = arith.constant 0 : i32
    %381 = arith.cmpi eq, %arg0, %c0_i32_98 : i32
    %382 = arith.select %381, %376, %380 : vector<8x128xbf16>
    %383 = arith.truncf %361 : vector<8x128xf32> to vector<8x128xbf16>
    %384 = tpu.concatenate %382, %383 in 1 : vector<8x128xbf16>, vector<8x128xbf16> -> vector<8x256xbf16>
    %cst_99 = arith.constant dense<0.000000e+00> : vector<8x512xf32>
    %385 = tpu.matmul %384, %9, %cst_99 {dimension_numbers = #tpu.dot_dimension_numbers<[1], [0], [0], [1], [0, 0, 1, 1], [], []>} : vector<8x256xbf16>, vector<256x512xbf16>, vector<8x512xf32> -> vector<8x512xf32>
    %386 = vector.broadcast %11 : vector<1x512xf32> to vector<8x512xf32>
    %387 = arith.addf %385, %386 : vector<8x512xf32>
    %388 = vector.extract_strided_slice %387 {offsets = [0, 0], sizes = [8, 128], strides = [1, 1]} : vector<8x512xf32> to vector<8x128xf32>
    %389 = arith.negf %388 : vector<8x128xf32>
    %390 = math.exp %389 : vector<8x128xf32>
    %cst_100 = arith.constant 1.000000e+00 : f32
    %391 = vector.broadcast %cst_100 : f32 to vector<8x128xf32>
    %392 = arith.addf %391, %390 : vector<8x128xf32>
    %393 = arith.divf %391, %392 : vector<8x128xf32>
    %394 = vector.extract_strided_slice %387 {offsets = [0, 128], sizes = [8, 128], strides = [1, 1]} : vector<8x512xf32> to vector<8x128xf32>
    %395 = arith.negf %394 : vector<8x128xf32>
    %396 = math.exp %395 : vector<8x128xf32>
    %cst_101 = arith.constant 1.000000e+00 : f32
    %397 = vector.broadcast %cst_101 : f32 to vector<8x128xf32>
    %398 = arith.addf %397, %396 : vector<8x128xf32>
    %399 = arith.divf %397, %398 : vector<8x128xf32>
    %400 = vector.extract_strided_slice %387 {offsets = [0, 256], sizes = [8, 128], strides = [1, 1]} : vector<8x512xf32> to vector<8x128xf32>
    %401 = math.tanh %400 : vector<8x128xf32>
    %402 = vector.extract_strided_slice %387 {offsets = [0, 384], sizes = [8, 128], strides = [1, 1]} : vector<8x512xf32> to vector<8x128xf32>
    %403 = arith.negf %402 : vector<8x128xf32>
    %404 = math.exp %403 : vector<8x128xf32>
    %cst_102 = arith.constant 1.000000e+00 : f32
    %405 = vector.broadcast %cst_102 : f32 to vector<8x128xf32>
    %406 = arith.addf %405, %404 : vector<8x128xf32>
    %407 = arith.divf %405, %406 : vector<8x128xf32>
    %408 = arith.mulf %399, %359 : vector<8x128xf32>
    %409 = arith.mulf %393, %401 : vector<8x128xf32>
    %410 = arith.addf %408, %409 : vector<8x128xf32>
    %411 = math.tanh %410 : vector<8x128xf32>
    %412 = arith.mulf %407, %411 : vector<8x128xf32>
    %413 = arith.truncf %412 : vector<8x128xf32> to vector<8x128xbf16>
    %414 = arith.addi %13, %c7_i32 : i32
    %415 = arith.index_cast %414 : i32 to index
    %c0_103 = arith.constant 0 : index
    %c0_104 = arith.constant 0 : index
    %416 = vector.load %arg22[%415, %c0_103, %c0_104] : memref<8x8x128xbf16, #tpu.memory_space<vmem>>, vector<1x8x128xbf16>
    %417 = vector.shape_cast %416 : vector<1x8x128xbf16> to vector<8x128xbf16>
    %418 = vector.shape_cast %413 : vector<8x128xbf16> to vector<1x8x128xbf16>
    tpu.vector_store %arg22[%415, %c0_103, %c0_104], %418 {strides = array<i32>} : memref<8x8x128xbf16, #tpu.memory_space<vmem>>, vector<1x8x128xbf16>,
    %419 = arith.addi %13, %c7_i32 : i32
    %420 = vector.broadcast %419 : i32 to vector<8x1xi32>
    %421 = arith.cmpi eq, %12, %420 : vector<8x1xi32>
    %422 = vector.shape_cast %421 : vector<8x1xi1> to vector<8x1xi1>
    %423 = vector.broadcast %422 : vector<8x1xi1> to vector<8x128xi1>
    %424 = arith.select %423, %412, %373 : vector<8x128xi1>, vector<8x128xf32>
    %c8_i32_105 = arith.constant 8 : i32
    %c0_106 = arith.constant 0 : index
    %c0_107 = arith.constant 0 : index
    %425 = vector.load %arg19[%c0_106, %c0_107] : memref<8x128xf32, #tpu.memory_space<vmem>>, vector<8x128xf32>
    tpu.vector_store %arg19[%c0_106, %c0_107], %412 {strides = array<i32>} : memref<8x128xf32, #tpu.memory_space<vmem>>, vector<8x128xf32>,
    %c0_108 = arith.constant 0 : index
    %c0_109 = arith.constant 0 : index
    %426 = vector.load %arg20[%c0_108, %c0_109] : memref<8x128xf32, #tpu.memory_space<vmem>>, vector<8x128xf32>
    tpu.vector_store %arg20[%c0_108, %c0_109], %410 {strides = array<i32>} : memref<8x128xf32, #tpu.memory_space<vmem>>, vector<8x128xf32>,
    %c0_110 = arith.constant 0 : index
    %c0_111 = arith.constant 0 : index
    %427 = vector.load %arg21[%c0_110, %c0_111] : memref<8x128xf32, #tpu.memory_space<vmem>>, vector<8x128xf32>
    tpu.vector_store %arg21[%c0_110, %c0_111], %424 {strides = array<i32>} : memref<8x128xf32, #tpu.memory_space<vmem>>, vector<8x128xf32>,
    %c1_i32_112 = arith.constant 1 : i32
    %428 = arith.cmpi eq, %arg0, %c1_i32_112 : i32
    %c0_i32_113 = arith.constant 0 : i32
    %429 = arith.cmpi eq, %arg1, %c0_i32_113 : i32
    %430 = arith.andi %428, %429 : i1
    %431 = arith.extui %430 : i1 to i32
    %c0_i32_114 = arith.constant 0 : i32
    %432 = arith.cmpi ne, %431, %c0_i32_114 : i32
    scf.if %432 {
      %433 = arith.truncf %424 : vector<8x128xf32> to vector<8x128xbf16>
      %c0_115 = arith.constant 0 : index
      %c0_116 = arith.constant 0 : index
      %434 = vector.load %arg9[%c0_115, %c0_116] : memref<128x128xbf16, #tpu.memory_space<vmem>>, vector<128x128xbf16>
      %cst_117 = arith.constant dense<0.000000e+00> : vector<8x128xf32>
      %435 = tpu.matmul %433, %434, %cst_117 {dimension_numbers = #tpu.dot_dimension_numbers<[1], [0], [0], [1], [0, 0, 1, 1], [], []>} : vector<8x128xbf16>, vector<128x128xbf16>, vector<8x128xf32> -> vector<8x128xf32>
      %c0_118 = arith.constant 0 : index
      %c0_119 = arith.constant 0 : index
      %436 = vector.load %arg10[%c0_118, %c0_119] : memref<1x128xf32, #tpu.memory_space<vmem>>, vector<1x128xf32>
      %437 = vector.broadcast %436 : vector<1x128xf32> to vector<8x128xf32>
      %438 = arith.addf %435, %437 : vector<8x128xf32>
      %cst_120 = arith.constant 0.000000e+00 : f32
      %439 = vector.broadcast %cst_120 : f32 to vector<8x128xf32>
      %440 = arith.maximumf %438, %439 : vector<8x128xf32>
      %441 = arith.truncf %440 : vector<8x128xf32> to vector<8x128xbf16>
      %c0_121 = arith.constant 0 : index
      %c0_122 = arith.constant 0 : index
      %442 = vector.load %arg11[%c0_121, %c0_122] : memref<128x128xbf16, #tpu.memory_space<vmem>>, vector<128x128xbf16>
      %cst_123 = arith.constant dense<0.000000e+00> : vector<8x128xf32>
      %443 = tpu.matmul %441, %442, %cst_123 {dimension_numbers = #tpu.dot_dimension_numbers<[1], [0], [0], [1], [0, 0, 1, 1], [], []>} : vector<8x128xbf16>, vector<128x128xbf16>, vector<8x128xf32> -> vector<8x128xf32>
      %c0_124 = arith.constant 0 : index
      %c0_125 = arith.constant 0 : index
      %444 = vector.load %arg12[%c0_124, %c0_125] : memref<1x128xf32, #tpu.memory_space<vmem>>, vector<1x128xf32>
      %445 = vector.broadcast %444 : vector<1x128xf32> to vector<8x128xf32>
      %446 = arith.addf %443, %445 : vector<8x128xf32>
      %447 = arith.truncf %446 : vector<8x128xf32> to vector<8x128xbf16>
      %c0_126 = arith.constant 0 : index
      %c0_127 = arith.constant 0 : index
      %448 = vector.load %arg13[%c0_126, %c0_127] : memref<128x128xbf16, #tpu.memory_space<vmem>>, vector<128x128xbf16>
      %cst_128 = arith.constant dense<0.000000e+00> : vector<8x128xf32>
      %449 = tpu.matmul %447, %448, %cst_128 {dimension_numbers = #tpu.dot_dimension_numbers<[1], [0], [0], [1], [0, 0, 1, 1], [], []>} : vector<8x128xbf16>, vector<128x128xbf16>, vector<8x128xf32> -> vector<8x128xf32>
      %c0_129 = arith.constant 0 : index
      %c0_130 = arith.constant 0 : index
      %450 = vector.load %arg4[%c0_129, %c0_130] : memref<8x128xf32, #tpu.memory_space<vmem>>, vector<8x128xf32>
      %451 = arith.truncf %450 : vector<8x128xf32> to vector<8x128xbf16>
      %c0_131 = arith.constant 0 : index
      %c0_132 = arith.constant 0 : index
      %452 = vector.load %arg14[%c0_131, %c0_132] : memref<128x128xbf16, #tpu.memory_space<vmem>>, vector<128x128xbf16>
      %cst_133 = arith.constant dense<0.000000e+00> : vector<8x128xf32>
      %453 = tpu.matmul %451, %452, %cst_133 {dimension_numbers = #tpu.dot_dimension_numbers<[1], [0], [0], [1], [0, 0, 1, 1], [], []>} : vector<8x128xbf16>, vector<128x128xbf16>, vector<8x128xf32> -> vector<8x128xf32>
      %454 = arith.addf %449, %453 : vector<8x128xf32>
      %c0_134 = arith.constant 0 : index
      %c0_135 = arith.constant 0 : index
      %455 = vector.load %arg15[%c0_134, %c0_135] : memref<1x128xf32, #tpu.memory_space<vmem>>, vector<1x128xf32>
      %456 = vector.broadcast %455 : vector<1x128xf32> to vector<8x128xf32>
      %457 = arith.addf %454, %456 : vector<8x128xf32>
      %cst_136 = arith.constant 0.000000e+00 : f32
      %458 = vector.broadcast %cst_136 : f32 to vector<8x128xf32>
      %459 = arith.maximumf %457, %458 : vector<8x128xf32>
      %460 = arith.truncf %459 : vector<8x128xf32> to vector<8x128xbf16>
      %c0_137 = arith.constant 0 : index
      %c0_138 = arith.constant 0 : index
      %461 = vector.load %arg16[%c0_137, %c0_138] : memref<128x128xbf16, #tpu.memory_space<vmem>>, vector<128x128xbf16>
      %cst_139 = arith.constant dense<0.000000e+00> : vector<8x128xf32>
      %462 = tpu.matmul %460, %461, %cst_139 {dimension_numbers = #tpu.dot_dimension_numbers<[1], [0], [0], [1], [0, 0, 1, 1], [], []>} : vector<8x128xbf16>, vector<128x128xbf16>, vector<8x128xf32> -> vector<8x128xf32>
      %c0_140 = arith.constant 0 : index
      %c0_141 = arith.constant 0 : index
      %463 = vector.load %arg17[%c0_140, %c0_141] : memref<1x128xf32, #tpu.memory_space<vmem>>, vector<1x128xf32>
      %464 = vector.broadcast %463 : vector<1x128xf32> to vector<8x128xf32>
      %465 = arith.addf %462, %464 : vector<8x128xf32>
      %466 = arith.negf %465 : vector<8x128xf32>
      %467 = math.exp %466 : vector<8x128xf32>
      %cst_142 = arith.constant 1.000000e+00 : f32
      %468 = vector.broadcast %cst_142 : f32 to vector<8x128xf32>
      %469 = arith.addf %468, %467 : vector<8x128xf32>
      %470 = arith.divf %468, %469 : vector<8x128xf32>
      %c0_143 = arith.constant 0 : index
      %c0_144 = arith.constant 0 : index
      %471 = vector.load %arg18[%c0_143, %c0_144] : memref<8x128xf32, #tpu.memory_space<vmem>>, vector<8x128xf32>
      tpu.vector_store %arg18[%c0_143, %c0_144], %470 {strides = array<i32>} : memref<8x128xf32, #tpu.memory_space<vmem>>, vector<8x128xf32>,
    } else {
    }
    return
  }
  func.func @transform_0(%arg0: i32, %arg1: i32) -> (i32, i32, i32) {
    %c0_i32 = arith.constant 0 : i32
    %c0_i32_0 = arith.constant 0 : i32
    %c0_i32_1 = arith.constant 0 : i32
    return %arg1, %c0_i32, %c0_i32_0 : i32, i32, i32
  }
  func.func @transform_1(%arg0: i32, %arg1: i32) -> (i32, i32) {
    %c0_i32 = arith.constant 0 : i32
    %c0_i32_0 = arith.constant 0 : i32
    %c0_i32_1 = arith.constant 0 : i32
    return %c0_i32, %c0_i32_0 : i32, i32
  }
  func.func @transform_2(%arg0: i32, %arg1: i32) -> (i32, i32) {
    %c0_i32 = arith.constant 0 : i32
    %c0_i32_0 = arith.constant 0 : i32
    %c0_i32_1 = arith.constant 0 : i32
    return %c0_i32, %c0_i32_0 : i32, i32
  }
  func.func @transform_3(%arg0: i32, %arg1: i32) -> (i32, i32, i32) {
    %c0_i32 = arith.constant 0 : i32
    %c0_i32_0 = arith.constant 0 : i32
    %c0_i32_1 = arith.constant 0 : i32
    return %arg0, %c0_i32, %c0_i32_0 : i32, i32, i32
  }
  func.func @transform_4(%arg0: i32, %arg1: i32) -> (i32, i32, i32) {
    %c0_i32 = arith.constant 0 : i32
    %c0_i32_0 = arith.constant 0 : i32
    %c0_i32_1 = arith.constant 0 : i32
    return %arg0, %c0_i32, %c0_i32_0 : i32, i32, i32
  }
  func.func @transform_5(%arg0: i32, %arg1: i32) -> (i32, i32, i32) {
    %c0_i32 = arith.constant 0 : i32
    %c0_i32_0 = arith.constant 0 : i32
    %c0_i32_1 = arith.constant 0 : i32
    return %arg0, %c0_i32, %c0_i32_0 : i32, i32, i32
  }
  func.func @transform_6(%arg0: i32, %arg1: i32) -> (i32, i32, i32) {
    %c0_i32 = arith.constant 0 : i32
    %c0_i32_0 = arith.constant 0 : i32
    %c0_i32_1 = arith.constant 0 : i32
    return %arg0, %c0_i32, %c0_i32_0 : i32, i32, i32
  }
  func.func @transform_7(%arg0: i32, %arg1: i32) -> (i32, i32) {
    %c0_i32 = arith.constant 0 : i32
    %c0_i32_0 = arith.constant 0 : i32
    %c0_i32_1 = arith.constant 0 : i32
    return %c0_i32, %c0_i32_0 : i32, i32
  }
  func.func @transform_8(%arg0: i32, %arg1: i32) -> (i32, i32) {
    %c0_i32 = arith.constant 0 : i32
    %c0_i32_0 = arith.constant 0 : i32
    %c0_i32_1 = arith.constant 0 : i32
    return %c0_i32, %c0_i32_0 : i32, i32
  }
  func.func @transform_9(%arg0: i32, %arg1: i32) -> (i32, i32) {
    %c0_i32 = arith.constant 0 : i32
    %c0_i32_0 = arith.constant 0 : i32
    %c0_i32_1 = arith.constant 0 : i32
    return %c0_i32, %c0_i32_0 : i32, i32
  }
  func.func @transform_10(%arg0: i32, %arg1: i32) -> (i32, i32) {
    %c0_i32 = arith.constant 0 : i32
    %c0_i32_0 = arith.constant 0 : i32
    %c0_i32_1 = arith.constant 0 : i32
    return %c0_i32, %c0_i32_0 : i32, i32
  }
  func.func @transform_11(%arg0: i32, %arg1: i32) -> (i32, i32) {
    %c0_i32 = arith.constant 0 : i32
    %c0_i32_0 = arith.constant 0 : i32
    %c0_i32_1 = arith.constant 0 : i32
    return %c0_i32, %c0_i32_0 : i32, i32
  }
  func.func @transform_12(%arg0: i32, %arg1: i32) -> (i32, i32) {
    %c0_i32 = arith.constant 0 : i32
    %c0_i32_0 = arith.constant 0 : i32
    %c0_i32_1 = arith.constant 0 : i32
    return %c0_i32, %c0_i32_0 : i32, i32
  }
  func.func @transform_13(%arg0: i32, %arg1: i32) -> (i32, i32) {
    %c0_i32 = arith.constant 0 : i32
    %c0_i32_0 = arith.constant 0 : i32
    %c0_i32_1 = arith.constant 0 : i32
    return %c0_i32, %c0_i32_0 : i32, i32
  }
  func.func @transform_14(%arg0: i32, %arg1: i32) -> (i32, i32) {
    %c0_i32 = arith.constant 0 : i32
    %c0_i32_0 = arith.constant 0 : i32
    %c0_i32_1 = arith.constant 0 : i32
    return %c0_i32, %c0_i32_0 : i32, i32
  }
  func.func @transform_15(%arg0: i32, %arg1: i32) -> (i32, i32) {
    %c0_i32 = arith.constant 0 : i32
    %c0_i32_0 = arith.constant 0 : i32
    %c0_i32_1 = arith.constant 0 : i32
    return %c0_i32, %c0_i32_0 : i32, i32
  }
  func.func @transform_16(%arg0: i32, %arg1: i32) -> (i32, i32) {
    %c0_i32 = arith.constant 0 : i32
    %c0_i32_0 = arith.constant 0 : i32
    %c0_i32_1 = arith.constant 0 : i32
    return %c0_i32, %c0_i32_0 : i32, i32
  }
}

</mosaic_0001>

<bundles_post_ra>
// kernel: _forward_impl.1
= control target key start
LH: loop header
LB: loop body
LE: loop exit
PB: predicated region body
PF: predicated region fallthrough
CT: control target
= control target key end

     0   :  { %s5361_s0 = inlined_call_operand.vmem [shape: bf16[8,8,128], index: 0, kind: input, shape index: {}]   ;;  %s5362_s1 = inlined_call_operand.vmem [shape: s32[8,1], index: 1, kind: input, shape index: {}]   ;;  %s5363_s2 = inlined_call_operand.vmem [shape: f32[8,128], index: 2, kind: input, shape index: {}]   ;;  %s5364_s3 = inlined_call_operand.vmem [shape: f32[2,8,128], index: 3, kind: input, shape index: {}]   ;;  %s5365_s4 = inlined_call_operand.vmem [shape: f32[2,8,128], index: 4, kind: input, shape index: {}]   ;;  %s5366_s5 = inlined_call_operand.hbm [shape: bf16[2,256,512], index: 5, kind: input, shape index: {}]   ;;  %s5367_s6 = inlined_call_operand.vmem [shape: f32[2,1,512], index: 6, kind: input, shape index: {}]   ;;  %s5368_s7 = inlined_call_operand.vmem [shape: bf16[128,128], index: 7, kind: input, shape index: {}]   ;;  %s5369_s8 = inlined_call_operand.vmem [shape: f32[1,128], index: 8, kind: input, shape index: {}]   ;;  %s5370_s9 = inlined_call_operand.vmem [shape: bf16[128,128], index: 9, kind: input, shape index: {}]   ;;  %s5371_s10 = inlined_call_operand.vmem [shape: f32[1,128], index: 10, kind: input, shape index: {}]   ;;  %s5372_s11 = inlined_call_operand.vmem [shape: bf16[128,128], index: 11, kind: input, shape index: {}]   ;;  %s5373_s12 = inlined_call_operand.vmem [shape: bf16[128,128], index: 12, kind: input, shape index: {}]   ;;  %s5374_s13 = inlined_call_operand.vmem [shape: f32[1,128], index: 13, kind: input, shape index: {}]   ;;  %s5375_s14 = inlined_call_operand.hbm [shape: bf16[128,128], index: 14, kind: input, shape index: {}]   ;;  %s5376_s15 = inlined_call_operand.vmem [shape: f32[1,128], index: 15, kind: input, shape index: {}]   ;;  %s5377_s16 = inlined_call_operand.vmem [shape: f32[8,128], index: 16, kind: output, shape index: {}]  }
   0x1   :  { %5464 = sst [smem:[#allocation49_spill]] %s5361_s0 }
   0x2   :  { %5465 = sst [smem:[#allocation50_spill]] %s5363_s2 }
   0x3   :  { %5466 = sst [smem:[#allocation51_spill]] %s5369_s8 }
   0x4   :  { %5467 = sst [smem:[#allocation52_spill]] %s5371_s10 }
   0x5   :  { %5468 = sst [smem:[#allocation53_spill]] %s5372_s11 }
   0x6   :  { %5469 = sst [smem:[#allocation54_spill]] %s5373_s12 }
   0x7   :  { %5470 = sst [smem:[#allocation55_spill]] %s5374_s13 }
   0x8   :  { %5471 = sst [smem:[#allocation56_spill]] %s5375_s14 }
   0x9   :  { %5472 = sst [smem:[#allocation57_spill]] %s5376_s15 }
   0xa   :  { %5473 = sst [smem:[#allocation58_spill]] %s5377_s16 }
   0xb   :  { %21 = vsyncpa [#allocation7], 0 }
   0xc   :  { %23 = vsyncpa [#allocation7 + $0x1], 0 }
   0xd   :  { %24 = vsyncpa [#allocation9], 0  ;;  %s4103_s21 = smov 0   ;;  %s4105_s22 = smov 0  }
   0xe   :  { %s4107_s23 = smov 0   ;;  %s4109_s24 = smov 0  }
   0xf   :  { %s4111_s25 = smov 0   ;;  %s4113_s26 = smov 0  }
  0x10 LB: > { %s3095_s27 = sadd.s32 4294967295, %s4009_s26   ;;  %p182_p0 = scmp.ne.s32.totalorder %s3993_s22, %s3989_s21  ;;  %s4009_s26 = sphi %s4113_s26, %s30_s26   ;;  %s4005_s25 = sphi %s4111_s25, %s5732_s25   ;;  %s4001_s24 = sphi %s4109_s24, %s5731_s24   ;;  %s3997_s23 = sphi %s4107_s23, %s5730_s23   ;;  %s3993_s22 = sphi %s4105_s22, %s5729_s22   ;;  %s3989_s21 = sphi %s4103_s21, %s5728_s21  }
  0x11   : > { %p4133_p1 = scmp.eq.s32.totalorder %s3095_s27, 0  ;;  %p3096_p2 = scmp.ge.s32.totalorder %s4009_s26, 1 }
  0x12   : > { %p429_p3 = scmp.lt.s32.totalorder %s4009_s26, 3  ;;  %s5476_s14 = sld [smem:[#allocation56_spill]] }
  0x13   : > { %p4141_p4 = por %p4133_p1, %p182_p0  ;;  %s4011_s19 = smov [#allocation8]  }
  0x14   : > { %p4148_p5 = pnand %p3096_p2, %p429_p3  ;;  %s478_s20 = sshll.u32 %s4011_s19, 4  ;;  %s479_s20 = int_to_ptr.vmem [resolvable:$true] %s478_s20 }
  0x15   : > { %s4012_s21 = smov 64   ;;  %s4013_s27 = smov 4  }
  0x16   : > { %p3688_p6 = pneg %p4148_p5  ;;  %s42_s30 = sadd.s32 1, %s4005_s25 }
  0x17   : > { %p44_p8 = scmp.ge.s32.totalorder %s42_s30, 2  ;;  %s169_s0 = sadd.s32 1, %s3997_s23 }
  0x18   : > { %s476_s17 = sshll.u32 %s5476_s14, 4  ;;  %p3689_p7 = pnand %p3688_p6, %p4133_p1  ;;  %s477_s17 = int_to_ptr.hbm [resolvable:$true] %s476_s17 }
  0x19   : > { %p176_p9 = scmp.ne.s32.totalorder %s3997_s23, %s3993_s22  ;;  %p177_p10 = scmp.eq.s32.totalorder %s4009_s26, 0 }
  0x1a   : > { %3691 = dma.hbm_to_vmem [thread:$0]  (!%p3689_p7), %s477_s17, 1024, %s479_s20, [#allocation9], %s4012_s21, %s4012_s21, %s4013_s27  }
  0x1b   : > { %s5734_s30 = smov (%p44_p8, %s42_s30), 0  ;;  %p4163_p11 = por %p177_p10, %p176_p9 }
  0x1c   : > { %5478 = sst [smem:[#allocation12_spill]] %s5734_s30  ;;  %p3697_p12 = scmp.lt.s32.totalorder %s4009_s26, 2 }
  0x1d   : > { %s166_s19 = ssub.s32 %s4005_s25, %s5734_s30  ;;  %s509_s16 = sand.u32 1, %s3997_s23  }
  0x1e   : > { %p167_p13 = scmp.eq.s32.totalorder %s166_s19, 0  ;;  %s3100_s15 = sshll.u32 %s509_s16, 9 }
  0x1f   : > { %s3575_s17 = sshll.u32 %s4005_s25, 9  ;;  %s513_s2 = scalar_lea.vmem [#allocation6], %s3100_s15 }
  0x20   : > { %s4173_s20 = scalar_select %p167_p13, %s3997_s23, %s169_s0  }
  0x21   : > { %s518_s13 = scalar_lea.hbm %s5366_s5, %s3575_s17  ;;  %s521_s8 = sshll.u32 %s513_s2, 4  ;;  %s522_s8 = int_to_ptr.vmem [resolvable:$true] %s521_s8 }
  0x22   : > { %s519_s10 = sshll.u32 %s518_s13, 4  ;;  %p3693_p0 = pnand %p3697_p12, %p4163_p11  ;;  %s520_s10 = int_to_ptr.hbm [resolvable:$true] %s519_s10 }
  0x23   : > { %s510_s11 = scalar_lea.sflag [#allocation7], %s509_s16  ;;  %s4014_s30 = smov 256  }
  0x24   : > { %s4015_s12 = smov 16   ;;  %540 = sbr.rel (%p4148_p5) target bundleno = 2127 (0x84f), region = 84 }
  0x25   : > { %3695 = dma.hbm_to_vmem [thread:$0]  (!%p3693_p0), %s520_s10, 8192, %s522_s8, %s510_s11, %s4014_s30, %s4014_s30, %s4015_s12  }
  0x29   : > { %s542_s0 = sand.u32 1, %s3993_s22  }
  0x2a   : > { %s3104_s19 = sshll.u32 %s542_s0, 9  ;;  %s543_s17 = scalar_lea.sflag [#allocation7], %s542_s0 }
  0x2b   : > { %s4185_s13 = scalar_lea.vmem [#allocation6], %s3104_s19 }
  0x2c   : > { %3980 = dma.done.wait (%p4141_p4), %s543_s17, 8192  }
  0x2d   : > { %3982 = vsyncadd (%p4141_p4), %s543_s17, 4294959104 }
  0x2e   : > { %3984 = dma.done.wait (%p4133_p1), [#allocation9], 1024  }
  0x2f   : > { %3986 = vsyncadd (%p4133_p1), [#allocation9], 4294966272  ;;  %p619_p2 = scmp.lt.s32.totalorder %s4001_s24, 1  ;;  %p639_p3 = scmp.eq.s32.totalorder %s4001_s24, 0 }
  0x30   : > { %v4016_v2 = vmov (%p639_p3), 0.0  }
  0x31   : > { %s620_s2 = scalar_select %p619_p2, %s4001_s24, 1  ;;  %644 = vst [vmem:[#allocation4] sm:$0xff] (%p639_p3), %v4016_v2 }
  0x33   : > { %s3106_s8 = sshll.u32 %s620_s2, 3  ;;  %s3108_s10 = sshll.u32 %s620_s2, 2 }
  0x34   : > { %s622_s14 = scalar_lea.vmem %s5364_s3, %s3106_s8  ;;  %s4204_s29 = scalar_lea.vmem %s5367_s6, %s3108_s10 }
  0x35   : > { %s626_s30 = scalar_lea.vmem %s5365_s4, %s3106_s8  ;;  %v635_v0 = vld [vmem:[%s622_s14] sm:$0xff]  ;;  %643 = sbr.rel (!%p639_p3) target bundleno = 58 (0x3a), region = 100 }
  0x36   : > { %v637_v1 = vld [vmem:[%s626_s30] sm:$0xff]  ;;  %636 = vst [vmem:[#allocation2] sm:$0xff] %v635_v0 }
  0x37   : > { %638 = vst [vmem:[#allocation3] sm:$0xff] %v637_v1 }
  0x3a PF: > { %v3224_v3 = vld [vmem:[%s4185_s13 + $0xe0] sm:$0xf]  ;;  %v3607_v4 = vld [vmem:[%s4185_s13 + $0xec] sm:$0xf0]  ;;  %v3605_v5 = vld [vmem:[%s4185_s13 + $0xe4] sm:$0xf] }
  0x3b   : > { %v4214_v6 = vor.u32 %v3607_v4, %v3224_v3  ;;  %v3226_v7 = vld [vmem:[%s4185_s13 + $0xf0] sm:$0xf0]  ;;  %v3637_v8 = vld [vmem:[%s4185_s13 + $0x1e4] sm:$0xf]  ;;  %v3352_v12 = vld [vmem:[%s4185_s13 + $0x1e0] sm:$0xf] }
  0x3c   : > { %v3354_v9 = vld [vmem:[%s4185_s13 + $0x1f0] sm:$0xf0]  ;;  %v4219_v10 = vor.u32 %v3605_v5, %v3226_v7  ;;  %v3639_v13 = vld [vmem:[%s4185_s13 + $0x1ec] sm:$0xf0]  ;;  %v3208_v14 = vld [vmem:[%s4185_s13 + $0xc0] sm:$0xf] }
  0x3d   : > { %5480 = vst [vmem:[#allocation13_spill] sm:$0xff] %v4214_v6  ;;  %v4221_v11 = vor.u32 %v3637_v8, %v3354_v9  ;;  %1053 = vmatpush.bf16.msra.mxu0 %v4214_v6  ;;  %v4227_v15 = vor.u32 %v3639_v13, %v3352_v12  ;;  %v3603_v16 = vld [vmem:[%s4185_s13 + $0xcc] sm:$0xf0]  ;;  %v3601_v17 = vld [vmem:[%s4185_s13 + $0xc4] sm:$0xf]  ;;  %s5489_s19 = sld [smem:[#allocation49_spill]] }
  0x3e   : > { %5481 = vst [vmem:[#allocation14_spill] sm:$0xff] %v4219_v10  ;;  %v3210_v18 = vld [vmem:[%s4185_s13 + $0xd0] sm:$0xf0]  ;;  %1079 = vmatpush.bf16.msra.mxu2 %v4219_v10  ;;  %v4234_v19 = vor.u32 %v3603_v16, %v3208_v14  ;;  %v3633_v21 = vld [vmem:[%s4185_s13 + $0x1c4] sm:$0xf]  ;;  %p2521_p1 = scmp.eq.s32.totalorder %s4001_s24, 1 }
  0x3f   : > { %1092 = vmatpush.bf16.msra.mxu3 %v4221_v11  ;;  %v4236_v20 = vor.u32 %v3601_v17, %v3210_v18  ;;  %v3338_v22 = vld [vmem:[%s4185_s13 + $0x1d0] sm:$0xf0]  ;;  %v3336_v23 = vld [vmem:[%s4185_s13 + $0x1c0] sm:$0xf]  ;;  %1066 = vmatpush.bf16.msra.mxu1 %v4227_v15  ;;  %v3635_v25 = vld [vmem:[%s4185_s13 + $0x1cc] sm:$0xf0] }
  0x40   : > { %v4242_v24 = vor.u32 %v3633_v21, %v3338_v22  ;;  %v3192_v26 = vld [vmem:[%s4185_s13 + $0xa0] sm:$0xf]  ;;  %v3599_v27 = vld [vmem:[%s4185_s13 + $0xac] sm:$0xf0]  ;;  %v4247_v28 = vor.u32 %v3635_v25, %v3336_v23  ;;  %v3597_v29 = vld [vmem:[%s4185_s13 + $0xa4] sm:$0xf] }
  0x41   : > { %5482 = vst [vmem:[#allocation15_spill] sm:$0xff] %v4236_v20  ;;  %v3194_v30 = vld [vmem:[%s4185_s13 + $0xb0] sm:$0xf0]  ;;  %v3629_v31 = vld [vmem:[%s4185_s13 + $0x1a4] sm:$0xf]  ;;  %1054 = vmatpush.bf16.msra.mxu0 %v4234_v19  ;;  %v4253_v32 = vor.u32 %v3599_v27, %v3192_v26  ;;  %s5719_s2 = sld [smem:[#allocation54_spill]] (%p2521_p1) }
  0x42   : > { %v3322_v33 = vld [vmem:[%s4185_s13 + $0x1b0] sm:$0xf0]  ;;  %v3320_v34 = vld [vmem:[%s4185_s13 + $0x1a0] sm:$0xf]  ;;  %v3631_v35 = vld [vmem:[%s4185_s13 + $0x1ac] sm:$0xf0]  ;;  %1080 = vmatpush.bf16.msra.mxu2 %v4236_v20  ;;  %v4260_v36 = vor.u32 %v3597_v29, %v3194_v30 }
  0x43   : > { %5483 = vst [vmem:[#allocation16_spill] sm:$0xff] %v4253_v32  ;;  %1093 = vmatpush.bf16.msra.mxu3 %v4242_v24  ;;  %v4262_v37 = vor.u32 %v3629_v31, %v3322_v33  ;;  %v3176_v38 = vld [vmem:[%s4185_s13 + $0x80] sm:$0xf]  ;;  %v3595_v39 = vld [vmem:[%s4185_s13 + $0x8c] sm:$0xf0]  ;;  %1067 = vmatpush.bf16.msra.mxu1 %v4247_v28  ;;  %v4268_v41 = vor.u32 %v3631_v35, %v3320_v34  ;;  %s5720_s10 = sld [smem:[#allocation53_spill]] (%p2521_p1) }
  0x44   : > { %v3593_v40 = vld [vmem:[%s4185_s13 + $0x84] sm:$0xf]  ;;  %v3178_v42 = vld [vmem:[%s4185_s13 + $0x90] sm:$0xf0]  ;;  %v3304_v45 = vld [vmem:[%s4185_s13 + $0x180] sm:$0xf]  ;;  %v4276_v47 = vor.u32 %v3595_v39, %v3176_v38 }
  0x45   : > { %v3625_v43 = vld [vmem:[%s4185_s13 + $0x184] sm:$0xf]  ;;  %v3306_v44 = vld [vmem:[%s4185_s13 + $0x190] sm:$0xf0]  ;;  %v3627_v46 = vld [vmem:[%s4185_s13 + $0x18c] sm:$0xf0]  ;;  %1055 = vmatpush.bf16.msra.mxu0 %v4253_v32  ;;  %v4280_v48 = vor.u32 %v3593_v40, %v3178_v42 }
  0x46   : > { %1081 = vmatpush.bf16.msra.mxu2 %v4260_v36  ;;  %v4282_v49 = vor.u32 %v3625_v43, %v3306_v44  ;;  %v3160_v50 = vld [vmem:[%s4185_s13 + $0x60] sm:$0xf]  ;;  %v3591_v51 = vld [vmem:[%s4185_s13 + $0x6c] sm:$0xf0]  ;;  %v3589_v52 = vld [vmem:[%s4185_s13 + $0x64] sm:$0xf]  ;;  %v4288_v53 = vor.u32 %v3627_v46, %v3304_v45 }
  0x47   : > { %1094 = vmatpush.bf16.msra.mxu3 %v4262_v37  ;;  %1068 = vmatpush.bf16.msra.mxu1 %v4268_v41  ;;  %v3162_v54 = vld [vmem:[%s4185_s13 + $0x70] sm:$0xf0]  ;;  %v3621_v55 = vld [vmem:[%s4185_s13 + $0x164] sm:$0xf]  ;;  %v3288_v57 = vld [vmem:[%s4185_s13 + $0x160] sm:$0xf]  ;;  %v4296_v59 = vor.u32 %v3591_v51, %v3160_v50 }
  0x48   : > { %v3290_v56 = vld [vmem:[%s4185_s13 + $0x170] sm:$0xf0]  ;;  %v3623_v58 = vld [vmem:[%s4185_s13 + $0x16c] sm:$0xf0]  ;;  %v4300_v60 = vor.u32 %v3589_v52, %v3162_v54  ;;  %v3144_v62 = vld [vmem:[%s4185_s13 + $0x40] sm:$0xf] }
  0x49   : > { %1056 = vmatpush.bf16.msra.mxu0 %v4276_v47  ;;  %v4302_v61 = vor.u32 %v3621_v55, %v3290_v56  ;;  %v3587_v63 = vld [vmem:[%s4185_s13 + $0x4c] sm:$0xf0]  ;;  %v3585_v0 = vld [vmem:[%s4185_s13 + $0x44] sm:$0xf]  ;;  %v4308_v1 = vor.u32 %v3623_v58, %v3288_v57  ;;  %v3146_v2 = vld [vmem:[%s4185_s13 + $0x50] sm:$0xf0] }
  0x4a   : > { %1082 = vmatpush.bf16.msra.mxu2 %v4280_v48  ;;  %v3617_v3 = vld [vmem:[%s4185_s13 + $0x144] sm:$0xf]  ;;  %v3274_v4 = vld [vmem:[%s4185_s13 + $0x150] sm:$0xf0]  ;;  %v3272_v5 = vld [vmem:[%s4185_s13 + $0x140] sm:$0xf]  ;;  %v4316_v8 = vor.u32 %v3587_v63, %v3144_v62  ;;  %v4320_v9 = vor.u32 %v3585_v0, %v3146_v2 }
  0x4b   : > { %1095 = vmatpush.bf16.msra.mxu3 %v4282_v49  ;;  %1069 = vmatpush.bf16.msra.mxu1 %v4288_v53  ;;  %v3619_v7 = vld [vmem:[%s4185_s13 + $0x14c] sm:$0xf0]  ;;  %v4322_v12 = vor.u32 %v3617_v3, %v3274_v4  ;;  %v3128_v13 = vld [vmem:[%s4185_s13 + $0x20] sm:$0xf]  ;;  %v3581_v16 = vld [vmem:[%s4185_s13 + $0x24] sm:$0xf] }
  0x4c   : > { %v3583_v14 = vld [vmem:[%s4185_s13 + $0x2c] sm:$0xf0]  ;;  %v4328_v17 = vor.u32 %v3619_v7, %v3272_v5  ;;  %v3130_v18 = vld [vmem:[%s4185_s13 + $0x30] sm:$0xf0]  ;;  %v3613_v21 = vld [vmem:[%s4185_s13 + $0x124] sm:$0xf] }
  0x4d   : > { %1057 = vmatpush.bf16.msra.mxu0 %v4296_v59  ;;  %5484 = vst [vmem:[#allocation17_spill] sm:$0xff] %v4322_v12  ;;  %v3258_v22 = vld [vmem:[%s4185_s13 + $0x130] sm:$0xf0]  ;;  %v3256_v23 = vld [vmem:[%s4185_s13 + $0x120] sm:$0xf]  ;;  %v4336_v26 = vor.u32 %v3583_v14, %v3128_v13  ;;  %v4343_v31 = vor.u32 %v3581_v16, %v3130_v18  ;;  %v5490_v3 = vmov 0 }
  0x4e   : > { %1083 = vmatpush.bf16.msra.mxu2 %v4300_v60  ;;  %5485 = vst [vmem:[#allocation18_spill] sm:$0xff] %v4328_v17  ;;  %v3615_v25 = vld [vmem:[%s4185_s13 + $0x12c] sm:$0xf0]  ;;  %v3112_v27 = vld [vmem:[%s4185_s13] sm:$0xf]  ;;  %v4345_v33 = vor.u32 %v3613_v21, %v3258_v22  ;;  %v712_v4 = vld [vmem:[#allocation2] sm:$0xff] }
  0x4f   : > { %1096 = vmatpush.bf16.msra.mxu3 %v4302_v61  ;;  %1070 = vmatpush.bf16.msra.mxu1 %v4308_v1  ;;  %v3579_v29 = vld [vmem:[%s4185_s13 + $0xc] sm:$0xf0]  ;;  %v3577_v30 = vld [vmem:[%s4185_s13 + $0x4] sm:$0xf]  ;;  %v3114_v34 = vld [vmem:[%s4185_s13 + $0x10] sm:$0xf0]  ;;  %v4352_v38 = vor.u32 %v3615_v25, %v3256_v23 }
  0x50   : > { %5486 = vst [vmem:[#allocation19_spill] sm:$0xff] %v4345_v33  ;;  %v3609_v35 = vld [vmem:[%s4185_s13 + $0x104] sm:$0xf]  ;;  %s719_s21 = scalar_select %p639_p3, 1, 0  ;;  %v4361_v50 = vor.u32 %v3579_v29, %v3112_v27  ;;  %v4368_v55 = vor.u32 %v3577_v30, %v3114_v34  ;;  %v4405_v27 = vpack.c.bf16 %v712_v4, %v712_v4 }
  0x51   : > { %1058 = vmatpush.bf16.msra.mxu0 %v4316_v8  ;;  %5487 = vst [vmem:[#allocation20_spill] sm:$0xff] %v4352_v38  ;;  %v3242_v39 = vld [vmem:[%s4185_s13 + $0x110] sm:$0xf0]  ;;  %v3232_v40 = vld [vmem:[%s4185_s13 + $0xe8] sm:$0xf]  ;;  %s5721_s24 = sld [smem:[#allocation51_spill]] (%p2521_p1) }
  0x52   : > { %1084 = vmatpush.bf16.msra.mxu2 %v4320_v9  ;;  %v3608_v42 = vld [vmem:[%s4185_s13 + $0xf4] sm:$0xf0]  ;;  %v3606_v43 = vld [vmem:[%s4185_s13 + $0xec] sm:$0xf]  ;;  %v3234_v44 = vld [vmem:[%s4185_s13 + $0xf8] sm:$0xf0]  ;;  %v720_v46 = vstv %s719_s21  ;;  %v4370_v56 = vor.u32 %v3609_v35, %v3242_v39 }
  0x53   : > { %1097 = vmatpush.bf16.msra.mxu3 %v4322_v12  ;;  %1071 = vmatpush.bf16.msra.mxu1 %v4328_v17  ;;  %v3638_v45 = vld [vmem:[%s4185_s13 + $0x1ec] sm:$0xf]  ;;  %v3362_v51 = vld [vmem:[%s4185_s13 + $0x1f8] sm:$0xf0]  ;;  %v3240_v52 = vld [vmem:[%s4185_s13 + $0x100] sm:$0xf]  ;;  %v4378_v63 = vor.u32 %v3608_v42, %v3232_v40  ;;  %v4380_v0 = vor.u32 %v3606_v43, %v3234_v44 }
  0x54   : > { %v3611_v54 = vld [vmem:[%s4185_s13 + $0x10c] sm:$0xf0]  ;;  %5488 = vst [vmem:[#allocation21_spill] sm:$0xff] %v4370_v56  ;;  %v715_v57 = vld [vmem:[%s5489_s19] sm:$0xf]  ;;  %vm4382_vm0 = vcmp.eq.s32.totalorder %v720_v46, 1  ;;  %v4387_v7 = vor.u32 %v3638_v45, %v3362_v51 }
  0x55   : > { %1059 = vmatpush.bf16.msra.mxu0 %v4336_v26  ;;  %v3360_v58 = vld [vmem:[%s4185_s13 + $0x1e8] sm:$0xf]  ;;  %v3640_v62 = vld [vmem:[%s4185_s13 + $0x1f4] sm:$0xf0]  ;;  %v718_v2 = vld [vmem:[#allocation5] sm:$0xf]  ;;  %v4389_v13 = vor.u32 %v3611_v54, %v3240_v52 }
  0x56   : > { %1085 = vmatpush.bf16.msra.mxu2 %v4343_v31  ;;  %v5491_v3 = vsel %vm4382_vm0, 4294967295, %v5490_v3  ;;  %v3216_v5 = vld [vmem:[%s4185_s13 + $0xc8] sm:$0xf]  ;;  %5493 = vst [vmem:[#allocation23_spill] sm:$0xff] %v4387_v7  ;;  %v3604_v14 = vld [vmem:[%s4185_s13 + $0xd4] sm:$0xf0]  ;;  %v4395_v21 = vor.u32 %v3640_v62, %v3360_v58  ;;  %v4403_v25 = vsel %vm4382_vm0, %v715_v57, %v718_v2 }
  0x57   : > { %1098 = vmatpush.bf16.msra.mxu3 %v4345_v33  ;;  %1072 = vmatpush.bf16.msra.mxu1 %v4352_v38  ;;  %5492 = vst [vmem:[#allocation22_spill] sm:$0xff] %v5491_v3  ;;  %v3602_v16 = vld [vmem:[%s4185_s13 + $0xcc] sm:$0xf]  ;;  %v3218_v18 = vld [vmem:[%s4185_s13 + $0xd8] sm:$0xf0]  ;;  %v4411_v34 = vor.u32 %v3604_v14, %v3216_v5  ;;  %s5722_s8 = sld [smem:[#allocation50_spill]] (%p2521_p1) }
  0x58   : > { %5494 = vst [vmem:[#allocation24_spill] sm:$0xff] %v4389_v13  ;;  %v3634_v22 = vld [vmem:[%s4185_s13 + $0x1cc] sm:$0xf]  ;;  %v3346_v23 = vld [vmem:[%s4185_s13 + $0x1d8] sm:$0xf0]  ;;  %v4413_v35 = vor.u32 %v3602_v16, %v3218_v18  ;;  %s5723_s16 = sld [smem:[#allocation52_spill]] (%p2521_p1) }
  0x59   : > { %1060 = vmatpush.bf16.msra.mxu0 %v4361_v50  ;;  %5495 = vst [vmem:[#allocation25_spill] sm:$0xff] %v4395_v21  ;;  %v3344_v29 = vld [vmem:[%s4185_s13 + $0x1c8] sm:$0xf]  ;;  %v3636_v30 = vld [vmem:[%s4185_s13 + $0x1d4] sm:$0xf0]  ;;  %v4418_v40 = vor.u32 %v3634_v22, %v3346_v23  ;;  %s5724_s18 = sld [smem:[#allocation55_spill]] (%p2521_p1) }
  0x5a   : > { %1086 = vmatpush.bf16.msra.mxu2 %v4368_v55  ;;  %v3200_v39 = vld [vmem:[%s4185_s13 + $0xa8] sm:$0xf]  ;;  %v3600_v42 = vld [vmem:[%s4185_s13 + $0xb4] sm:$0xf0]  ;;  %v3598_v43 = vld [vmem:[%s4185_s13 + $0xac] sm:$0xf]  ;;  %v4425_v45 = vor.u32 %v3636_v30, %v3344_v29 }
  0x5b   : > { %1099 = vmatpush.bf16.msra.mxu3 %v4370_v56  ;;  %1073 = vmatpush.bf16.msra.mxu1 %v4389_v13  ;;  %5496 = vst [vmem:[#allocation26_spill] sm:$0xff] %v4418_v40  ;;  %v3202_v44 = vld [vmem:[%s4185_s13 + $0xb8] sm:$0xf0]  ;;  %v3630_v46 = vld [vmem:[%s4185_s13 + $0x1ac] sm:$0xf]  ;;  %v4435_v57 = vor.u32 %v3600_v42, %v3200_v39  ;;  %s5725_s21 = sld [smem:[#allocation57_spill]] (%p2521_p1) }
  0x5c   : > { %5497 = vst [vmem:[#allocation27_spill] sm:$0xff] %v4425_v45  ;;  %v3330_v51 = vld [vmem:[%s4185_s13 + $0x1b8] sm:$0xf0]  ;;  %1061 = vmatmul.bf16.vlgmr.msra.gmra.mxu0 %v4403_v25  ;;  %v3328_v52 = vld [vmem:[%s4185_s13 + $0x1a8] sm:$0xf]  ;;  %v4437_v58 = vor.u32 %v3598_v43, %v3202_v44  ;;  %s5726_s17 = sld [smem:[#allocation58_spill]] (%p2521_p1) }
  0x5d   : > { %1105 = vmatpush.bf16.msrb.mxu0 %v4378_v63  ;;  %1087 = vmatmul.bf16.vlgmr.msra.gmra.mxu2 %v4403_v25  ;;  %v3632_v54 = vld [vmem:[%s4185_s13 + $0x1b4] sm:$0xf0]  ;;  %5498 = vst [vmem:[#allocation28_spill] sm:$0xff] %v4435_v57  ;;  %v3184_v62 = vld [vmem:[%s4185_s13 + $0x88] sm:$0xf]  ;;  %v4441_v2 = vor.u32 %v3630_v46, %v3330_v51 }
  0x5e   : > { %1131 = vmatpush.bf16.msrb.mxu2 %v4380_v0  ;;  %1100 = vmatmul.bf16.vlgmr.msra.gmra.mxu3 %v4405_v27  ;;  %v3596_v4 = vld [vmem:[%s4185_s13 + $0x94] sm:$0xf0]  ;;  %v3594_v5 = vld [vmem:[%s4185_s13 + $0x8c] sm:$0xf]  ;;  %v3186_v14 = vld [vmem:[%s4185_s13 + $0x98] sm:$0xf0]  ;;  %v4448_v16 = vor.u32 %v3632_v54, %v3328_v52 }
  0x5f   : > { %1144 = vmatpush.bf16.msrb.mxu3 %v4387_v7  ;;  %1118 = vmatpush.bf16.msrb.mxu1 %v4395_v21  ;;  %5499 = vst [vmem:[#allocation29_spill] sm:$0xff] %v4441_v2  ;;  %v3626_v18 = vld [vmem:[%s4185_s13 + $0x18c] sm:$0xf]  ;;  %v3314_v22 = vld [vmem:[%s4185_s13 + $0x198] sm:$0xf0]  ;;  %v4456_v30 = vor.u32 %v3596_v4, %v3184_v62  ;;  %v4458_v39 = vor.u32 %v3594_v5, %v3186_v14 }
  0x60   : > { %1074 = vmatmul.bf16.vlgmr.msra.gmra.mxu1 %v4405_v27  ;;  %5500 = vst [vmem:[#allocation30_spill] sm:$0xff] %v4448_v16  ;;  %v3312_v23 = vld [vmem:[%s4185_s13 + $0x188] sm:$0xf]  ;;  %v3628_v29 = vld [vmem:[%s4185_s13 + $0x194] sm:$0xf0]  ;;  %v4462_v43 = vor.u32 %v3626_v18, %v3314_v22 }
  0x61   : > { %1106 = vmatpush.bf16.msrb.mxu0 %v4411_v34  ;;  %5501 = vst [vmem:[#allocation31_spill] sm:$0xff] %v4456_v30  ;;  %v3168_v42 = vld [vmem:[%s4185_s13 + $0x68] sm:$0xf]  ;;  %v3592_v44 = vld [vmem:[%s4185_s13 + $0x74] sm:$0xf0]  ;;  %v4468_v52 = vor.u32 %v3628_v29, %v3312_v23 }
  0x62   : > { %1132 = vmatpush.bf16.msrb.mxu2 %v4413_v35  ;;  %5502 = vst [vmem:[#allocation32_spill] sm:$0xff] %v4458_v39  ;;  %v3590_v46 = vld [vmem:[%s4185_s13 + $0x6c] sm:$0xf]  ;;  %v3170_v51 = vld [vmem:[%s4185_s13 + $0x78] sm:$0xf0]  ;;  %v4481_v18 = vor.u32 %v3592_v44, %v3168_v42 }
  0x63   : > { %1145 = vmatpush.bf16.msrb.mxu3 %v4418_v40  ;;  %1119 = vmatpush.bf16.msrb.mxu1 %v4425_v45  ;;  %5503 = vst [vmem:[#allocation33_spill] sm:$0xff] %v4462_v43  ;;  %v3622_v54 = vld [vmem:[%s4185_s13 + $0x16c] sm:$0xf]  ;;  %v3298_v62 = vld [vmem:[%s4185_s13 + $0x178] sm:$0xf0]  ;;  %v4483_v22 = vor.u32 %v3590_v46, %v3170_v51 }
  0x64   : > { %5504 = vst [vmem:[#allocation34_spill] sm:$0xff] %v4468_v52  ;;  %v3296_v4 = vld [vmem:[%s4185_s13 + $0x168] sm:$0xf]  ;;  %v3624_v5 = vld [vmem:[%s4185_s13 + $0x174] sm:$0xf0]  ;;  %v4489_v3 = vor.u32 %v3622_v54, %v3298_v62 }
  0x65   : > { %1107 = vmatpush.bf16.msrb.mxu0 %v4435_v57  ;;  %v4477_v14 = vld [vmem:[%s5362_s1] sm:$0xff]  ;;  %5506 = vst [vmem:[#allocation36_spill] sm:$0xff] %v4481_v18  ;;  %v3588_v29 = vld [vmem:[%s4185_s13 + $0x54] sm:$0xf0]  ;;  %v4496_v44 = vor.u32 %v3624_v5, %v3296_v4  ;;  %v3282_v51 = vld [vmem:[%s4185_s13 + $0x158] sm:$0xf0] }
  0x66   : > { %1133 = vmatpush.bf16.msrb.mxu2 %v4437_v58  ;;  %5505 = vst [vmem:[#allocation35_spill] sm:$0xff] %v4477_v14  ;;  %v3152_v23 = vld [vmem:[%s4185_s13 + $0x48] sm:$0xf]  ;;  %vm1223_vm1 = vcmp.eq.s32.totalorder %v4477_v14, 0  ;;  %v3618_v46 = vld [vmem:[%s4185_s13 + $0x14c] sm:$0xf] }
  0x67   : > { %1146 = vmatpush.bf16.msrb.mxu3 %v4441_v2  ;;  %1120 = vmatpush.bf16.msrb.mxu1 %v4448_v16  ;;  %5507 = vst [vmem:[#allocation37_spill] sm:$0xff] %v4483_v22  ;;  %v3586_v2 = vld [vmem:[%s4185_s13 + $0x4c] sm:$0xf]  ;;  %v5396_v16 = vmov 0   ;;  %v3280_v54 = vld [vmem:[%s4185_s13 + $0x148] sm:$0xf]  ;;  %v4506_v4 = vor.u32 %v3588_v29, %v3152_v23 }
  0x68   : > { %5508 = vst [vmem:[#allocation38_spill] sm:$0xff] %v4489_v3  ;;  %3754 = vset.pattern.permute.xlu0 %v5396_v16  ;;  %v1224_v42 = vsel %vm1223_vm1, 1, %v5396_v16  ;;  %v3620_v62 = vld [vmem:[%s4185_s13 + $0x154] sm:$0xf0]  ;;  %3755 = vset.pattern.permute.xlu1 %v5396_v16  ;;  %v3136_v14 = vld [vmem:[%s4185_s13 + $0x28] sm:$0xf] }
  0x69   : > { %1108 = vmatpush.bf16.msrb.mxu0 %v4456_v30  ;;  %v3154_v30 = vld [vmem:[%s4185_s13 + $0x58] sm:$0xf0]  ;;  %5509 = vst [vmem:[#allocation39_spill] sm:$0xff] %v4496_v44  ;;  %1226 = vperm.xlu0 %3754, %v1224_v42   ;;  %v4512_v42 = vor.u32 %v3618_v46, %v3282_v51  ;;  %v3614_v23 = vld [vmem:[%s4185_s13 + $0x12c] sm:$0xf] }
  0x6a   : > { %1134 = vmatpush.bf16.msrb.mxu2 %v4458_v39  ;;  %3756 = vset.pattern.permute.xlu2 %v5396_v16  ;;  %5510 = vst [vmem:[#allocation40_spill] sm:$0xff] %v4506_v4  ;;  %v4508_v5 = vor.u32 %v3586_v2, %v3154_v30  ;;  %v3138_v16 = vld [vmem:[%s4185_s13 + $0x38] sm:$0xf0]  ;;  %v3264_v30 = vld [vmem:[%s4185_s13 + $0x128] sm:$0xf] }
  0x6b   : > { %1147 = vmatpush.bf16.msrb.mxu3 %v4462_v43  ;;  %1121 = vmatpush.bf16.msrb.mxu1 %v4468_v52  ;;  %5512 = vst [vmem:[#allocation42_spill] sm:$0xff] %v4512_v42  ;;  %v3584_v43 = vld [vmem:[%s4185_s13 + $0x34] sm:$0xf0]  ;;  %v3582_v52 = vld [vmem:[%s4185_s13 + $0x2c] sm:$0xf] }
  0x6c   : > { %5511 = vst [vmem:[#allocation41_spill] sm:$0xff] %v4508_v5  ;;  %v3266_v2 = vld [vmem:[%s4185_s13 + $0x138] sm:$0xf0]  ;;  %v3616_v29 = vld [vmem:[%s4185_s13 + $0x134] sm:$0xf0]  ;;  %v4526_v46 = vor.u32 %v3584_v43, %v3136_v14  ;;  %v4528_v51 = vor.u32 %v3582_v52, %v3138_v16 }
  0x6d   : > { %1109 = vmatpush.bf16.msrb.mxu0 %v4481_v18  ;;  %v4518_v18 = vor.u32 %v3620_v62, %v3280_v54  ;;  %v4532_v54 = vor.u32 %v3614_v23, %v3266_v2  ;;  %v3580_v62 = vld [vmem:[%s4185_s13 + $0x14] sm:$0xf0]  ;;  %v4538_v39 = vor.u32 %v3616_v29, %v3264_v30  ;;  %v3610_v57 = vld [vmem:[%s4185_s13 + $0x10c] sm:$0xf]  ;;  %v3248_v40 = vld [vmem:[%s4185_s13 + $0x108] sm:$0xf] }
  0x6e   : > { %1135 = vmatpush.bf16.msrb.mxu2 %v4483_v22  ;;  %v3122_v22 = vld [vmem:[%s4185_s13 + $0x18] sm:$0xf0] }
  0x6f   : > { %1148 = vmatpush.bf16.msrb.mxu3 %v4489_v3  ;;  %1122 = vmatpush.bf16.msrb.mxu1 %v4496_v44  ;;  %5513 = vst [vmem:[#allocation43_spill] sm:$0xff] %v4518_v18  ;;  %v3120_v3 = vld [vmem:[%s4185_s13 + $0x8] sm:$0xf]  ;;  %v3578_v44 = vld [vmem:[%s4185_s13 + $0xc] sm:$0xf]  ;;  %v5528_v23 = vld [vmem:[#allocation36_spill] sm:$0xff] }
  0x70   : > { %5514 = vst [vmem:[#allocation44_spill] sm:$0xff] %v4532_v54  ;;  %v4546_v16 = vor.u32 %v3580_v62, %v3120_v3  ;;  %v4548_v43 = vor.u32 %v3578_v44, %v3122_v22  ;;  %v5519_v3 = vld [vmem:[#allocation26_spill] sm:$0xff]  ;;  %v5524_v22 = vld [vmem:[#allocation31_spill] sm:$0xff] }
  0x71   : > { %1110 = vmatpush.bf16.msrb.mxu0 %v4506_v4  ;;  %5515 = vst [vmem:[#allocation45_spill] sm:$0xff] %v4538_v39  ;;  %v3250_v4 = vld [vmem:[%s4185_s13 + $0x118] sm:$0xf0]  ;;  %v5525_v44 = vld [vmem:[#allocation34_spill] sm:$0xff]  ;;  %v5529_v2 = vld [vmem:[#allocation39_spill] sm:$0xff] }
  0x72   : > { %1136 = vmatpush.bf16.msrb.mxu2 %v4508_v5  ;;  %v3612_v5 = vld [vmem:[%s4185_s13 + $0x114] sm:$0xf0]  ;;  %5516 = vst [vmem:[#allocation46_spill] sm:$0xff] %v4546_v16  ;;  %v4551_v52 = vor.u32 %v3610_v57, %v3250_v4  ;;  %v5523_v57 = vld [vmem:[#allocation29_spill] sm:$0xff]  ;;  %v5531_v29 = vld [vmem:[#allocation38_spill] sm:$0xff] }
  0x73   : > { %1149 = vmatpush.bf16.msrb.mxu3 %v4512_v42  ;;  %1123 = vmatpush.bf16.msrb.mxu1 %v4518_v18  ;;  %v4554_v14 = vor.u32 %v3612_v5, %v3248_v40  ;;  %v5522_v40 = vld [vmem:[#allocation32_spill] sm:$0xff]  ;;  %v5526_v4 = vld [vmem:[#allocation37_spill] sm:$0xff] }
  0x74   : > { %5517 = vst [vmem:[#allocation47_spill] sm:$0xff] %v4551_v52  ;;  %v5527_v5 = vld [vmem:[#allocation33_spill] sm:$0xff]  ;;  %v5532_v62 = vld [vmem:[#allocation40_spill] sm:$0xff] }
  0x75   : > { %1111 = vmatpush.bf16.msrb.mxu0 %v4526_v46  ;;  %5518 = vst [vmem:[#allocation48_spill] sm:$0xff] %v4554_v14  ;;  %v5530_v30 = vld [vmem:[#allocation41_spill] sm:$0xff] }
  0x76   : > { %1137 = vmatpush.bf16.msrb.mxu2 %v4528_v51 }
  0x77   : > { %1150 = vmatpush.bf16.msrb.mxu3 %v4532_v54  ;;  %1124 = vmatpush.bf16.msrb.mxu1 %v4538_v39 }
  0x79   : > { %1112 = vmatpush.bf16.msrb.mxu0 %v4546_v16 }
  0x7a   : > { %1138 = vmatpush.bf16.msrb.mxu2 %v4548_v43 }
  0x7b   : > { %1151 = vmatpush.bf16.msrb.mxu3 %v4551_v52  ;;  %1125 = vmatpush.bf16.msrb.mxu1 %v4554_v14 }
  0x7c   : > { %1113 = vmatmul.bf16.vlgmr.msrb.gmra.mxu0 %v4403_v25 }
  0x7d   : > { %1237 = vmatpush.bf16.msra.mxu0 %v4214_v6  ;;  %1139 = vmatmul.bf16.vlgmr.msrb.gmra.mxu2 %v4403_v25  ;;  %v5520_v25 = vld [vmem:[#allocation28_spill] sm:$0xff] }
  0x7e   : > { %1263 = vmatpush.bf16.msra.mxu2 %v4219_v10  ;;  %1152 = vmatmul.bf16.vlgmr.msrb.gmra.mxu3 %v4405_v27 }
  0x7f   : > { %1250 = vmatpush.bf16.msra.mxu1 %v4227_v15  ;;  %1276 = vmatpush.bf16.msra.mxu3 %v4221_v11 }
  0x80   : > { %1126 = vmatmul.bf16.vlgmr.msrb.gmra.mxu1 %v4405_v27  ;;  %v5521_v27 = vld [vmem:[#allocation30_spill] sm:$0xff] }
  0x81   : > { %1238 = vmatpush.bf16.msra.mxu0 %v4234_v19 }
  0x82   : > { %1264 = vmatpush.bf16.msra.mxu2 %v4236_v20 }
  0x83   : > { %1251 = vmatpush.bf16.msra.mxu1 %v4247_v28  ;;  %1277 = vmatpush.bf16.msra.mxu3 %v4242_v24 }
  0x85   : > { %1239 = vmatpush.bf16.msra.mxu0 %v4253_v32 }
  0x86   : > { %1265 = vmatpush.bf16.msra.mxu2 %v4260_v36 }
  0x87   : > { %1252 = vmatpush.bf16.msra.mxu1 %v4268_v41  ;;  %1278 = vmatpush.bf16.msra.mxu3 %v4262_v37 }
  0x89   : > { %1240 = vmatpush.bf16.msra.mxu0 %v4276_v47 }
  0x8a   : > { %1266 = vmatpush.bf16.msra.mxu2 %v4280_v48 }
  0x8b   : > { %1253 = vmatpush.bf16.msra.mxu1 %v4288_v53  ;;  %1279 = vmatpush.bf16.msra.mxu3 %v4282_v49 }
  0x8d   : > { %1241 = vmatpush.bf16.msra.mxu0 %v4296_v59 }
  0x8e   : > { %1267 = vmatpush.bf16.msra.mxu2 %v4300_v60 }
  0x8f   : > { %1254 = vmatpush.bf16.msra.mxu1 %v4308_v1  ;;  %1280 = vmatpush.bf16.msra.mxu3 %v4302_v61 }
  0x91   : > { %1242 = vmatpush.bf16.msra.mxu0 %v4316_v8 }
  0x92   : > { %1268 = vmatpush.bf16.msra.mxu2 %v4320_v9 }
  0x93   : > { %1255 = vmatpush.bf16.msra.mxu1 %v4328_v17  ;;  %1281 = vmatpush.bf16.msra.mxu3 %v4322_v12 }
  0x95   : > { %1243 = vmatpush.bf16.msra.mxu0 %v4336_v26 }
  0x96   : > { %1269 = vmatpush.bf16.msra.mxu2 %v4343_v31 }
  0x97   : > { %1256 = vmatpush.bf16.msra.mxu1 %v4352_v38  ;;  %1282 = vmatpush.bf16.msra.mxu3 %v4345_v33 }
  0x99   : > { %1244 = vmatpush.bf16.msra.mxu0 %v4361_v50 }
  0x9a   : > { %1270 = vmatpush.bf16.msra.mxu2 %v4368_v55 }
  0x9b   : > { %1257 = vmatpush.bf16.msra.mxu1 %v4389_v13  ;;  %1283 = vmatpush.bf16.msra.mxu3 %v4370_v56 }
  0x9d   : > { %1289 = vmatpush.bf16.msrb.mxu0 %v4378_v63 }
  0x9e   : > { %1315 = vmatpush.bf16.msrb.mxu2 %v4380_v0 }
  0x9f   : > { %1302 = vmatpush.bf16.msrb.mxu1 %v4395_v21  ;;  %1328 = vmatpush.bf16.msrb.mxu3 %v4387_v7 }
  0xa1   : > { %1290 = vmatpush.bf16.msrb.mxu0 %v4411_v34 }
  0xa2   : > { %1316 = vmatpush.bf16.msrb.mxu2 %v4413_v35 }
  0xa3   : > { %1303 = vmatpush.bf16.msrb.mxu1 %v4425_v45  ;;  %1329 = vmatpush.bf16.msrb.mxu3 %v5519_v3 }
  0xa5   : > { %1291 = vmatpush.bf16.msrb.mxu0 %v5520_v25 }
  0xa6   : > { %1317 = vmatpush.bf16.msrb.mxu2 %v4437_v58 }
  0xa7   : > { %1304 = vmatpush.bf16.msrb.mxu1 %v5521_v27  ;;  %1330 = vmatpush.bf16.msrb.mxu3 %v5523_v57 }
  0xa9   : > { %1292 = vmatpush.bf16.msrb.mxu0 %v5524_v22 }
  0xaa   : > { %1318 = vmatpush.bf16.msrb.mxu2 %v5522_v40 }
  0xab   : > { %1305 = vmatpush.bf16.msrb.mxu1 %v5525_v44  ;;  %1331 = vmatpush.bf16.msrb.mxu3 %v5527_v5 }
  0xad   : > { %1293 = vmatpush.bf16.msrb.mxu0 %v5528_v23 }
  0xae   : > { %1319 = vmatpush.bf16.msrb.mxu2 %v5526_v4 }
  0xaf   : > { %1306 = vmatpush.bf16.msrb.mxu1 %v5529_v2  ;;  %1332 = vmatpush.bf16.msrb.mxu3 %v5531_v29  ;;  %v709_v29 = vld [vmem:[%s4204_s29] sm:$0xf] }
  0xb0   : > { %v4632_v5 = vperm.slane %v709_v29, 1 }
  0xb1   : > { %1294 = vmatpush.bf16.msrb.mxu0 %v5532_v62 }
  0xb2   : > { %1320 = vmatpush.bf16.msrb.mxu2 %v5530_v30  ;;  %5534 = vst [vmem:[#allocation32_spill] sm:$0xff] %v4632_v5 }
  0xb3   : > { %1307 = vmatpush.bf16.msrb.mxu1 %v4518_v18  ;;  %1333 = vmatpush.bf16.msrb.mxu3 %v4512_v42  ;;  %v4629_v18 = vperm.slane %v709_v29, 0 }
  0xb5   : > { %1295 = vmatpush.bf16.msrb.mxu0 %v4526_v46  ;;  %5533 = vst [vmem:[#allocation28_spill] sm:$0xff] %v4629_v18 }
  0xb6   : > { %1321 = vmatpush.bf16.msrb.mxu2 %v4528_v51 }
  0xb7   : > { %1308 = vmatpush.bf16.msrb.mxu1 %v4538_v39  ;;  %1334 = vmatpush.bf16.msrb.mxu3 %v4532_v54 }
  0xb9   : > { %1296 = vmatpush.bf16.msrb.mxu0 %v4546_v16 }
  0xba   : > { %1322 = vmatpush.bf16.msrb.mxu2 %v4548_v43 }
  0xbb   : > { %1309 = vmatpush.bf16.msrb.mxu1 %v4554_v14  ;;  %1335 = vmatpush.bf16.msrb.mxu3 %v4551_v52 }
  0xd9   : > { %v1062_v2 = vpop.f32.mrf.mxu0 }
  0xda   : > { %v1063_v42 = vadd.f32 %v1062_v2, %v4629_v18 }
  0xdd   : > { %v1075_v44 = vpop.f32.mrf.mxu1 }
  0xde   : > { %v1076_v39 = vadd.f32 %v1075_v44, %v1063_v42  ;;  %v3369_v42 = vld [vmem:[%s5489_s19 + $0x4] sm:$0xf] }
  0xe0   : > { %v1088_v57 = vpop.f32.mrf.mxu2  ;;  %v3366_v27 = vmul.f32 -1.442695, %v1076_v39 }
  0xe1   : > { %v1089_v54 = vadd.f32 %v1088_v57, %v4632_v5  ;;  %v1101_v3 = vpop.f32.mrf.mxu3  ;;  %v1064_v14 = vpop.f32.mrf.mxu0 }
  0xe2   : > { %3757 = vpow2.f32 %v3366_v27  ;;  %v4650_v14 = vperm.slane %v709_v29, 2 }
  0xe3   : > { %v1102_v45 = vadd.f32 %v1101_v3, %v1089_v54  ;;  %v3370_v54 = vld [vmem:[#allocation5 + $0x4] sm:$0xf]  ;;  %v4652_v3 = vperm.slane %v709_v29, 3 }
  0xe5   : > { %v3367_v7 = vmul.f32 -1.442695, %v1102_v45  ;;  %v1077_v52 = vpop.f32.mrf.mxu1  ;;  %5536 = vst [vmem:[#allocation31_spill] sm:$0xff] %v4652_v3 }
  0xe7   : > { %3759 = vpow2.f32 %v3367_v7  ;;  %v1236_v7 = vsel %vm4382_vm0, %v3369_v42, %v3370_v54 }
  0xe8   : > { %v1090_v21 = vpop.f32.mrf.mxu2  ;;  %v3758_v56 = vpop.eup %3757  ;;  %1271 = vmatmul.bf16.vlgmr.msra.gmra.mxu2 %v1236_v7  ;;  %1245 = vmatmul.bf16.vlgmr.msra.gmra.mxu0 %v1236_v7 }
  0xe9   : > { %v1103_v13 = vpop.f32.mrf.mxu3  ;;  %v1160_v33 = vadd.f32 1.0, %v3758_v56  ;;  %1447 = vmatpush.bf16.msra.mxu2 %v4219_v10  ;;  %1421 = vmatpush.bf16.msra.mxu0 %v4214_v6 }
  0xeb   : > { %3761 = vrcp.f32 %v1160_v33  ;;  %vm1166_vm2 = vweird.f32 %v1160_v33 }
  0xed   : > { %v3760_v2 = vpop.eup %3759  ;;  %1448 = vmatpush.bf16.msra.mxu2 %v4236_v20  ;;  %1422 = vmatpush.bf16.msra.mxu0 %v4234_v19 }
  0xee   : > { %v4635_v18 = vadd.f32 1.0, %v3760_v2 }
  0xf0   : > { %3763 = vrcp.f32 %v4635_v18  ;;  %vm1185_vm4 = vweird.f32 %v4635_v18 }
  0xf1   : > { %v4638_v39 = vpop.eup %3761  ;;  %1449 = vmatpush.bf16.msra.mxu2 %v4260_v36  ;;  %1423 = vmatpush.bf16.msra.mxu0 %v4253_v32 }
  0xf2   : > { %v1162_v56 = vmul.f32 %v4638_v39, %v1160_v33  ;;  %vm1167_vm3 = vweird.f32 %v4638_v39 }
  0xf3   : > { %vm4671_vm6 = vmor %vm1166_vm2, %vm1167_vm3 }
  0xf4   : > { %v1163_v57 = vsub.f32 1.0, %v1162_v56 }
  0xf5   : > { %1450 = vmatpush.bf16.msra.mxu2 %v4280_v48  ;;  %1424 = vmatpush.bf16.msra.mxu0 %v4276_v47 }
  0xf6   : > { %v4645_v21 = vpop.eup %3763  ;;  %v1164_v29 = vmul.f32 %v4638_v39, %v1163_v57  ;;  %v1189_v57 = vand.u32 2147483647, %v4635_v18 }
  0xf7   : > { %v1181_v27 = vmul.f32 %v4645_v21, %v4635_v18  ;;  %vm1186_vm5 = vweird.f32 %v4645_v21 }
  0xf8   : > { %vm4677_vm7 = vmor %vm1185_vm4, %vm1186_vm5  ;;  %1323 = vmatmul.bf16.vlgmr.msrb.gmra.mxu2 %v1236_v7  ;;  %1297 = vmatmul.bf16.vlgmr.msrb.gmra.mxu0 %v1236_v7  ;;  %vm1190_vm9 = vcmp.eq.f32.partialorder %v1189_v57, 8.507059e+37 }
  0xf9   : > { %v1114_v45 = vpop.f32.mrf.mxu0  ;;  %v1182_v10 = vsub.f32 1.0, %v1181_v27  ;;  %1451 = vmatpush.bf16.msra.mxu2 %v4300_v60  ;;  %1425 = vmatpush.bf16.msra.mxu0 %v4296_v59 }
  0xfa   : > { %v1115_v2 = vadd.f32 %v1114_v45, %v4650_v14  ;;  %v1172_v45 = vand.u32 2147483648, %v1160_v33 }
  0xfb   : > { %v1183_v20 = vmul.f32 %v4645_v21, %v1182_v10 }
  0xfd   : > { %v1127_v13 = vpop.f32.mrf.mxu1  ;;  %1452 = vmatpush.bf16.msra.mxu2 %v4320_v9  ;;  %1426 = vmatpush.bf16.msra.mxu0 %v4316_v8 }
  0xfe   : > { %v1128_v56 = vadd.f32 %v1127_v13, %v1115_v2  ;;  %v1184_v13 = vadd.f32 %v4645_v21, %v1183_v20 }
 0x100   : > { %v1140_v44 = vpop.f32.mrf.mxu2 }
 0x101   : > { %v1141_v42 = vadd.f32 %v1140_v44, %v4652_v3  ;;  %v1153_v54 = vpop.f32.mrf.mxu3  ;;  %v1116_v6 = vpop.f32.mrf.mxu0  ;;  %1453 = vmatpush.bf16.msra.mxu2 %v4343_v31  ;;  %1427 = vmatpush.bf16.msra.mxu0 %v4336_v26 }
 0x102   : > { %v1165_v6 = vadd.f32 %v4638_v39, %v1164_v29 }
 0x103   : > { %v1154_v52 = vadd.f32 %v1153_v54, %v1141_v42 }
 0x104   : > { %v1169_v2 = vsel %vm4671_vm6, %v4638_v39, %v1165_v6  ;;  %v713_v39 = vld [vmem:[#allocation3] sm:$0xff] }
 0x105   : > { %v1129_v5 = vpop.f32.mrf.mxu1  ;;  %v3368_v38 = vmul.f32 -1.442695, %v1154_v52  ;;  %v1191_v52 = vand.u32 2147483648, %v4635_v18  ;;  %v1188_v18 = vsel %vm4677_vm7, %v4645_v21, %v1184_v13  ;;  %1454 = vmatpush.bf16.msra.mxu2 %v4368_v55  ;;  %1428 = vmatpush.bf16.msra.mxu0 %v4361_v50 }
 0x106   : > { %v1170_v5 = vand.u32 2147483647, %v1160_v33  ;;  %v1173_v33 = vor.u32 1.1754944e-38, %v1172_v45 }
 0x107   : > { %3765 = vpow2.f32 %v3368_v38  ;;  %v1192_v20 = vor.u32 1.1754944e-38, %v1191_v52  ;;  %v5542_v52 = vmov 0  }
 0x108   : > { %v1142_v27 = vpop.f32.mrf.mxu2  ;;  %3767 = vtanh.f32 %v1128_v56  ;;  %vm1171_vm8 = vcmp.eq.f32.partialorder %v1170_v5, 8.507059e+37  ;;  %v5541_v5 = vld [vmem:[#allocation35_spill] sm:$0xff] }
 0x109   : > { %v1155_v38 = vpop.f32.mrf.mxu3  ;;  %v1174_v56 = vsel %vm1171_vm8, %v1173_v33, %v1169_v2  ;;  %v1193_v7 = vsel %vm1190_vm9, %v1192_v20, %v1188_v18  ;;  %vm1407_vm10 = vcmp.eq.s32.totalorder %v5541_v5, 1  ;;  %1499 = vmatpush.bf16.msrb.mxu2 %v4380_v0  ;;  %1473 = vmatpush.bf16.msrb.mxu0 %v4378_v63  ;;  %vm1591_vm8 = vcmp.eq.s32.totalorder %v5541_v5, 2 }
 0x10a   : > { %v1215_v6 = vmul.f32 %v1193_v7, %v713_v39  ;;  %v1408_v10 = vsel %vm1407_vm10, 1, %v5542_v52  ;;  %v5544_v7 = vld [vmem:[#allocation19_spill] sm:$0xff] }
 0x10b   : > { %1410 = vperm.xlu0 %3754, %v1408_v10   ;;  %v5548_v10 = vld [vmem:[#allocation23_spill] sm:$0xff] }
 0x10d   : > { %v3766_v42 = vpop.eup %3765  ;;  %1500 = vmatpush.bf16.msrb.mxu2 %v4413_v35  ;;  %1474 = vmatpush.bf16.msrb.mxu0 %v4411_v34 }
 0x10e   : > { %v1199_v54 = vadd.f32 1.0, %v3766_v42  ;;  %v3768_v29 = vpop.eup %3767 }
 0x10f   : > { %v1216_v45 = vmul.f32 %v3768_v29, %v1174_v56 }
 0x110   : > { %3769 = vrcp.f32 %v1199_v54  ;;  %v1211_v57 = vand.u32 2147483648, %v1199_v54  ;;  %v1209_v33 = vand.u32 2147483647, %v1199_v54  ;;  %vm1205_vm12 = vweird.f32 %v1199_v54 }
 0x111   : > { %v4694_v27 = vadd.f32 %v1216_v45, %v1215_v6  ;;  %1501 = vmatpush.bf16.msrb.mxu2 %v4437_v58  ;;  %1475 = vmatpush.bf16.msrb.mxu0 %v5520_v25  ;;  %v5545_v45 = vld [vmem:[#allocation24_spill] sm:$0xff]  ;;  %v5546_v6 = vld [vmem:[#allocation21_spill] sm:$0xff] }
 0x112   : > { %v1212_v42 = vor.u32 1.1754944e-38, %v1211_v57  ;;  %vm1210_vm14 = vcmp.eq.f32.partialorder %v1209_v33, 8.507059e+37  ;;  %v5551_v57 = vld [vmem:[#allocation30_spill] sm:$0xff] }
 0x113   : > { %3771 = vtanh.f32 %v4694_v27  ;;  %v5553_v33 = vld [vmem:[#allocation34_spill] sm:$0xff] }
 0x115   : > { %1502 = vmatpush.bf16.msrb.mxu2 %v5522_v40  ;;  %1476 = vmatpush.bf16.msrb.mxu0 %v5524_v22 }
 0x116   : > { %v3770_v21 = vpop.eup %3769 }
 0x117   : > { %v1201_v38 = vmul.f32 %v3770_v21, %v1199_v54  ;;  %vm1206_vm11 = vweird.f32 %v3770_v21  ;;  %v5543_v54 = vld [vmem:[#allocation20_spill] sm:$0xff] }
 0x118   : > { %vm1207_vm13 = vmor %vm1205_vm12, %vm1206_vm11 }
 0x119   : > { %v1202_v13 = vsub.f32 1.0, %v1201_v38  ;;  %v3772_v18 = vpop.eup %3771  ;;  %1503 = vmatpush.bf16.msrb.mxu2 %v5526_v4  ;;  %1477 = vmatpush.bf16.msrb.mxu0 %v5528_v23  ;;  %v5549_v38 = vld [vmem:[#allocation27_spill] sm:$0xff] }
 0x11b   : > { %v1203_v44 = vmul.f32 %v3770_v21, %v1202_v13  ;;  %v5550_v13 = vld [vmem:[#allocation26_spill] sm:$0xff] }
 0x11d   : > { %v1204_v2 = vadd.f32 %v3770_v21, %v1203_v44  ;;  %1504 = vmatpush.bf16.msrb.mxu2 %v5530_v30  ;;  %1478 = vmatpush.bf16.msrb.mxu0 %v5532_v62  ;;  %v5552_v44 = vld [vmem:[#allocation29_spill] sm:$0xff] }
 0x11f   : > { %v1208_v20 = vsel %vm1207_vm13, %v3770_v21, %v1204_v2  ;;  %v5547_v21 = vld [vmem:[#allocation25_spill] sm:$0xff] }
 0x120   : > { %v1213_v29 = vsel %vm1210_vm14, %v1212_v42, %v1208_v20  ;;  %v5554_v2 = vld [vmem:[#allocation33_spill] sm:$0xff]  ;;  %v5555_v42 = vld [vmem:[#allocation39_spill] sm:$0xff]  ;;  %v5556_v20 = vld [vmem:[#allocation38_spill] sm:$0xff] }
 0x121   : > { %v4704_v56 = vmul.f32 %v3772_v18, %v1213_v29  ;;  %1505 = vmatpush.bf16.msrb.mxu2 %v4528_v51  ;;  %1479 = vmatpush.bf16.msrb.mxu0 %v4526_v46  ;;  %v5557_v18 = vld [vmem:[#allocation43_spill] sm:$0xff]  ;;  %v5558_v29 = vld [vmem:[#allocation42_spill] sm:$0xff] }
 0x123   : > { %v1220_v39 = vpack.c.bf16 %v4704_v56, %v4704_v56 }
 0x125   : > { %1221 = vst [vmem:[#allocation5] sm:$0xf] %v1220_v39  ;;  %1258 = vmatmul.bf16.vlgmr.msra.gmra.mxu1 %v1220_v39  ;;  %1284 = vmatmul.bf16.vlgmr.msra.gmra.mxu3 %v1220_v39 }
 0x126   : > { %1434 = vmatpush.bf16.msra.mxu1 %v4227_v15  ;;  %1460 = vmatpush.bf16.msra.mxu3 %v4221_v11 }
 0x127   : > { %1506 = vmatpush.bf16.msrb.mxu2 %v4548_v43  ;;  %1480 = vmatpush.bf16.msrb.mxu0 %v4546_v16 }
 0x12a   : > { %1435 = vmatpush.bf16.msra.mxu1 %v4247_v28  ;;  %1461 = vmatpush.bf16.msra.mxu3 %v4242_v24 }
 0x12e   : > { %1436 = vmatpush.bf16.msra.mxu1 %v4268_v41  ;;  %1462 = vmatpush.bf16.msra.mxu3 %v4262_v37 }
 0x132   : > { %1437 = vmatpush.bf16.msra.mxu1 %v4288_v53  ;;  %1463 = vmatpush.bf16.msra.mxu3 %v4282_v49 }
 0x135   : > { %1310 = vmatmul.bf16.vlgmr.msrb.gmra.mxu1 %v1220_v39  ;;  %1336 = vmatmul.bf16.vlgmr.msrb.gmra.mxu3 %v1220_v39  ;;  %v5559_v39 = vld [vmem:[#allocation45_spill] sm:$0xff] }
 0x136   : > { %1438 = vmatpush.bf16.msra.mxu1 %v4308_v1  ;;  %1464 = vmatpush.bf16.msra.mxu3 %v4302_v61 }
 0x13a   : > { %1439 = vmatpush.bf16.msra.mxu1 %v4328_v17  ;;  %1465 = vmatpush.bf16.msra.mxu3 %v4322_v12 }
 0x13e   : > { %1440 = vmatpush.bf16.msra.mxu1 %v5543_v54  ;;  %1466 = vmatpush.bf16.msra.mxu3 %v5544_v7  ;;  %v5564_v54 = vld [vmem:[#allocation32_spill] sm:$0xff] }
 0x142   : > { %1441 = vmatpush.bf16.msra.mxu1 %v5545_v45  ;;  %1467 = vmatpush.bf16.msra.mxu3 %v5546_v6  ;;  %v5563_v45 = vld [vmem:[#allocation28_spill] sm:$0xff] }
 0x146   : > { %1486 = vmatpush.bf16.msrb.mxu1 %v5547_v21  ;;  %1512 = vmatpush.bf16.msrb.mxu3 %v5548_v10 }
 0x14a   : > { %1487 = vmatpush.bf16.msrb.mxu1 %v5549_v38  ;;  %1513 = vmatpush.bf16.msrb.mxu3 %v5550_v13  ;;  %v5560_v38 = vld [vmem:[#allocation44_spill] sm:$0xff] }
 0x14b   : > { %v5561_v13 = vld [vmem:[#allocation48_spill] sm:$0xff] }
 0x14e   : > { %1488 = vmatpush.bf16.msrb.mxu1 %v5551_v57  ;;  %1514 = vmatpush.bf16.msrb.mxu3 %v5552_v44  ;;  %v5562_v57 = vld [vmem:[#allocation47_spill] sm:$0xff] }
 0x152   : > { %1489 = vmatpush.bf16.msrb.mxu1 %v5553_v33  ;;  %1515 = vmatpush.bf16.msrb.mxu3 %v5554_v2 }
 0x156   : > { %1490 = vmatpush.bf16.msrb.mxu1 %v5555_v42  ;;  %1516 = vmatpush.bf16.msrb.mxu3 %v5556_v20 }
 0x15a   : > { %1491 = vmatpush.bf16.msrb.mxu1 %v5557_v18  ;;  %1517 = vmatpush.bf16.msrb.mxu3 %v5558_v29 }
 0x15e   : > { %1492 = vmatpush.bf16.msrb.mxu1 %v5559_v39  ;;  %1518 = vmatpush.bf16.msrb.mxu3 %v5560_v38 }
 0x162   : > { %1493 = vmatpush.bf16.msrb.mxu1 %v5561_v13  ;;  %1519 = vmatpush.bf16.msrb.mxu3 %v5562_v57 }
 0x165   : > { %v1246_v44 = vpop.f32.mrf.mxu0 }
 0x166   : > { %v1247_v18 = vadd.f32 %v1246_v44, %v5563_v45 }
 0x16b   : > { %v1272_v33 = vpop.f32.mrf.mxu2 }
 0x16c   : > { %v1273_v39 = vadd.f32 %v1272_v33, %v5564_v54 }
 0x16d   : > { %v1248_v10 = vpop.f32.mrf.mxu0 }
 0x173   : > { %v1274_v2 = vpop.f32.mrf.mxu2 }
 0x174   : > { %v3376_v2 = vld [vmem:[#allocation5 + $0x8] sm:$0xf] }
 0x175   : > { %v1298_v42 = vpop.f32.mrf.mxu0 }
 0x17b   : > { %v1324_v21 = vpop.f32.mrf.mxu2 }
 0x17d   : > { %v1300_v20 = vpop.f32.mrf.mxu0 }
 0x17e   : > { %v1299_v20 = vadd.f32 %v1298_v42, %v4650_v14 }
 0x183   : > { %v1326_v6 = vpop.f32.mrf.mxu2 }
 0x184   : > { %v3375_v6 = vld [vmem:[%s5489_s19 + $0x8] sm:$0xf] }
 0x1a2   : > { %v1259_v7 = vpop.f32.mrf.mxu1 }
 0x1a3   : > { %v1260_v29 = vadd.f32 %v1259_v7, %v1247_v18  ;;  %v1420_v7 = vsel %vm4382_vm0, %v3375_v6, %v3376_v2 }
 0x1a4   : > { %1455 = vmatmul.bf16.vlgmr.msra.gmra.mxu2 %v1420_v7  ;;  %1429 = vmatmul.bf16.vlgmr.msra.gmra.mxu0 %v1420_v7 }
 0x1a5   : > { %v3371_v12 = vmul.f32 -1.442695, %v1260_v29  ;;  %v5568_v29 = vld [vmem:[#allocation15_spill] sm:$0xff] }
 0x1a7   : > { %3773 = vpow2.f32 %v3371_v12 }
 0x1a8   : > { %v1285_v38 = vpop.f32.mrf.mxu3 }
 0x1a9   : > { %v1286_v13 = vadd.f32 %v1285_v38, %v1273_v39  ;;  %v5566_v38 = vld [vmem:[#allocation14_spill] sm:$0xff] }
 0x1aa   : > { %v1261_v17 = vpop.f32.mrf.mxu1  ;;  %1631 = vmatpush.bf16.msra.mxu2 %v5566_v38 }
 0x1ab   : > { %v3372_v57 = vmul.f32 -1.442695, %v1286_v13  ;;  %v5567_v17 = vld [vmem:[#allocation13_spill] sm:$0xff] }
 0x1ac   : > { %1605 = vmatpush.bf16.msra.mxu0 %v5567_v17 }
 0x1ad   : > { %v3774_v16 = vpop.eup %3773  ;;  %3775 = vpow2.f32 %v3372_v57 }
 0x1ae   : > { %v1344_v10 = vadd.f32 1.0, %v3774_v16  ;;  %v1325_v16 = vadd.f32 %v1324_v21, %v4652_v3  ;;  %1632 = vmatpush.bf16.msra.mxu2 %v5568_v29 }
 0x1b0   : > { %3777 = vrcp.f32 %v1344_v10  ;;  %v1287_v44 = vpop.f32.mrf.mxu3  ;;  %1606 = vmatpush.bf16.msra.mxu0 %v4234_v19  ;;  %vm1350_vm2 = vweird.f32 %v1344_v10 }
 0x1b2   : > { %v1311_v33 = vpop.f32.mrf.mxu1  ;;  %1633 = vmatpush.bf16.msra.mxu2 %v4260_v36 }
 0x1b3   : > { %v3776_v12 = vpop.eup %3775  ;;  %v1312_v38 = vadd.f32 %v1311_v33, %v1299_v20 }
 0x1b4   : > { %v1363_v13 = vadd.f32 1.0, %v3776_v12  ;;  %1607 = vmatpush.bf16.msra.mxu0 %v4253_v32  ;;  %v1354_v32 = vand.u32 2147483647, %v1344_v10  ;;  %1507 = vmatmul.bf16.vlgmr.msrb.gmra.mxu2 %v1420_v7 }
 0x1b5   : > { %1481 = vmatmul.bf16.vlgmr.msrb.gmra.mxu0 %v1420_v7 }
 0x1b6   : > { %v3778_v57 = vpop.eup %3777  ;;  %3779 = vrcp.f32 %v1363_v13  ;;  %1634 = vmatpush.bf16.msra.mxu2 %v4280_v48  ;;  %vm1369_vm3 = vweird.f32 %v1363_v13  ;;  %vm1355_vm7 = vcmp.eq.f32.partialorder %v1354_v32, 8.507059e+37 }
 0x1b7   : > { %v1346_v18 = vmul.f32 %v3778_v57, %v1344_v10  ;;  %vm1351_vm15 = vweird.f32 %v3778_v57 }
 0x1b8   : > { %v1337_v39 = vpop.f32.mrf.mxu3  ;;  %1608 = vmatpush.bf16.msra.mxu0 %v4276_v47  ;;  %vm4769_vm4 = vmor %vm1350_vm2, %vm1351_vm15 }
 0x1b9   : > { %v1347_v6 = vsub.f32 1.0, %v1346_v18  ;;  %v1338_v2 = vadd.f32 %v1337_v39, %v1325_v16  ;;  %v1375_v18 = vand.u32 2147483648, %v1363_v13 }
 0x1ba   : > { %v1313_v44 = vpop.f32.mrf.mxu1  ;;  %1635 = vmatpush.bf16.msra.mxu2 %v4300_v60 }
 0x1bb   : > { %v3373_v54 = vmul.f32 -1.442695, %v1338_v2  ;;  %v1348_v21 = vmul.f32 %v3778_v57, %v1347_v6  ;;  %v1356_v2 = vand.u32 2147483648, %v1344_v10  ;;  %v1373_v44 = vand.u32 2147483647, %v1363_v13 }
 0x1bc   : > { %v3780_v12 = vpop.eup %3779  ;;  %1609 = vmatpush.bf16.msra.mxu0 %v4296_v59  ;;  %v1376_v20 = vor.u32 1.1754944e-38, %v1375_v18  ;;  %v1227_v18 = vpop.permute.xlu0 %1226 }
 0x1bd   : > { %v1365_v3 = vmul.f32 %v3780_v12, %v1363_v13  ;;  %3781 = vpow2.f32 %v3373_v54  ;;  %v1349_v16 = vadd.f32 %v3778_v57, %v1348_v21  ;;  %vm1370_vm1 = vweird.f32 %v3780_v12 }
 0x1be   : > { %3783 = vtanh.f32 %v1312_v38  ;;  %vm1371_vm5 = vmor %vm1369_vm3, %vm1370_vm1  ;;  %vm1374_vm6 = vcmp.eq.f32.partialorder %v1373_v44, 8.507059e+37  ;;  %1636 = vmatpush.bf16.msra.mxu2 %v4320_v9  ;;  %vm1228_vm12 = vcmp.eq.s32.totalorder %v1227_v18, 1  ;;  %v5574_v18 = vld [vmem:[#allocation20_spill] sm:$0xff] }
 0x1bf   : > { %v1366_v17 = vsub.f32 1.0, %v1365_v3  ;;  %v1353_v33 = vsel %vm4769_vm4, %v3778_v57, %v1349_v16 }
 0x1c0   : > { %v1339_v39 = vpop.f32.mrf.mxu3  ;;  %1610 = vmatpush.bf16.msra.mxu0 %v4316_v8 }
 0x1c1   : > { %v1367_v42 = vmul.f32 %v3780_v12, %v1366_v17  ;;  %v1357_v17 = vor.u32 1.1754944e-38, %v1356_v2 }
 0x1c2   : > { %1637 = vmatpush.bf16.msra.mxu2 %v4343_v31 }
 0x1c3   : > { %v3782_v6 = vpop.eup %3781  ;;  %v1368_v54 = vadd.f32 %v3780_v12, %v1367_v42  ;;  %v1358_v21 = vsel %vm1355_vm7, %v1357_v17, %v1353_v33 }
 0x1c4   : > { %v1383_v10 = vadd.f32 1.0, %v3782_v6  ;;  %v3784_v39 = vpop.eup %3783  ;;  %1611 = vmatpush.bf16.msra.mxu0 %v4336_v26  ;;  %v1411_v6 = vpop.permute.xlu0 %1410 }
 0x1c5   : > { %v1372_v7 = vsel %vm1371_vm5, %v3780_v12, %v1368_v54  ;;  %v1400_v42 = vmul.f32 %v3784_v39, %v1358_v21  ;;  %v1592_v12 = vsel %vm1591_vm8, 1, %v5542_v52  ;;  %vm1412_vm14 = vcmp.eq.s32.totalorder %v1411_v6, 1  ;;  %v5572_v39 = vld [vmem:[#allocation18_spill] sm:$0xff] }
 0x1c6   : > { %v1377_v13 = vsel %vm1374_vm6, %v1376_v20, %v1372_v7  ;;  %3785 = vrcp.f32 %v1383_v10  ;;  %1594 = vperm.xlu1 %3755, %v1592_v12   ;;  %1638 = vmatpush.bf16.msra.mxu2 %v4368_v55  ;;  %v1393_v44 = vand.u32 2147483647, %v1383_v10  ;;  %vm1389_vm10 = vweird.f32 %v1383_v10  ;;  %v714_v20 = vld [vmem:[#allocation4] sm:$0xff]  ;;  %v5582_v6 = vld [vmem:[#allocation30_spill] sm:$0xff] }
 0x1c7   : > { %v1399_v38 = vmul.f32 %v1377_v13, %v4694_v27  ;;  %v1395_v27 = vand.u32 2147483648, %v1383_v10  ;;  %v1229_v21 = vsel %vm1228_vm12, %v4704_v56, %v714_v20  ;;  %v5571_v56 = vld [vmem:[#allocation46_spill] sm:$0xff]  ;;  %v5576_v12 = vld [vmem:[#allocation24_spill] sm:$0xff]  ;;  %v5585_v20 = vld [vmem:[#allocation33_spill] sm:$0xff] }
 0x1c8   : > { %1612 = vmatpush.bf16.msra.mxu0 %v4361_v50  ;;  %vm1394_vm13 = vcmp.eq.f32.partialorder %v1393_v44, 8.507059e+37  ;;  %v5581_v44 = vld [vmem:[#allocation26_spill] sm:$0xff] }
 0x1c9   : > { %v4783_v32 = vadd.f32 %v1400_v42, %v1399_v38  ;;  %v1396_v54 = vor.u32 1.1754944e-38, %v1395_v27  ;;  %v5573_v42 = vld [vmem:[#allocation17_spill] sm:$0xff]  ;;  %v5579_v27 = vld [vmem:[#allocation23_spill] sm:$0xff] }
 0x1ca   : > { %1683 = vmatpush.bf16.msrb.mxu2 %v4380_v0 }
 0x1cb   : > { %3787 = vtanh.f32 %v4783_v32 }
 0x1cc   : > { %v3786_v57 = vpop.eup %3785  ;;  %1657 = vmatpush.bf16.msrb.mxu0 %v4378_v63 }
 0x1cd   : > { %v1385_v16 = vmul.f32 %v3786_v57, %v1383_v10  ;;  %vm1390_vm9 = vweird.f32 %v3786_v57 }
 0x1ce   : > { %vm1391_vm11 = vmor %vm1389_vm10, %vm1390_vm9  ;;  %1684 = vmatpush.bf16.msrb.mxu2 %v4413_v35 }
 0x1cf   : > { %v1386_v2 = vsub.f32 1.0, %v1385_v16  ;;  %v5577_v16 = vld [vmem:[#allocation21_spill] sm:$0xff] }
 0x1d0   : > { %1658 = vmatpush.bf16.msrb.mxu0 %v4411_v34 }
 0x1d1   : > { %v1387_v5 = vmul.f32 %v3786_v57, %v1386_v2  ;;  %v3788_v17 = vpop.eup %3787  ;;  %v5578_v2 = vld [vmem:[#allocation25_spill] sm:$0xff] }
 0x1d2   : > { %1685 = vmatpush.bf16.msrb.mxu2 %v4437_v58 }
 0x1d3   : > { %v1388_v3 = vadd.f32 %v3786_v57, %v1387_v5  ;;  %v5580_v5 = vld [vmem:[#allocation27_spill] sm:$0xff] }
 0x1d4   : > { %1659 = vmatpush.bf16.msrb.mxu0 %v5520_v25 }
 0x1d5   : > { %v1392_v33 = vsel %vm1391_vm11, %v3786_v57, %v1388_v3  ;;  %v5575_v57 = vld [vmem:[#allocation19_spill] sm:$0xff]  ;;  %v5583_v3 = vld [vmem:[#allocation29_spill] sm:$0xff] }
 0x1d6   : > { %v1397_v7 = vsel %vm1394_vm13, %v1396_v54, %v1392_v33  ;;  %1686 = vmatpush.bf16.msrb.mxu2 %v5522_v40  ;;  %v5584_v54 = vld [vmem:[#allocation34_spill] sm:$0xff]  ;;  %v5586_v33 = vld [vmem:[#allocation39_spill] sm:$0xff] }
 0x1d7   : > { %v1403_v13 = vmul.f32 %v3788_v17, %v1397_v7  ;;  %v5587_v17 = vld [vmem:[#allocation38_spill] sm:$0xff]  ;;  %v5588_v7 = vld [vmem:[#allocation43_spill] sm:$0xff] }
 0x1d8   : > { %1660 = vmatpush.bf16.msrb.mxu0 %v5524_v22 }
 0x1d9   : > { %v1404_v10 = vpack.c.bf16 %v1403_v13, %v1403_v13  ;;  %v4796_v38 = vsel %vm1412_vm14, %v1403_v13, %v1229_v21  ;;  %v5589_v13 = vld [vmem:[#allocation42_spill] sm:$0xff]  ;;  %v5590_v21 = vld [vmem:[#allocation45_spill] sm:$0xff] }
 0x1da   : > { %1687 = vmatpush.bf16.msrb.mxu2 %v5526_v4 }
 0x1db   : > { %3374 = vst [vmem:[#allocation5 + $0x4] sm:$0xf] %v1404_v10  ;;  %1442 = vmatmul.bf16.vlgmr.msra.gmra.mxu1 %v1404_v10  ;;  %1468 = vmatmul.bf16.vlgmr.msra.gmra.mxu3 %v1404_v10 }
 0x1dc   : > { %1618 = vmatpush.bf16.msra.mxu1 %v4227_v15  ;;  %1644 = vmatpush.bf16.msra.mxu3 %v4221_v11 }
 0x1dd   : > { %1661 = vmatpush.bf16.msrb.mxu0 %v5528_v23 }
 0x1de   : > { %1688 = vmatpush.bf16.msrb.mxu2 %v5530_v30 }
 0x1e0   : > { %1619 = vmatpush.bf16.msra.mxu1 %v4247_v28  ;;  %1645 = vmatpush.bf16.msra.mxu3 %v4242_v24 }
 0x1e1   : > { %1662 = vmatpush.bf16.msrb.mxu0 %v5532_v62 }
 0x1e2   : > { %1689 = vmatpush.bf16.msrb.mxu2 %v4528_v51 }
 0x1e4   : > { %1620 = vmatpush.bf16.msra.mxu1 %v4268_v41  ;;  %1646 = vmatpush.bf16.msra.mxu3 %v4262_v37 }
 0x1e5   : > { %1663 = vmatpush.bf16.msrb.mxu0 %v4526_v46 }
 0x1e6   : > { %1690 = vmatpush.bf16.msrb.mxu2 %v4548_v43 }
 0x1e8   : > { %1621 = vmatpush.bf16.msra.mxu1 %v4288_v53  ;;  %1647 = vmatpush.bf16.msra.mxu3 %v4282_v49 }
 0x1e9   : > { %1664 = vmatpush.bf16.msrb.mxu0 %v5571_v56 }
 0x1eb   : > { %1494 = vmatmul.bf16.vlgmr.msrb.gmra.mxu1 %v1404_v10  ;;  %1520 = vmatmul.bf16.vlgmr.msrb.gmra.mxu3 %v1404_v10  ;;  %v5591_v10 = vld [vmem:[#allocation44_spill] sm:$0xff] }
 0x1ec   : > { %1622 = vmatpush.bf16.msra.mxu1 %v4308_v1  ;;  %1648 = vmatpush.bf16.msra.mxu3 %v4302_v61 }
 0x1f0   : > { %1623 = vmatpush.bf16.msra.mxu1 %v5572_v39  ;;  %1649 = vmatpush.bf16.msra.mxu3 %v5573_v42 }
 0x1f4   : > { %1624 = vmatpush.bf16.msra.mxu1 %v5574_v18  ;;  %1650 = vmatpush.bf16.msra.mxu3 %v5575_v57 }
 0x1f8   : > { %1625 = vmatpush.bf16.msra.mxu1 %v5576_v12  ;;  %1651 = vmatpush.bf16.msra.mxu3 %v5577_v16  ;;  %v5594_v12 = vld [vmem:[#allocation32_spill] sm:$0xff] }
 0x1fc   : > { %1670 = vmatpush.bf16.msrb.mxu1 %v5578_v2  ;;  %1696 = vmatpush.bf16.msrb.mxu3 %v5579_v27 }
 0x200   : > { %1671 = vmatpush.bf16.msrb.mxu1 %v5580_v5  ;;  %1697 = vmatpush.bf16.msrb.mxu3 %v5581_v44  ;;  %v5592_v44 = vld [vmem:[#allocation48_spill] sm:$0xff] }
 0x204   : > { %1672 = vmatpush.bf16.msrb.mxu1 %v5582_v6  ;;  %1698 = vmatpush.bf16.msrb.mxu3 %v5583_v3  ;;  %v5593_v6 = vld [vmem:[#allocation47_spill] sm:$0xff] }
 0x208   : > { %1673 = vmatpush.bf16.msrb.mxu1 %v5584_v54  ;;  %1699 = vmatpush.bf16.msrb.mxu3 %v5585_v20 }
 0x20c   : > { %1674 = vmatpush.bf16.msrb.mxu1 %v5586_v33  ;;  %1700 = vmatpush.bf16.msrb.mxu3 %v5587_v17 }
 0x210   : > { %1675 = vmatpush.bf16.msrb.mxu1 %v5588_v7  ;;  %1701 = vmatpush.bf16.msrb.mxu3 %v5589_v13 }
 0x214   : > { %1676 = vmatpush.bf16.msrb.mxu1 %v5590_v21  ;;  %1702 = vmatpush.bf16.msrb.mxu3 %v5591_v10 }
 0x218   : > { %1677 = vmatpush.bf16.msrb.mxu1 %v5592_v44  ;;  %1703 = vmatpush.bf16.msrb.mxu3 %v5593_v6 }
 0x221   : > { %v1430_v3 = vpop.f32.mrf.mxu0 }
 0x222   : > { %v1431_v7 = vadd.f32 %v1430_v3, %v5563_v45 }
 0x227   : > { %v1456_v54 = vpop.f32.mrf.mxu2 }
 0x228   : > { %v1457_v21 = vadd.f32 %v1456_v54, %v5594_v12 }
 0x229   : > { %v1432_v5 = vpop.f32.mrf.mxu0 }
 0x22f   : > { %v1458_v20 = vpop.f32.mrf.mxu2 }
 0x230   : > { %v3382_v20 = vld [vmem:[#allocation5 + $0xc] sm:$0xf] }
 0x232   : > { %v1482_v33 = vpop.f32.mrf.mxu0 }
 0x237   : > { %v1508_v27 = vpop.f32.mrf.mxu2 }
 0x23a   : > { %v1484_v17 = vpop.f32.mrf.mxu0 }
 0x23b   : > { %v1483_v17 = vadd.f32 %v1482_v33, %v4650_v14 }
 0x23f   : > { %v1510_v2 = vpop.f32.mrf.mxu2 }
 0x240   : > { %v3381_v2 = vld [vmem:[%s5489_s19 + $0xc] sm:$0xf] }
 0x258   : > { %v1443_v16 = vpop.f32.mrf.mxu1 }
 0x259   : > { %v1444_v13 = vadd.f32 %v1443_v16, %v1431_v7  ;;  %v1604_v16 = vsel %vm4382_vm0, %v3381_v2, %v3382_v20  ;;  %v5596_v7 = vld [vmem:[#allocation14_spill] sm:$0xff] }
 0x25a   : > { %1639 = vmatmul.bf16.vlgmr.msra.gmra.mxu2 %v1604_v16  ;;  %1613 = vmatmul.bf16.vlgmr.msra.gmra.mxu0 %v1604_v16 }
 0x25b   : > { %v3377_v57 = vmul.f32 -1.442695, %v1444_v13  ;;  %1815 = vmatpush.bf16.msra.mxu2 %v5596_v7 }
 0x25d   : > { %3789 = vpow2.f32 %v3377_v57 }
 0x25e   : > { %v1469_v10 = vpop.f32.mrf.mxu3 }
 0x25f   : > { %v1470_v44 = vadd.f32 %v1469_v10, %v1457_v21  ;;  %1816 = vmatpush.bf16.msra.mxu2 %v5568_v29 }
 0x260   : > { %v1445_v18 = vpop.f32.mrf.mxu1 }
 0x261   : > { %v3378_v6 = vmul.f32 -1.442695, %v1470_v44  ;;  %v5597_v18 = vld [vmem:[#allocation13_spill] sm:$0xff] }
 0x262   : > { %1789 = vmatpush.bf16.msra.mxu0 %v5597_v18  ;;  %v5599_v18 = vld [vmem:[#allocation16_spill] sm:$0xff] }
 0x263   : > { %v3790_v42 = vpop.eup %3789  ;;  %3791 = vpow2.f32 %v3378_v6  ;;  %1817 = vmatpush.bf16.msra.mxu2 %v4260_v36 }
 0x264   : > { %v1528_v5 = vadd.f32 1.0, %v3790_v42  ;;  %v5598_v42 = vld [vmem:[#allocation31_spill] sm:$0xff] }
 0x265   : > { %v1509_v6 = vadd.f32 %v1508_v27, %v5598_v42 }
 0x266   : > { %3793 = vrcp.f32 %v1528_v5  ;;  %v1471_v3 = vpop.f32.mrf.mxu3  ;;  %1790 = vmatpush.bf16.msra.mxu0 %v4234_v19  ;;  %vm1534_vm2 = vweird.f32 %v1528_v5 }
 0x267   : > { %1818 = vmatpush.bf16.msra.mxu2 %v4280_v48 }
 0x268   : > { %v1495_v54 = vpop.f32.mrf.mxu1 }
 0x269   : > { %v3792_v57 = vpop.eup %3791  ;;  %v1496_v45 = vadd.f32 %v1495_v54, %v1483_v17 }
 0x26a   : > { %v1547_v44 = vadd.f32 1.0, %v3792_v57  ;;  %1791 = vmatpush.bf16.msra.mxu0 %v5599_v18  ;;  %v1538_v18 = vand.u32 2147483647, %v1528_v5  ;;  %1691 = vmatmul.bf16.vlgmr.msrb.gmra.mxu2 %v1604_v16 }
 0x26b   : > { %1665 = vmatmul.bf16.vlgmr.msrb.gmra.mxu0 %v1604_v16  ;;  %1819 = vmatpush.bf16.msra.mxu2 %v4300_v60 }
 0x26c   : > { %v3794_v13 = vpop.eup %3793  ;;  %3795 = vrcp.f32 %v1547_v44  ;;  %vm1553_vm3 = vweird.f32 %v1547_v44  ;;  %vm1539_vm7 = vcmp.eq.f32.partialorder %v1538_v18, 8.507059e+37 }
 0x26d   : > { %v1530_v21 = vmul.f32 %v3794_v13, %v1528_v5  ;;  %vm1535_vm15 = vweird.f32 %v3794_v13 }
 0x26e   : > { %v1521_v10 = vpop.f32.mrf.mxu3  ;;  %1792 = vmatpush.bf16.msra.mxu0 %v4276_v47  ;;  %vm4857_vm4 = vmor %vm1534_vm2, %vm1535_vm15 }
 0x26f   : > { %v1531_v2 = vsub.f32 1.0, %v1530_v21  ;;  %v1522_v20 = vadd.f32 %v1521_v10, %v1509_v6  ;;  %v1559_v21 = vand.u32 2147483648, %v1547_v44  ;;  %1820 = vmatpush.bf16.msra.mxu2 %v4320_v9 }
 0x270   : > { %v1497_v3 = vpop.f32.mrf.mxu1 }
 0x271   : > { %v3379_v12 = vmul.f32 -1.442695, %v1522_v20  ;;  %v1532_v27 = vmul.f32 %v3794_v13, %v1531_v2  ;;  %v1540_v20 = vand.u32 2147483648, %v1528_v5  ;;  %v1557_v3 = vand.u32 2147483647, %v1547_v44 }
 0x272   : > { %v3796_v57 = vpop.eup %3795  ;;  %1793 = vmatpush.bf16.msra.mxu0 %v4296_v59  ;;  %v1560_v54 = vor.u32 1.1754944e-38, %v1559_v21 }
 0x273   : > { %v1549_v42 = vmul.f32 %v3796_v57, %v1547_v44  ;;  %3797 = vpow2.f32 %v3379_v12  ;;  %v1533_v6 = vadd.f32 %v3794_v13, %v1532_v27  ;;  %vm1554_vm1 = vweird.f32 %v3796_v57  ;;  %1821 = vmatpush.bf16.msra.mxu2 %v4343_v31  ;;  %v1595_v12 = vpop.permute.xlu1 %1594 }
 0x274   : > { %3799 = vtanh.f32 %v1496_v45  ;;  %vm1555_vm5 = vmor %vm1553_vm3, %vm1554_vm1  ;;  %vm1558_vm6 = vcmp.eq.f32.partialorder %v1557_v3, 8.507059e+37  ;;  %vm1596_vm13 = vcmp.eq.s32.totalorder %v1595_v12, 1  ;;  %v5613_v12 = vld [vmem:[#allocation34_spill] sm:$0xff] }
 0x275   : > { %v1550_v7 = vsub.f32 1.0, %v1549_v42  ;;  %v1541_v42 = vor.u32 1.1754944e-38, %v1540_v20 }
 0x276   : > { %v1523_v10 = vpop.f32.mrf.mxu3  ;;  %1794 = vmatpush.bf16.msra.mxu0 %v4316_v8 }
 0x277   : > { %v1551_v33 = vmul.f32 %v3796_v57, %v1550_v7  ;;  %v1537_v7 = vsel %vm4857_vm4, %v3794_v13, %v1533_v6  ;;  %v4871_v13 = vld [vmem:[%s5362_s1] sm:$0xff]  ;;  %1822 = vmatpush.bf16.msra.mxu2 %v4368_v55 }
 0x278   : > { %v1542_v27 = vsel %vm1539_vm7, %v1541_v42, %v1537_v7  ;;  %vm1775_vm8 = vcmp.eq.s32.totalorder %v4871_v13, 3  ;;  %vm1959_vm7 = vcmp.eq.s32.totalorder %v4871_v13, 4 }
 0x279   : > { %v3798_v2 = vpop.eup %3797  ;;  %v1552_v17 = vadd.f32 %v3796_v57, %v1551_v33  ;;  %v1776_v21 = vsel %vm1775_vm8, 1, %v5542_v52 }
 0x27a   : > { %v1567_v5 = vadd.f32 1.0, %v3798_v2  ;;  %v3800_v10 = vpop.eup %3799  ;;  %1795 = vmatpush.bf16.msra.mxu0 %v4336_v26  ;;  %1778 = vperm.xlu1 %3755, %v1776_v21   ;;  %v5607_v21 = vld [vmem:[#allocation25_spill] sm:$0xff] }
 0x27b   : > { %v1556_v16 = vsel %vm1555_vm5, %v3796_v57, %v1552_v17  ;;  %v1584_v33 = vmul.f32 %v3800_v10, %v1542_v27  ;;  %1867 = vmatpush.bf16.msrb.mxu2 %v4380_v0  ;;  %v5604_v10 = vld [vmem:[#allocation19_spill] sm:$0xff] }
 0x27c   : > { %v1561_v44 = vsel %vm1558_vm6, %v1560_v54, %v1556_v16  ;;  %3801 = vrcp.f32 %v1567_v5  ;;  %v1579_v20 = vand.u32 2147483648, %v1567_v5  ;;  %v1577_v2 = vand.u32 2147483647, %v1567_v5 }
 0x27d   : > { %v1583_v45 = vmul.f32 %v1561_v44, %v4783_v32  ;;  %vm1573_vm10 = vweird.f32 %v1567_v5 }
 0x27e   : > { %1796 = vmatpush.bf16.msra.mxu0 %v4361_v50  ;;  %v1580_v54 = vor.u32 1.1754944e-38, %v1579_v20  ;;  %vm1578_vm12 = vcmp.eq.f32.partialorder %v1577_v2, 8.507059e+37  ;;  %v5610_v20 = vld [vmem:[#allocation26_spill] sm:$0xff]  ;;  %v5612_v2 = vld [vmem:[#allocation29_spill] sm:$0xff] }
 0x27f   : > { %v4876_v57 = vadd.f32 %v1584_v33, %v1583_v45  ;;  %1868 = vmatpush.bf16.msrb.mxu2 %v4413_v35  ;;  %v5605_v33 = vld [vmem:[#allocation24_spill] sm:$0xff] }
 0x281   : > { %3803 = vtanh.f32 %v4876_v57 }
 0x282   : > { %v3802_v18 = vpop.eup %3801  ;;  %1841 = vmatpush.bf16.msrb.mxu0 %v4378_v63 }
 0x283   : > { %v1569_v6 = vmul.f32 %v3802_v18, %v1567_v5  ;;  %vm1574_vm9 = vweird.f32 %v3802_v18  ;;  %1869 = vmatpush.bf16.msrb.mxu2 %v4437_v58  ;;  %v5603_v5 = vld [vmem:[#allocation20_spill] sm:$0xff] }
 0x284   : > { %vm1575_vm11 = vmor %vm1573_vm10, %vm1574_vm9 }
 0x285   : > { %v1570_v32 = vsub.f32 1.0, %v1569_v6  ;;  %v5608_v6 = vld [vmem:[#allocation23_spill] sm:$0xff] }
 0x286   : > { %1842 = vmatpush.bf16.msrb.mxu0 %v4411_v34 }
 0x287   : > { %v1571_v3 = vmul.f32 %v3802_v18, %v1570_v32  ;;  %v3804_v42 = vpop.eup %3803  ;;  %1870 = vmatpush.bf16.msrb.mxu2 %v5522_v40  ;;  %v5609_v32 = vld [vmem:[#allocation27_spill] sm:$0xff] }
 0x289   : > { %v1572_v17 = vadd.f32 %v3802_v18, %v1571_v3  ;;  %v5611_v3 = vld [vmem:[#allocation30_spill] sm:$0xff] }
 0x28a   : > { %1843 = vmatpush.bf16.msrb.mxu0 %v5520_v25 }
 0x28b   : > { %v1576_v7 = vsel %vm1575_vm11, %v3802_v18, %v1572_v17  ;;  %1871 = vmatpush.bf16.msrb.mxu2 %v5526_v4  ;;  %v5606_v18 = vld [vmem:[#allocation21_spill] sm:$0xff] }
 0x28c   : > { %v1581_v16 = vsel %vm1578_vm12, %v1580_v54, %v1576_v7  ;;  %v5614_v17 = vld [vmem:[#allocation33_spill] sm:$0xff]  ;;  %v5615_v54 = vld [vmem:[#allocation39_spill] sm:$0xff]  ;;  %v5616_v7 = vld [vmem:[#allocation38_spill] sm:$0xff] }
 0x28d   : > { %v1587_v44 = vmul.f32 %v3804_v42, %v1581_v16  ;;  %v5617_v42 = vld [vmem:[#allocation43_spill] sm:$0xff]  ;;  %v5618_v16 = vld [vmem:[#allocation42_spill] sm:$0xff] }
 0x28e   : > { %1844 = vmatpush.bf16.msrb.mxu0 %v5524_v22 }
 0x28f   : > { %v1588_v27 = vpack.c.bf16 %v1587_v44, %v1587_v44  ;;  %v4889_v45 = vsel %vm1596_vm13, %v1587_v44, %v4796_v38  ;;  %1872 = vmatpush.bf16.msrb.mxu2 %v5530_v30  ;;  %v5602_v38 = vld [vmem:[#allocation17_spill] sm:$0xff] }
 0x290   : > { %v5619_v44 = vld [vmem:[#allocation45_spill] sm:$0xff] }
 0x291   : > { %3380 = vst [vmem:[#allocation5 + $0x8] sm:$0xf] %v1588_v27  ;;  %1626 = vmatmul.bf16.vlgmr.msra.gmra.mxu1 %v1588_v27  ;;  %1652 = vmatmul.bf16.vlgmr.msra.gmra.mxu3 %v1588_v27 }
 0x292   : > { %1802 = vmatpush.bf16.msra.mxu1 %v4227_v15  ;;  %1828 = vmatpush.bf16.msra.mxu3 %v4221_v11 }
 0x293   : > { %1845 = vmatpush.bf16.msrb.mxu0 %v5528_v23  ;;  %1873 = vmatpush.bf16.msrb.mxu2 %v4528_v51 }
 0x296   : > { %1803 = vmatpush.bf16.msra.mxu1 %v4247_v28  ;;  %1829 = vmatpush.bf16.msra.mxu3 %v4242_v24 }
 0x297   : > { %1846 = vmatpush.bf16.msrb.mxu0 %v5532_v62  ;;  %1874 = vmatpush.bf16.msrb.mxu2 %v4548_v43 }
 0x29a   : > { %1804 = vmatpush.bf16.msra.mxu1 %v4268_v41  ;;  %1830 = vmatpush.bf16.msra.mxu3 %v4262_v37 }
 0x29b   : > { %1847 = vmatpush.bf16.msrb.mxu0 %v4526_v46 }
 0x29e   : > { %1805 = vmatpush.bf16.msra.mxu1 %v4288_v53  ;;  %1831 = vmatpush.bf16.msra.mxu3 %v4282_v49 }
 0x29f   : > { %1848 = vmatpush.bf16.msrb.mxu0 %v5571_v56 }
 0x2a1   : > { %1678 = vmatmul.bf16.vlgmr.msrb.gmra.mxu1 %v1588_v27  ;;  %1704 = vmatmul.bf16.vlgmr.msrb.gmra.mxu3 %v1588_v27  ;;  %v5620_v27 = vld [vmem:[#allocation44_spill] sm:$0xff] }
 0x2a2   : > { %1806 = vmatpush.bf16.msra.mxu1 %v4308_v1  ;;  %1832 = vmatpush.bf16.msra.mxu3 %v4302_v61 }
 0x2a6   : > { %1807 = vmatpush.bf16.msra.mxu1 %v5572_v39  ;;  %1833 = vmatpush.bf16.msra.mxu3 %v5602_v38 }
 0x2aa   : > { %1808 = vmatpush.bf16.msra.mxu1 %v5603_v5  ;;  %1834 = vmatpush.bf16.msra.mxu3 %v5604_v10  ;;  %v5624_v10 = vld [vmem:[#allocation32_spill] sm:$0xff] }
 0x2ae   : > { %1809 = vmatpush.bf16.msra.mxu1 %v5605_v33  ;;  %1835 = vmatpush.bf16.msra.mxu3 %v5606_v18  ;;  %v5623_v18 = vld [vmem:[#allocation28_spill] sm:$0xff] }
 0x2b2   : > { %1854 = vmatpush.bf16.msrb.mxu1 %v5607_v21  ;;  %1880 = vmatpush.bf16.msrb.mxu3 %v5608_v6 }
 0x2b6   : > { %1855 = vmatpush.bf16.msrb.mxu1 %v5609_v32  ;;  %1881 = vmatpush.bf16.msrb.mxu3 %v5610_v20  ;;  %v5621_v20 = vld [vmem:[#allocation48_spill] sm:$0xff] }
 0x2ba   : > { %1856 = vmatpush.bf16.msrb.mxu1 %v5611_v3  ;;  %1882 = vmatpush.bf16.msrb.mxu3 %v5612_v2  ;;  %v5622_v3 = vld [vmem:[#allocation47_spill] sm:$0xff] }
 0x2be   : > { %1857 = vmatpush.bf16.msrb.mxu1 %v5613_v12  ;;  %1883 = vmatpush.bf16.msrb.mxu3 %v5614_v17 }
 0x2c2   : > { %1858 = vmatpush.bf16.msrb.mxu1 %v5615_v54  ;;  %1884 = vmatpush.bf16.msrb.mxu3 %v5616_v7 }
 0x2c6   : > { %1859 = vmatpush.bf16.msrb.mxu1 %v5617_v42  ;;  %1885 = vmatpush.bf16.msrb.mxu3 %v5618_v16 }
 0x2ca   : > { %1860 = vmatpush.bf16.msrb.mxu1 %v5619_v44  ;;  %1886 = vmatpush.bf16.msrb.mxu3 %v5620_v27 }
 0x2ce   : > { %1861 = vmatpush.bf16.msrb.mxu1 %v5621_v20  ;;  %1887 = vmatpush.bf16.msrb.mxu3 %v5622_v3 }
 0x2d7   : > { %v1614_v2 = vpop.f32.mrf.mxu0 }
 0x2d8   : > { %v1615_v42 = vadd.f32 %v1614_v2, %v5623_v18 }
 0x2dd   : > { %v1640_v12 = vpop.f32.mrf.mxu2 }
 0x2de   : > { %v1641_v44 = vadd.f32 %v1640_v12, %v5624_v10 }
 0x2df   : > { %v1616_v32 = vpop.f32.mrf.mxu0 }
 0x2e5   : > { %v1642_v17 = vpop.f32.mrf.mxu2 }
 0x2e6   : > { %v3388_v17 = vld [vmem:[#allocation5 + $0x10] sm:$0xf] }
 0x2e8   : > { %v1666_v54 = vpop.f32.mrf.mxu0 }
 0x2ed   : > { %v1692_v6 = vpop.f32.mrf.mxu2 }
 0x2f0   : > { %v1668_v7 = vpop.f32.mrf.mxu0 }
 0x2f1   : > { %v1667_v7 = vadd.f32 %v1666_v54, %v4650_v14 }
 0x2f5   : > { %v1694_v21 = vpop.f32.mrf.mxu2 }
 0x2f6   : > { %v3387_v21 = vld [vmem:[%s5489_s19 + $0x10] sm:$0xf] }
 0x30e   : > { %v1627_v33 = vpop.f32.mrf.mxu1 }
 0x30f   : > { %v1628_v16 = vadd.f32 %v1627_v33, %v1615_v42  ;;  %v1788_v33 = vsel %vm4382_vm0, %v3387_v21, %v3388_v17  ;;  %v5626_v42 = vld [vmem:[#allocation14_spill] sm:$0xff] }
 0x310   : > { %1823 = vmatmul.bf16.vlgmr.msra.gmra.mxu2 %v1788_v33  ;;  %1797 = vmatmul.bf16.vlgmr.msra.gmra.mxu0 %v1788_v33 }
 0x311   : > { %v3383_v5 = vmul.f32 -1.442695, %v1628_v16  ;;  %1999 = vmatpush.bf16.msra.mxu2 %v5626_v42 }
 0x313   : > { %3805 = vpow2.f32 %v3383_v5 }
 0x314   : > { %v1653_v27 = vpop.f32.mrf.mxu3 }
 0x315   : > { %v1654_v20 = vadd.f32 %v1653_v27, %v1641_v44  ;;  %2000 = vmatpush.bf16.msra.mxu2 %v5568_v29 }
 0x316   : > { %v1629_v38 = vpop.f32.mrf.mxu1 }
 0x317   : > { %v3384_v3 = vmul.f32 -1.442695, %v1654_v20  ;;  %v5627_v38 = vld [vmem:[#allocation13_spill] sm:$0xff] }
 0x318   : > { %1973 = vmatpush.bf16.msra.mxu0 %v5627_v38  ;;  %v5629_v38 = vld [vmem:[#allocation16_spill] sm:$0xff] }
 0x319   : > { %v3806_v39 = vpop.eup %3805  ;;  %3807 = vpow2.f32 %v3384_v3  ;;  %2001 = vmatpush.bf16.msra.mxu2 %v4260_v36 }
 0x31a   : > { %v1712_v32 = vadd.f32 1.0, %v3806_v39  ;;  %v5628_v39 = vld [vmem:[#allocation31_spill] sm:$0xff] }
 0x31b   : > { %v1693_v3 = vadd.f32 %v1692_v6, %v5628_v39 }
 0x31c   : > { %3809 = vrcp.f32 %v1712_v32  ;;  %v1655_v2 = vpop.f32.mrf.mxu3  ;;  %1974 = vmatpush.bf16.msra.mxu0 %v4234_v19  ;;  %vm1718_vm1 = vweird.f32 %v1712_v32 }
 0x31d   : > { %2002 = vmatpush.bf16.msra.mxu2 %v4280_v48 }
 0x31e   : > { %v1679_v12 = vpop.f32.mrf.mxu1 }
 0x31f   : > { %v3808_v5 = vpop.eup %3807  ;;  %v1680_v18 = vadd.f32 %v1679_v12, %v1667_v7 }
 0x320   : > { %v1731_v20 = vadd.f32 1.0, %v3808_v5  ;;  %1975 = vmatpush.bf16.msra.mxu0 %v5629_v38  ;;  %v1722_v38 = vand.u32 2147483647, %v1712_v32  ;;  %1875 = vmatmul.bf16.vlgmr.msrb.gmra.mxu2 %v1788_v33 }
 0x321   : > { %1849 = vmatmul.bf16.vlgmr.msrb.gmra.mxu0 %v1788_v33  ;;  %2003 = vmatpush.bf16.msra.mxu2 %v4300_v60 }
 0x322   : > { %v3810_v16 = vpop.eup %3809  ;;  %3811 = vrcp.f32 %v1731_v20  ;;  %vm1737_vm2 = vweird.f32 %v1731_v20  ;;  %vm1723_vm6 = vcmp.eq.f32.partialorder %v1722_v38, 8.507059e+37  ;;  %v1960_v38 = vsel %vm1959_vm7, 1, %v5542_v52 }
 0x323   : > { %v1714_v44 = vmul.f32 %v3810_v16, %v1712_v32  ;;  %vm1719_vm14 = vweird.f32 %v3810_v16  ;;  %1962 = vperm.xlu2 %3756, %v1960_v38   ;;  %v5638_v38 = vld [vmem:[#allocation25_spill] sm:$0xff] }
 0x324   : > { %v1705_v27 = vpop.f32.mrf.mxu3  ;;  %1976 = vmatpush.bf16.msra.mxu0 %v4276_v47  ;;  %vm4950_vm3 = vmor %vm1718_vm1, %vm1719_vm14 }
 0x325   : > { %v1715_v21 = vsub.f32 1.0, %v1714_v44  ;;  %v1706_v17 = vadd.f32 %v1705_v27, %v1693_v3  ;;  %v1743_v44 = vand.u32 2147483648, %v1731_v20  ;;  %2004 = vmatpush.bf16.msra.mxu2 %v4320_v9 }
 0x326   : > { %v1681_v2 = vpop.f32.mrf.mxu1 }
 0x327   : > { %v3385_v10 = vmul.f32 -1.442695, %v1706_v17  ;;  %v1716_v6 = vmul.f32 %v3810_v16, %v1715_v21  ;;  %v1724_v17 = vand.u32 2147483648, %v1712_v32  ;;  %v1741_v2 = vand.u32 2147483647, %v1731_v20 }
 0x328   : > { %v3812_v5 = vpop.eup %3811  ;;  %1977 = vmatpush.bf16.msra.mxu0 %v4296_v59  ;;  %v1744_v12 = vor.u32 1.1754944e-38, %v1743_v44 }
 0x329   : > { %v1733_v39 = vmul.f32 %v3812_v5, %v1731_v20  ;;  %3813 = vpow2.f32 %v3385_v10  ;;  %v1717_v3 = vadd.f32 %v3810_v16, %v1716_v6  ;;  %vm1738_vm15 = vweird.f32 %v3812_v5  ;;  %2005 = vmatpush.bf16.msra.mxu2 %v4343_v31 }
 0x32a   : > { %3815 = vtanh.f32 %v1680_v18  ;;  %vm1739_vm4 = vmor %vm1737_vm2, %vm1738_vm15  ;;  %vm1742_vm5 = vcmp.eq.f32.partialorder %v1741_v2, 8.507059e+37 }
 0x32b   : > { %v1734_v42 = vsub.f32 1.0, %v1733_v39  ;;  %v1725_v39 = vor.u32 1.1754944e-38, %v1724_v17 }
 0x32c   : > { %v1707_v27 = vpop.f32.mrf.mxu3  ;;  %1978 = vmatpush.bf16.msra.mxu0 %v4316_v8 }
 0x32d   : > { %v1735_v54 = vmul.f32 %v3812_v5, %v1734_v42  ;;  %v1721_v42 = vsel %vm4950_vm3, %v3810_v16, %v1717_v3  ;;  %2006 = vmatpush.bf16.msra.mxu2 %v4368_v55 }
 0x32e   : > { %v1726_v6 = vsel %vm1723_vm6, %v1725_v39, %v1721_v42  ;;  %vm2143_vm6 = vcmp.eq.s32.totalorder %v4871_v13, 5 }
 0x32f   : > { %v3814_v21 = vpop.eup %3813  ;;  %v1736_v7 = vadd.f32 %v3812_v5, %v1735_v54 }
 0x330   : > { %v1751_v32 = vadd.f32 1.0, %v3814_v21  ;;  %v3816_v27 = vpop.eup %3815  ;;  %1979 = vmatpush.bf16.msra.mxu0 %v4336_v26  ;;  %v1779_v21 = vpop.permute.xlu1 %1778 }
 0x331   : > { %v1740_v33 = vsel %vm1739_vm4, %v3812_v5, %v1736_v7  ;;  %v1768_v54 = vmul.f32 %v3816_v27, %v1726_v6  ;;  %2051 = vmatpush.bf16.msrb.mxu2 %v4380_v0  ;;  %vm1780_vm12 = vcmp.eq.s32.totalorder %v1779_v21, 1  ;;  %v5635_v27 = vld [vmem:[#allocation19_spill] sm:$0xff]  ;;  %v5644_v21 = vld [vmem:[#allocation34_spill] sm:$0xff] }
 0x332   : > { %v1745_v20 = vsel %vm1742_vm5, %v1744_v12, %v1740_v33  ;;  %3817 = vrcp.f32 %v1751_v32  ;;  %v1761_v2 = vand.u32 2147483647, %v1751_v32  ;;  %vm1757_vm9 = vweird.f32 %v1751_v32 }
 0x333   : > { %v1767_v18 = vmul.f32 %v1745_v20, %v4876_v57  ;;  %v1763_v57 = vand.u32 2147483648, %v1751_v32 }
 0x334   : > { %1980 = vmatpush.bf16.msra.mxu0 %v4361_v50  ;;  %vm1762_vm11 = vcmp.eq.f32.partialorder %v1761_v2, 8.507059e+37  ;;  %v5643_v2 = vld [vmem:[#allocation29_spill] sm:$0xff] }
 0x335   : > { %v4964_v5 = vadd.f32 %v1768_v54, %v1767_v18  ;;  %v1764_v7 = vor.u32 1.1754944e-38, %v1763_v57  ;;  %2052 = vmatpush.bf16.msrb.mxu2 %v4413_v35  ;;  %v5634_v18 = vld [vmem:[#allocation20_spill] sm:$0xff]  ;;  %v5641_v57 = vld [vmem:[#allocation26_spill] sm:$0xff] }
 0x336   : > { %v5636_v54 = vld [vmem:[#allocation24_spill] sm:$0xff] }
 0x337   : > { %3819 = vtanh.f32 %v4964_v5 }
 0x338   : > { %v3818_v16 = vpop.eup %3817  ;;  %2025 = vmatpush.bf16.msrb.mxu0 %v4378_v63 }
 0x339   : > { %v1753_v44 = vmul.f32 %v3818_v16, %v1751_v32  ;;  %vm1758_vm8 = vweird.f32 %v3818_v16  ;;  %2053 = vmatpush.bf16.msrb.mxu2 %v4437_v58  ;;  %v5633_v32 = vld [vmem:[#allocation17_spill] sm:$0xff] }
 0x33a   : > { %vm1759_vm10 = vmor %vm1757_vm9, %vm1758_vm8 }
 0x33b   : > { %v1754_v3 = vsub.f32 1.0, %v1753_v44  ;;  %v5639_v44 = vld [vmem:[#allocation23_spill] sm:$0xff] }
 0x33c   : > { %2026 = vmatpush.bf16.msrb.mxu0 %v4411_v34 }
 0x33d   : > { %v1755_v17 = vmul.f32 %v3818_v16, %v1754_v3  ;;  %v3820_v42 = vpop.eup %3819  ;;  %2054 = vmatpush.bf16.msrb.mxu2 %v5522_v40  ;;  %v5640_v3 = vld [vmem:[#allocation27_spill] sm:$0xff] }
 0x33f   : > { %v1756_v10 = vadd.f32 %v3818_v16, %v1755_v17  ;;  %v5642_v17 = vld [vmem:[#allocation30_spill] sm:$0xff] }
 0x340   : > { %2027 = vmatpush.bf16.msrb.mxu0 %v5520_v25 }
 0x341   : > { %v1760_v12 = vsel %vm1759_vm10, %v3818_v16, %v1756_v10  ;;  %2055 = vmatpush.bf16.msrb.mxu2 %v5526_v4  ;;  %v5637_v16 = vld [vmem:[#allocation21_spill] sm:$0xff] }
 0x342   : > { %v1765_v39 = vsel %vm1762_vm11, %v1764_v7, %v1760_v12  ;;  %v5645_v10 = vld [vmem:[#allocation33_spill] sm:$0xff]  ;;  %v5646_v7 = vld [vmem:[#allocation39_spill] sm:$0xff]  ;;  %v5647_v12 = vld [vmem:[#allocation38_spill] sm:$0xff] }
 0x343   : > { %v1771_v33 = vmul.f32 %v3820_v42, %v1765_v39  ;;  %v5648_v42 = vld [vmem:[#allocation43_spill] sm:$0xff]  ;;  %v5649_v39 = vld [vmem:[#allocation42_spill] sm:$0xff] }
 0x344   : > { %2028 = vmatpush.bf16.msrb.mxu0 %v5524_v22 }
 0x345   : > { %v1772_v20 = vpack.c.bf16 %v1771_v33, %v1771_v33  ;;  %v4977_v6 = vsel %vm1780_vm12, %v1771_v33, %v4889_v45  ;;  %2056 = vmatpush.bf16.msrb.mxu2 %v5530_v30  ;;  %v5632_v45 = vld [vmem:[#allocation18_spill] sm:$0xff]  ;;  %v5650_v33 = vld [vmem:[#allocation45_spill] sm:$0xff] }
 0x347   : > { %3386 = vst [vmem:[#allocation5 + $0xc] sm:$0xf] %v1772_v20  ;;  %1810 = vmatmul.bf16.vlgmr.msra.gmra.mxu1 %v1772_v20  ;;  %1836 = vmatmul.bf16.vlgmr.msra.gmra.mxu3 %v1772_v20 }
 0x348   : > { %1986 = vmatpush.bf16.msra.mxu1 %v4227_v15  ;;  %2012 = vmatpush.bf16.msra.mxu3 %v4221_v11 }
 0x349   : > { %2029 = vmatpush.bf16.msrb.mxu0 %v5528_v23  ;;  %2057 = vmatpush.bf16.msrb.mxu2 %v4528_v51 }
 0x34c   : > { %1987 = vmatpush.bf16.msra.mxu1 %v4247_v28  ;;  %2013 = vmatpush.bf16.msra.mxu3 %v4242_v24 }
 0x34d   : > { %2030 = vmatpush.bf16.msrb.mxu0 %v5532_v62  ;;  %2058 = vmatpush.bf16.msrb.mxu2 %v4548_v43 }
 0x350   : > { %1988 = vmatpush.bf16.msra.mxu1 %v4268_v41  ;;  %2014 = vmatpush.bf16.msra.mxu3 %v4262_v37 }
 0x351   : > { %2031 = vmatpush.bf16.msrb.mxu0 %v4526_v46 }
 0x354   : > { %1989 = vmatpush.bf16.msra.mxu1 %v4288_v53  ;;  %2015 = vmatpush.bf16.msra.mxu3 %v4282_v49 }
 0x355   : > { %2032 = vmatpush.bf16.msrb.mxu0 %v5571_v56 }
 0x357   : > { %1862 = vmatmul.bf16.vlgmr.msrb.gmra.mxu1 %v1772_v20  ;;  %1888 = vmatmul.bf16.vlgmr.msrb.gmra.mxu3 %v1772_v20  ;;  %v5651_v20 = vld [vmem:[#allocation44_spill] sm:$0xff] }
 0x358   : > { %1990 = vmatpush.bf16.msra.mxu1 %v4308_v1  ;;  %2016 = vmatpush.bf16.msra.mxu3 %v4302_v61 }
 0x35c   : > { %1991 = vmatpush.bf16.msra.mxu1 %v5632_v45  ;;  %2017 = vmatpush.bf16.msra.mxu3 %v5633_v32 }
 0x360   : > { %1992 = vmatpush.bf16.msra.mxu1 %v5634_v18  ;;  %2018 = vmatpush.bf16.msra.mxu3 %v5635_v27  ;;  %v5655_v27 = vld [vmem:[#allocation32_spill] sm:$0xff] }
 0x364   : > { %1993 = vmatpush.bf16.msra.mxu1 %v5636_v54  ;;  %2019 = vmatpush.bf16.msra.mxu3 %v5637_v16  ;;  %v5654_v16 = vld [vmem:[#allocation28_spill] sm:$0xff] }
 0x368   : > { %2038 = vmatpush.bf16.msrb.mxu1 %v5638_v38  ;;  %2064 = vmatpush.bf16.msrb.mxu3 %v5639_v44 }
 0x36c   : > { %2039 = vmatpush.bf16.msrb.mxu1 %v5640_v3  ;;  %2065 = vmatpush.bf16.msrb.mxu3 %v5641_v57  ;;  %v5652_v57 = vld [vmem:[#allocation48_spill] sm:$0xff] }
 0x370   : > { %2040 = vmatpush.bf16.msrb.mxu1 %v5642_v17  ;;  %2066 = vmatpush.bf16.msrb.mxu3 %v5643_v2  ;;  %v5653_v17 = vld [vmem:[#allocation47_spill] sm:$0xff] }
 0x374   : > { %2041 = vmatpush.bf16.msrb.mxu1 %v5644_v21  ;;  %2067 = vmatpush.bf16.msrb.mxu3 %v5645_v10 }
 0x378   : > { %2042 = vmatpush.bf16.msrb.mxu1 %v5646_v7  ;;  %2068 = vmatpush.bf16.msrb.mxu3 %v5647_v12 }
 0x37c   : > { %2043 = vmatpush.bf16.msrb.mxu1 %v5648_v42  ;;  %2069 = vmatpush.bf16.msrb.mxu3 %v5649_v39 }
 0x380   : > { %2044 = vmatpush.bf16.msrb.mxu1 %v5650_v33  ;;  %2070 = vmatpush.bf16.msrb.mxu3 %v5651_v20 }
 0x384   : > { %2045 = vmatpush.bf16.msrb.mxu1 %v5652_v57  ;;  %2071 = vmatpush.bf16.msrb.mxu3 %v5653_v17 }
 0x38d   : > { %v1798_v2 = vpop.f32.mrf.mxu0 }
 0x38e   : > { %v1799_v42 = vadd.f32 %v1798_v2, %v5654_v16 }
 0x393   : > { %v1824_v21 = vpop.f32.mrf.mxu2 }
 0x394   : > { %v1825_v33 = vadd.f32 %v1824_v21, %v5655_v27 }
 0x395   : > { %v1800_v3 = vpop.f32.mrf.mxu0 }
 0x39b   : > { %v1826_v10 = vpop.f32.mrf.mxu2 }
 0x39c   : > { %v3394_v10 = vld [vmem:[#allocation5 + $0x14] sm:$0xf] }
 0x39e   : > { %v1850_v7 = vpop.f32.mrf.mxu0 }
 0x3a3   : > { %v1876_v44 = vpop.f32.mrf.mxu2 }
 0x3a6   : > { %v1852_v12 = vpop.f32.mrf.mxu0 }
 0x3a7   : > { %v1851_v12 = vadd.f32 %v1850_v7, %v4650_v14 }
 0x3ab   : > { %v1878_v38 = vpop.f32.mrf.mxu2 }
 0x3ac   : > { %v3393_v38 = vld [vmem:[%s5489_s19 + $0x14] sm:$0xf] }
 0x3c4   : > { %v1811_v54 = vpop.f32.mrf.mxu1 }
 0x3c5   : > { %v1812_v39 = vadd.f32 %v1811_v54, %v1799_v42  ;;  %v1972_v54 = vsel %vm4382_vm0, %v3393_v38, %v3394_v10  ;;  %v5657_v42 = vld [vmem:[#allocation14_spill] sm:$0xff] }
 0x3c6   : > { %2007 = vmatmul.bf16.vlgmr.msra.gmra.mxu2 %v1972_v54  ;;  %1981 = vmatmul.bf16.vlgmr.msra.gmra.mxu0 %v1972_v54 }
 0x3c7   : > { %v3389_v18 = vmul.f32 -1.442695, %v1812_v39  ;;  %2183 = vmatpush.bf16.msra.mxu2 %v5657_v42 }
 0x3c9   : > { %3821 = vpow2.f32 %v3389_v18 }
 0x3ca   : > { %v1837_v20 = vpop.f32.mrf.mxu3 }
 0x3cb   : > { %v1838_v57 = vadd.f32 %v1837_v20, %v1825_v33  ;;  %2184 = vmatpush.bf16.msra.mxu2 %v5568_v29 }
 0x3cc   : > { %v1813_v32 = vpop.f32.mrf.mxu1 }
 0x3cd   : > { %v3390_v17 = vmul.f32 -1.442695, %v1838_v57  ;;  %v5658_v32 = vld [vmem:[#allocation13_spill] sm:$0xff] }
 0x3ce   : > { %2157 = vmatpush.bf16.msra.mxu0 %v5658_v32  ;;  %v5660_v32 = vld [vmem:[#allocation16_spill] sm:$0xff] }
 0x3cf   : > { %v3822_v45 = vpop.eup %3821  ;;  %3823 = vpow2.f32 %v3390_v17  ;;  %2185 = vmatpush.bf16.msra.mxu2 %v4260_v36 }
 0x3d0   : > { %v1896_v3 = vadd.f32 1.0, %v3822_v45  ;;  %v5659_v45 = vld [vmem:[#allocation31_spill] sm:$0xff] }
 0x3d1   : > { %v1877_v17 = vadd.f32 %v1876_v44, %v5659_v45 }
 0x3d2   : > { %3825 = vrcp.f32 %v1896_v3  ;;  %v1839_v2 = vpop.f32.mrf.mxu3  ;;  %2158 = vmatpush.bf16.msra.mxu0 %v4234_v19  ;;  %vm1902_vm15 = vweird.f32 %v1896_v3 }
 0x3d3   : > { %2186 = vmatpush.bf16.msra.mxu2 %v4280_v48 }
 0x3d4   : > { %v1863_v21 = vpop.f32.mrf.mxu1 }
 0x3d5   : > { %v3824_v18 = vpop.eup %3823  ;;  %v1864_v16 = vadd.f32 %v1863_v21, %v1851_v12 }
 0x3d6   : > { %v1915_v57 = vadd.f32 1.0, %v3824_v18  ;;  %2159 = vmatpush.bf16.msra.mxu0 %v5660_v32  ;;  %v1906_v32 = vand.u32 2147483647, %v1896_v3  ;;  %2059 = vmatmul.bf16.vlgmr.msrb.gmra.mxu2 %v1972_v54 }
 0x3d7   : > { %2033 = vmatmul.bf16.vlgmr.msrb.gmra.mxu0 %v1972_v54  ;;  %2187 = vmatpush.bf16.msra.mxu2 %v4300_v60 }
 0x3d8   : > { %v3826_v39 = vpop.eup %3825  ;;  %3827 = vrcp.f32 %v1915_v57  ;;  %vm1921_vm1 = vweird.f32 %v1915_v57  ;;  %vm1907_vm5 = vcmp.eq.f32.partialorder %v1906_v32, 8.507059e+37  ;;  %v2144_v32 = vsel %vm2143_vm6, 1, %v5542_v52 }
 0x3d9   : > { %v1898_v33 = vmul.f32 %v3826_v39, %v1896_v3  ;;  %vm1903_vm13 = vweird.f32 %v3826_v39  ;;  %2146 = vperm.xlu2 %3756, %v2144_v32   ;;  %v5670_v32 = vld [vmem:[#allocation23_spill] sm:$0xff] }
 0x3da   : > { %v1889_v20 = vpop.f32.mrf.mxu3  ;;  %2160 = vmatpush.bf16.msra.mxu0 %v4276_v47  ;;  %vm5038_vm2 = vmor %vm1902_vm15, %vm1903_vm13 }
 0x3db   : > { %v1899_v38 = vsub.f32 1.0, %v1898_v33  ;;  %v1890_v10 = vadd.f32 %v1889_v20, %v1877_v17  ;;  %v1927_v33 = vand.u32 2147483648, %v1915_v57  ;;  %2188 = vmatpush.bf16.msra.mxu2 %v4320_v9 }
 0x3dc   : > { %v1865_v2 = vpop.f32.mrf.mxu1 }
 0x3dd   : > { %v3391_v27 = vmul.f32 -1.442695, %v1890_v10  ;;  %v1900_v44 = vmul.f32 %v3826_v39, %v1899_v38  ;;  %v1908_v10 = vand.u32 2147483648, %v1896_v3  ;;  %v1925_v2 = vand.u32 2147483647, %v1915_v57 }
 0x3de   : > { %v3828_v18 = vpop.eup %3827  ;;  %2161 = vmatpush.bf16.msra.mxu0 %v4296_v59  ;;  %v1928_v21 = vor.u32 1.1754944e-38, %v1927_v33 }
 0x3df   : > { %v1917_v45 = vmul.f32 %v3828_v18, %v1915_v57  ;;  %3829 = vpow2.f32 %v3391_v27  ;;  %v1901_v17 = vadd.f32 %v3826_v39, %v1900_v44  ;;  %vm1922_vm14 = vweird.f32 %v3828_v18  ;;  %2189 = vmatpush.bf16.msra.mxu2 %v4343_v31 }
 0x3e0   : > { %3831 = vtanh.f32 %v1864_v16  ;;  %vm1923_vm3 = vmor %vm1921_vm1, %vm1922_vm14  ;;  %vm1926_vm4 = vcmp.eq.f32.partialorder %v1925_v2, 8.507059e+37  ;;  %v1963_v2 = vpop.permute.xlu2 %1962 }
 0x3e1   : > { %v1918_v42 = vsub.f32 1.0, %v1917_v45  ;;  %v1909_v45 = vor.u32 1.1754944e-38, %v1908_v10  ;;  %vm1964_vm11 = vcmp.eq.s32.totalorder %v1963_v2, 1  ;;  %v5676_v2 = vld [vmem:[#allocation33_spill] sm:$0xff] }
 0x3e2   : > { %v1891_v20 = vpop.f32.mrf.mxu3  ;;  %2162 = vmatpush.bf16.msra.mxu0 %v4316_v8 }
 0x3e3   : > { %v1919_v7 = vmul.f32 %v3828_v18, %v1918_v42  ;;  %v1905_v42 = vsel %vm5038_vm2, %v3826_v39, %v1901_v17  ;;  %2190 = vmatpush.bf16.msra.mxu2 %v4368_v55 }
 0x3e4   : > { %v1910_v44 = vsel %vm1907_vm5, %v1909_v45, %v1905_v42 }
 0x3e5   : > { %v3830_v38 = vpop.eup %3829  ;;  %v1920_v12 = vadd.f32 %v3828_v18, %v1919_v7 }
 0x3e6   : > { %v1935_v3 = vadd.f32 1.0, %v3830_v38  ;;  %v3832_v20 = vpop.eup %3831  ;;  %2163 = vmatpush.bf16.msra.mxu0 %v4336_v26 }
 0x3e7   : > { %v1924_v54 = vsel %vm1923_vm3, %v3828_v18, %v1920_v12  ;;  %v1952_v7 = vmul.f32 %v3832_v20, %v1910_v44  ;;  %2235 = vmatpush.bf16.msrb.mxu2 %v4380_v0  ;;  %v5665_v44 = vld [vmem:[#allocation20_spill] sm:$0xff] }
 0x3e8   : > { %v1929_v57 = vsel %vm1926_vm4, %v1928_v21, %v1924_v54  ;;  %3833 = vrcp.f32 %v1935_v3  ;;  %v1945_v10 = vand.u32 2147483647, %v1935_v3  ;;  %vm1941_vm8 = vweird.f32 %v1935_v3  ;;  %v5667_v20 = vld [vmem:[#allocation24_spill] sm:$0xff] }
 0x3e9   : > { %v1951_v16 = vmul.f32 %v1929_v57, %v4964_v5  ;;  %v1947_v5 = vand.u32 2147483648, %v1935_v3 }
 0x3ea   : > { %2164 = vmatpush.bf16.msra.mxu0 %v4361_v50  ;;  %vm1946_vm10 = vcmp.eq.f32.partialorder %v1945_v10, 8.507059e+37  ;;  %v5675_v10 = vld [vmem:[#allocation34_spill] sm:$0xff] }
 0x3eb   : > { %v5052_v18 = vadd.f32 %v1952_v7, %v1951_v16  ;;  %v1948_v27 = vor.u32 1.1754944e-38, %v1947_v5  ;;  %2236 = vmatpush.bf16.msrb.mxu2 %v4413_v35  ;;  %v5666_v16 = vld [vmem:[#allocation19_spill] sm:$0xff]  ;;  %v5668_v7 = vld [vmem:[#allocation21_spill] sm:$0xff]  ;;  %v5673_v5 = vld [vmem:[#allocation30_spill] sm:$0xff] }
 0x3ed   : > { %3835 = vtanh.f32 %v5052_v18 }
 0x3ee   : > { %v3834_v39 = vpop.eup %3833  ;;  %2209 = vmatpush.bf16.msrb.mxu0 %v4378_v63 }
 0x3ef   : > { %v1937_v33 = vmul.f32 %v3834_v39, %v1935_v3  ;;  %vm1942_vm7 = vweird.f32 %v3834_v39  ;;  %2237 = vmatpush.bf16.msrb.mxu2 %v4437_v58  ;;  %v5664_v3 = vld [vmem:[#allocation17_spill] sm:$0xff] }
 0x3f0   : > { %vm1943_vm9 = vmor %vm1941_vm8, %vm1942_vm7 }
 0x3f1   : > { %v1938_v17 = vsub.f32 1.0, %v1937_v33  ;;  %v5671_v33 = vld [vmem:[#allocation27_spill] sm:$0xff] }
 0x3f2   : > { %2210 = vmatpush.bf16.msrb.mxu0 %v4411_v34 }
 0x3f3   : > { %v1939_v13 = vmul.f32 %v3834_v39, %v1938_v17  ;;  %v3836_v21 = vpop.eup %3835  ;;  %2238 = vmatpush.bf16.msrb.mxu2 %v5522_v40  ;;  %v5672_v17 = vld [vmem:[#allocation26_spill] sm:$0xff] }
 0x3f5   : > { %v1940_v38 = vadd.f32 %v3834_v39, %v1939_v13  ;;  %v5674_v13 = vld [vmem:[#allocation29_spill] sm:$0xff] }
 0x3f6   : > { %2211 = vmatpush.bf16.msrb.mxu0 %v5520_v25 }
 0x3f7   : > { %v1944_v12 = vsel %vm1943_vm9, %v3834_v39, %v1940_v38  ;;  %2239 = vmatpush.bf16.msrb.mxu2 %v5526_v4  ;;  %v5669_v39 = vld [vmem:[#allocation25_spill] sm:$0xff]  ;;  %v5677_v38 = vld [vmem:[#allocation39_spill] sm:$0xff] }
 0x3f8   : > { %v1949_v42 = vsel %vm1946_vm10, %v1948_v27, %v1944_v12  ;;  %v5678_v27 = vld [vmem:[#allocation38_spill] sm:$0xff]  ;;  %v5679_v12 = vld [vmem:[#allocation43_spill] sm:$0xff] }
 0x3f9   : > { %v1955_v45 = vmul.f32 %v3836_v21, %v1949_v42  ;;  %v5680_v21 = vld [vmem:[#allocation42_spill] sm:$0xff]  ;;  %v5681_v42 = vld [vmem:[#allocation45_spill] sm:$0xff] }
 0x3fa   : > { %2212 = vmatpush.bf16.msrb.mxu0 %v5524_v22 }
 0x3fb   : > { %v1956_v54 = vpack.c.bf16 %v1955_v45, %v1955_v45  ;;  %v5065_v57 = vsel %vm1964_vm11, %v1955_v45, %v4977_v6  ;;  %2240 = vmatpush.bf16.msrb.mxu2 %v5530_v30  ;;  %v5663_v6 = vld [vmem:[#allocation18_spill] sm:$0xff]  ;;  %v5682_v45 = vld [vmem:[#allocation44_spill] sm:$0xff] }
 0x3fd   : > { %3392 = vst [vmem:[#allocation5 + $0x10] sm:$0xf] %v1956_v54  ;;  %1994 = vmatmul.bf16.vlgmr.msra.gmra.mxu1 %v1956_v54  ;;  %2020 = vmatmul.bf16.vlgmr.msra.gmra.mxu3 %v1956_v54 }
 0x3fe   : > { %2170 = vmatpush.bf16.msra.mxu1 %v4227_v15  ;;  %2196 = vmatpush.bf16.msra.mxu3 %v4221_v11 }
 0x3ff   : > { %2213 = vmatpush.bf16.msrb.mxu0 %v5528_v23  ;;  %2241 = vmatpush.bf16.msrb.mxu2 %v4528_v51 }
 0x402   : > { %2171 = vmatpush.bf16.msra.mxu1 %v4247_v28  ;;  %2197 = vmatpush.bf16.msra.mxu3 %v4242_v24 }
 0x403   : > { %2214 = vmatpush.bf16.msrb.mxu0 %v5532_v62  ;;  %2242 = vmatpush.bf16.msrb.mxu2 %v4548_v43 }
 0x406   : > { %2172 = vmatpush.bf16.msra.mxu1 %v4268_v41  ;;  %2198 = vmatpush.bf16.msra.mxu3 %v4262_v37 }
 0x407   : > { %2215 = vmatpush.bf16.msrb.mxu0 %v4526_v46 }
 0x40a   : > { %2173 = vmatpush.bf16.msra.mxu1 %v4288_v53  ;;  %2199 = vmatpush.bf16.msra.mxu3 %v4282_v49 }
 0x40b   : > { %2216 = vmatpush.bf16.msrb.mxu0 %v5571_v56 }
 0x40d   : > { %2046 = vmatmul.bf16.vlgmr.msrb.gmra.mxu1 %v1956_v54  ;;  %2072 = vmatmul.bf16.vlgmr.msrb.gmra.mxu3 %v1956_v54  ;;  %v5683_v54 = vld [vmem:[#allocation48_spill] sm:$0xff] }
 0x40e   : > { %2174 = vmatpush.bf16.msra.mxu1 %v4308_v1  ;;  %2200 = vmatpush.bf16.msra.mxu3 %v4302_v61 }
 0x412   : > { %2175 = vmatpush.bf16.msra.mxu1 %v5663_v6  ;;  %2201 = vmatpush.bf16.msra.mxu3 %v5664_v3 }
 0x416   : > { %2176 = vmatpush.bf16.msra.mxu1 %v5665_v44  ;;  %2202 = vmatpush.bf16.msra.mxu3 %v5666_v16 }
 0x41a   : > { %2177 = vmatpush.bf16.msra.mxu1 %v5667_v20  ;;  %2203 = vmatpush.bf16.msra.mxu3 %v5668_v7  ;;  %v5686_v20 = vld [vmem:[#allocation32_spill] sm:$0xff] }
 0x41e   : > { %2222 = vmatpush.bf16.msrb.mxu1 %v5669_v39  ;;  %2248 = vmatpush.bf16.msrb.mxu3 %v5670_v32  ;;  %v5685_v39 = vld [vmem:[#allocation28_spill] sm:$0xff] }
 0x422   : > { %2223 = vmatpush.bf16.msrb.mxu1 %v5671_v33  ;;  %2249 = vmatpush.bf16.msrb.mxu3 %v5672_v17 }
 0x426   : > { %2224 = vmatpush.bf16.msrb.mxu1 %v5673_v5  ;;  %2250 = vmatpush.bf16.msrb.mxu3 %v5674_v13  ;;  %v5684_v5 = vld [vmem:[#allocation47_spill] sm:$0xff] }
 0x42a   : > { %2225 = vmatpush.bf16.msrb.mxu1 %v5675_v10  ;;  %2251 = vmatpush.bf16.msrb.mxu3 %v5676_v2 }
 0x42e   : > { %2226 = vmatpush.bf16.msrb.mxu1 %v5677_v38  ;;  %2252 = vmatpush.bf16.msrb.mxu3 %v5678_v27 }
 0x432   : > { %2227 = vmatpush.bf16.msrb.mxu1 %v5679_v12  ;;  %2253 = vmatpush.bf16.msrb.mxu3 %v5680_v21 }
 0x436   : > { %2228 = vmatpush.bf16.msrb.mxu1 %v5681_v42  ;;  %2254 = vmatpush.bf16.msrb.mxu3 %v5682_v45 }
 0x43a   : > { %2229 = vmatpush.bf16.msrb.mxu1 %v5683_v54  ;;  %2255 = vmatpush.bf16.msrb.mxu3 %v5684_v5 }
 0x443   : > { %v1982_v13 = vpop.f32.mrf.mxu0 }
 0x444   : > { %v1983_v12 = vadd.f32 %v1982_v13, %v5685_v39 }
 0x449   : > { %v2008_v10 = vpop.f32.mrf.mxu2 }
 0x44a   : > { %v2009_v42 = vadd.f32 %v2008_v10, %v5686_v20 }
 0x44b   : > { %v1984_v17 = vpop.f32.mrf.mxu0 }
 0x451   : > { %v2010_v2 = vpop.f32.mrf.mxu2 }
 0x452   : > { %v3400_v2 = vld [vmem:[#allocation5 + $0x18] sm:$0xf] }
 0x454   : > { %v2034_v38 = vpop.f32.mrf.mxu0 }
 0x459   : > { %v2060_v33 = vpop.f32.mrf.mxu2 }
 0x45c   : > { %v2036_v27 = vpop.f32.mrf.mxu0 }
 0x45d   : > { %v2035_v27 = vadd.f32 %v2034_v38, %v4650_v14 }
 0x461   : > { %v2062_v32 = vpop.f32.mrf.mxu2 }
 0x462   : > { %v3399_v32 = vld [vmem:[%s5489_s19 + $0x18] sm:$0xf] }
 0x47a   : > { %v1995_v7 = vpop.f32.mrf.mxu1 }
 0x47b   : > { %v1996_v21 = vadd.f32 %v1995_v7, %v1983_v12  ;;  %v2156_v7 = vsel %vm4382_vm0, %v3399_v32, %v3400_v2  ;;  %v5688_v12 = vld [vmem:[#allocation14_spill] sm:$0xff] }
 0x47c   : > { %2191 = vmatmul.bf16.vlgmr.msra.gmra.mxu2 %v2156_v7  ;;  %2165 = vmatmul.bf16.vlgmr.msra.gmra.mxu0 %v2156_v7 }
 0x47d   : > { %v3395_v16 = vmul.f32 -1.442695, %v1996_v21  ;;  %2367 = vmatpush.bf16.msra.mxu2 %v5688_v12  ;;  %v5691_v12 = vld [vmem:[#allocation16_spill] sm:$0xff] }
 0x47f   : > { %3837 = vpow2.f32 %v3395_v16 }
 0x480   : > { %v2021_v45 = vpop.f32.mrf.mxu3 }
 0x481   : > { %v2022_v54 = vadd.f32 %v2021_v45, %v2009_v42  ;;  %2368 = vmatpush.bf16.msra.mxu2 %v5568_v29 }
 0x482   : > { %v1997_v44 = vpop.f32.mrf.mxu1 }
 0x483   : > { %v3396_v5 = vmul.f32 -1.442695, %v2022_v54  ;;  %v5689_v44 = vld [vmem:[#allocation13_spill] sm:$0xff] }
 0x484   : > { %2341 = vmatpush.bf16.msra.mxu0 %v5689_v44 }
 0x485   : > { %v3838_v3 = vpop.eup %3837  ;;  %3839 = vpow2.f32 %v3396_v5  ;;  %2369 = vmatpush.bf16.msra.mxu2 %v4260_v36 }
 0x486   : > { %v2080_v17 = vadd.f32 1.0, %v3838_v3  ;;  %v5690_v3 = vld [vmem:[#allocation31_spill] sm:$0xff] }
 0x487   : > { %v2061_v21 = vadd.f32 %v2060_v33, %v5690_v3 }
 0x488   : > { %3841 = vrcp.f32 %v2080_v17  ;;  %v2023_v13 = vpop.f32.mrf.mxu3  ;;  %2342 = vmatpush.bf16.msra.mxu0 %v4234_v19  ;;  %vm2086_vm14 = vweird.f32 %v2080_v17 }
 0x489   : > { %2370 = vmatpush.bf16.msra.mxu2 %v4280_v48 }
 0x48a   : > { %v2047_v10 = vpop.f32.mrf.mxu1 }
 0x48b   : > { %v3840_v16 = vpop.eup %3839  ;;  %v2048_v39 = vadd.f32 %v2047_v10, %v2035_v27 }
 0x48c   : > { %v2099_v5 = vadd.f32 1.0, %v3840_v16  ;;  %2343 = vmatpush.bf16.msra.mxu0 %v5691_v12  ;;  %2243 = vmatmul.bf16.vlgmr.msrb.gmra.mxu2 %v2156_v7 }
 0x48d   : > { %2217 = vmatmul.bf16.vlgmr.msrb.gmra.mxu0 %v2156_v7  ;;  %2371 = vmatpush.bf16.msra.mxu2 %v4300_v60 }
 0x48e   : > { %v3842_v42 = vpop.eup %3841  ;;  %3843 = vrcp.f32 %v2099_v5  ;;  %v2111_v19 = vand.u32 2147483648, %v2099_v5  ;;  %v2109_v36 = vand.u32 2147483647, %v2099_v5  ;;  %vm2105_vm15 = vweird.f32 %v2099_v5 }
 0x48f   : > { %v2082_v45 = vmul.f32 %v3842_v42, %v2080_v17  ;;  %vm2087_vm12 = vweird.f32 %v3842_v42 }
 0x490   : > { %v2073_v54 = vpop.f32.mrf.mxu3  ;;  %2344 = vmatpush.bf16.msra.mxu0 %v4276_v47  ;;  %vm5126_vm1 = vmor %vm2086_vm14, %vm2087_vm12  ;;  %v2112_v47 = vor.u32 1.1754944e-38, %v2111_v19  ;;  %vm2110_vm3 = vcmp.eq.f32.partialorder %v2109_v36, 8.507059e+37  ;;  %v5715_v36 = vld [vmem:[#allocation28_spill] sm:$0xff] }
 0x491   : > { %v2083_v32 = vsub.f32 1.0, %v2082_v45  ;;  %v2074_v2 = vadd.f32 %v2073_v54, %v2061_v21  ;;  %v2092_v45 = vand.u32 2147483648, %v2080_v17  ;;  %v2090_v54 = vand.u32 2147483647, %v2080_v17  ;;  %2372 = vmatpush.bf16.msra.mxu2 %v4320_v9 }
 0x492   : > { %v2049_v13 = vpop.f32.mrf.mxu1 }
 0x493   : > { %v3397_v20 = vmul.f32 -1.442695, %v2074_v2  ;;  %v2084_v33 = vmul.f32 %v3842_v42, %v2083_v32  ;;  %v2093_v10 = vor.u32 1.1754944e-38, %v2092_v45  ;;  %vm2091_vm4 = vcmp.eq.f32.partialorder %v2090_v54, 8.507059e+37 }
 0x494   : > { %v3844_v16 = vpop.eup %3843  ;;  %2345 = vmatpush.bf16.msra.mxu0 %v4296_v59 }
 0x495   : > { %v2101_v44 = vmul.f32 %v3844_v16, %v2099_v5  ;;  %3845 = vpow2.f32 %v3397_v20  ;;  %v2085_v29 = vadd.f32 %v3842_v42, %v2084_v33  ;;  %vm2106_vm13 = vweird.f32 %v3844_v16  ;;  %2373 = vmatpush.bf16.msra.mxu2 %v4343_v31 }
 0x496   : > { %3847 = vtanh.f32 %v2048_v39  ;;  %vm2107_vm2 = vmor %vm2105_vm15, %vm2106_vm13 }
 0x497   : > { %v2102_v3 = vsub.f32 1.0, %v2101_v44  ;;  %v2089_v27 = vsel %vm5126_vm1, %v3842_v42, %v2085_v29  ;;  %v5140_v42 = vld [vmem:[%s5362_s1] sm:$0xff] }
 0x498   : > { %v2075_v21 = vpop.f32.mrf.mxu3  ;;  %2346 = vmatpush.bf16.msra.mxu0 %v4316_v8  ;;  %vm2327_vm5 = vcmp.eq.s32.totalorder %v5140_v42, 6 }
 0x499   : > { %v2103_v38 = vmul.f32 %v3844_v16, %v2102_v3  ;;  %v2094_v3 = vsel %vm2091_vm4, %v2093_v10, %v2089_v27  ;;  %v2328_v8 = vsel %vm2327_vm5, 1, %v5542_v52  ;;  %2374 = vmatpush.bf16.msra.mxu2 %v4368_v55 }
 0x49a   : > { %2330 = vperm.xlu0 %3754, %v2328_v8  }
 0x49b   : > { %v3846_v32 = vpop.eup %3845  ;;  %v2104_v48 = vadd.f32 %v3844_v16, %v2103_v38 }
 0x49c   : > { %v2119_v17 = vadd.f32 1.0, %v3846_v32  ;;  %v3848_v59 = vpop.eup %3847  ;;  %2347 = vmatpush.bf16.msra.mxu0 %v4336_v26 }
 0x49d   : > { %v2108_v7 = vsel %vm2107_vm2, %v3844_v16, %v2104_v48  ;;  %v2136_v39 = vmul.f32 %v3848_v59, %v2094_v3  ;;  %2419 = vmatpush.bf16.msrb.mxu2 %v4380_v0  ;;  %v2147_v16 = vpop.permute.xlu2 %2146  ;;  %v5716_v48 = vld [vmem:[#allocation32_spill] sm:$0xff]  ;;  %v3405_v59 = vld [vmem:[%s5489_s19 + $0x1c] sm:$0xf] }
 0x49e   : > { %v2113_v5 = vsel %vm2110_vm3, %v2112_v47, %v2108_v7  ;;  %3849 = vrcp.f32 %v2119_v17  ;;  %v2131_v12 = vand.u32 2147483648, %v2119_v17  ;;  %v2129_v31 = vand.u32 2147483647, %v2119_v17 }
 0x49f   : > { %v2135_v60 = vmul.f32 %v2113_v5, %v5052_v18  ;;  %vm2125_vm7 = vweird.f32 %v2119_v17  ;;  %vm2148_vm10 = vcmp.eq.s32.totalorder %v2147_v16, 1  ;;  %vm2511_vm3 = vcmp.eq.s32.totalorder %v5140_v42, 7 }
 0x4a0   : > { %2348 = vmatpush.bf16.msra.mxu0 %v4361_v50  ;;  %v2132_v44 = vor.u32 1.1754944e-38, %v2131_v12  ;;  %vm2130_vm9 = vcmp.eq.f32.partialorder %v2129_v31, 8.507059e+37  ;;  %v5718_v31 = vld [vmem:[#allocation31_spill] sm:$0xff] }
 0x4a1   : > { %v5145_v13 = vadd.f32 %v2136_v39, %v2135_v60  ;;  %2420 = vmatpush.bf16.msrb.mxu2 %v4413_v35  ;;  %v5705_v35 = vld [vmem:[#allocation34_spill] sm:$0xff]  ;;  %v3406_v39 = vld [vmem:[#allocation5 + $0x1c] sm:$0xf] }
 0x4a3   : > { %3851 = vtanh.f32 %v5145_v13 }
 0x4a4   : > { %v3850_v2 = vpop.eup %3849  ;;  %2393 = vmatpush.bf16.msrb.mxu0 %v4378_v63 }
 0x4a5   : > { %v2121_v9 = vmul.f32 %v3850_v2, %v2119_v17  ;;  %vm2126_vm6 = vweird.f32 %v3850_v2  ;;  %2421 = vmatpush.bf16.msrb.mxu2 %v4437_v58  ;;  %v5706_v58 = vld [vmem:[#allocation33_spill] sm:$0xff] }
 0x4a6   : > { %vm2127_vm8 = vmor %vm2125_vm7, %vm2126_vm6 }
 0x4a7   : > { %v2122_v18 = vsub.f32 1.0, %v2121_v9  ;;  %v2340_v9 = vsel %vm4382_vm0, %v3405_v59, %v3406_v39 }
 0x4a8   : > { %2394 = vmatpush.bf16.msrb.mxu0 %v4411_v34  ;;  %v5704_v34 = vld [vmem:[#allocation29_spill] sm:$0xff]  ;;  %2375 = vmatmul.bf16.vlgmr.msra.gmra.mxu2 %v2340_v9 }
 0x4a9   : > { %v2123_v26 = vmul.f32 %v3850_v2, %v2122_v18  ;;  %v3852_v55 = vpop.eup %3851  ;;  %2422 = vmatpush.bf16.msrb.mxu2 %v5522_v40  ;;  %v5711_v40 = vld [vmem:[#allocation45_spill] sm:$0xff]  ;;  %2349 = vmatmul.bf16.vlgmr.msra.gmra.mxu0 %v2340_v9 }
 0x4ab   : > { %v2124_v33 = vadd.f32 %v3850_v2, %v2123_v26 }
 0x4ac   : > { %2395 = vmatpush.bf16.msrb.mxu0 %v5520_v25  ;;  %v5710_v25 = vld [vmem:[#allocation42_spill] sm:$0xff] }
 0x4ad   : > { %v2128_v50 = vsel %vm2127_vm8, %v3850_v2, %v2124_v33  ;;  %2423 = vmatpush.bf16.msrb.mxu2 %v5526_v4  ;;  %v5713_v4 = vld [vmem:[#allocation48_spill] sm:$0xff] }
 0x4ae   : > { %v2133_v19 = vsel %vm2130_vm9, %v2132_v44, %v2128_v50 }
 0x4af   : > { %v2139_v0 = vmul.f32 %v3852_v55, %v2133_v19 }
 0x4b0   : > { %2396 = vmatpush.bf16.msrb.mxu0 %v5524_v22  ;;  %v5712_v22 = vld [vmem:[#allocation44_spill] sm:$0xff] }
 0x4b1   : > { %v2140_v63 = vpack.c.bf16 %v2139_v0, %v2139_v0  ;;  %v5158_v29 = vsel %vm2148_vm10, %v2139_v0, %v5065_v57  ;;  %2424 = vmatpush.bf16.msrb.mxu2 %v5530_v30 }
 0x4b3   : > { %3398 = vst [vmem:[#allocation5 + $0x14] sm:$0xf] %v2140_v63  ;;  %2178 = vmatmul.bf16.vlgmr.msra.gmra.mxu1 %v2140_v63  ;;  %2204 = vmatmul.bf16.vlgmr.msra.gmra.mxu3 %v2140_v63 }
 0x4b4   : > { %2354 = vmatpush.bf16.msra.mxu1 %v4227_v15  ;;  %2380 = vmatpush.bf16.msra.mxu3 %v4221_v11  ;;  %v5694_v11 = vld [vmem:[#allocation17_spill] sm:$0xff]  ;;  %v5695_v15 = vld [vmem:[#allocation20_spill] sm:$0xff] }
 0x4b5   : > { %2397 = vmatpush.bf16.msrb.mxu0 %v5528_v23  ;;  %2425 = vmatpush.bf16.msrb.mxu2 %v4528_v51  ;;  %v5708_v51 = vld [vmem:[#allocation38_spill] sm:$0xff]  ;;  %v5714_v23 = vld [vmem:[#allocation47_spill] sm:$0xff] }
 0x4b8   : > { %2355 = vmatpush.bf16.msra.mxu1 %v4247_v28  ;;  %2381 = vmatpush.bf16.msra.mxu3 %v4242_v24  ;;  %v5696_v24 = vld [vmem:[#allocation19_spill] sm:$0xff]  ;;  %v5697_v28 = vld [vmem:[#allocation24_spill] sm:$0xff] }
 0x4b9   : > { %2398 = vmatpush.bf16.msrb.mxu0 %v5532_v62  ;;  %2426 = vmatpush.bf16.msrb.mxu2 %v4548_v43  ;;  %v5709_v43 = vld [vmem:[#allocation43_spill] sm:$0xff] }
 0x4bc   : > { %2356 = vmatpush.bf16.msra.mxu1 %v4268_v41  ;;  %2382 = vmatpush.bf16.msra.mxu3 %v4262_v37  ;;  %v5698_v37 = vld [vmem:[#allocation21_spill] sm:$0xff] }
 0x4bd   : > { %2399 = vmatpush.bf16.msrb.mxu0 %v4526_v46  ;;  %v5699_v41 = vld [vmem:[#allocation25_spill] sm:$0xff]  ;;  %v5707_v46 = vld [vmem:[#allocation39_spill] sm:$0xff]  ;;  %2427 = vmatmul.bf16.vlgmr.msrb.gmra.mxu2 %v2340_v9 }
 0x4c0   : > { %2357 = vmatpush.bf16.msra.mxu1 %v4288_v53  ;;  %2383 = vmatpush.bf16.msra.mxu3 %v4282_v49  ;;  %v5700_v49 = vld [vmem:[#allocation23_spill] sm:$0xff] }
 0x4c1   : > { %2400 = vmatpush.bf16.msrb.mxu0 %v5571_v56  ;;  %v5701_v53 = vld [vmem:[#allocation27_spill] sm:$0xff] }
 0x4c3   : > { %2230 = vmatmul.bf16.vlgmr.msrb.gmra.mxu1 %v2140_v63  ;;  %2256 = vmatmul.bf16.vlgmr.msrb.gmra.mxu3 %v2140_v63 }
 0x4c4   : > { %2358 = vmatpush.bf16.msra.mxu1 %v4308_v1  ;;  %2384 = vmatpush.bf16.msra.mxu3 %v4302_v61  ;;  %v5702_v61 = vld [vmem:[#allocation26_spill] sm:$0xff] }
 0x4c5   : > { %v5703_v1 = vld [vmem:[#allocation30_spill] sm:$0xff]  ;;  %2401 = vmatmul.bf16.vlgmr.msrb.gmra.mxu0 %v2340_v9 }
 0x4c8   : > { %2359 = vmatpush.bf16.msra.mxu1 %v5663_v6  ;;  %2385 = vmatpush.bf16.msra.mxu3 %v5694_v11 }
 0x4cc   : > { %2360 = vmatpush.bf16.msra.mxu1 %v5695_v15  ;;  %2386 = vmatpush.bf16.msra.mxu3 %v5696_v24 }
 0x4d0   : > { %2361 = vmatpush.bf16.msra.mxu1 %v5697_v28  ;;  %2387 = vmatpush.bf16.msra.mxu3 %v5698_v37 }
 0x4d4   : > { %2406 = vmatpush.bf16.msrb.mxu1 %v5699_v41  ;;  %2432 = vmatpush.bf16.msrb.mxu3 %v5700_v49 }
 0x4d8   : > { %2407 = vmatpush.bf16.msrb.mxu1 %v5701_v53  ;;  %2433 = vmatpush.bf16.msrb.mxu3 %v5702_v61 }
 0x4dc   : > { %2408 = vmatpush.bf16.msrb.mxu1 %v5703_v1  ;;  %2434 = vmatpush.bf16.msrb.mxu3 %v5704_v34 }
 0x4e0   : > { %2409 = vmatpush.bf16.msrb.mxu1 %v5705_v35  ;;  %2435 = vmatpush.bf16.msrb.mxu3 %v5706_v58 }
 0x4e4   : > { %2410 = vmatpush.bf16.msrb.mxu1 %v5707_v46  ;;  %2436 = vmatpush.bf16.msrb.mxu3 %v5708_v51 }
 0x4e8   : > { %2411 = vmatpush.bf16.msrb.mxu1 %v5709_v43  ;;  %2437 = vmatpush.bf16.msrb.mxu3 %v5710_v25 }
 0x4ec   : > { %2412 = vmatpush.bf16.msrb.mxu1 %v5711_v40  ;;  %2438 = vmatpush.bf16.msrb.mxu3 %v5712_v22 }
 0x4f0   : > { %2413 = vmatpush.bf16.msrb.mxu1 %v5713_v4  ;;  %2439 = vmatpush.bf16.msrb.mxu3 %v5714_v23 }
 0x4f9   : > { %v2166_v30 = vpop.f32.mrf.mxu0 }
 0x4fa   : > { %v2167_v54 = vadd.f32 %v2166_v30, %v5715_v36 }
 0x4ff   : > { %v2192_v62 = vpop.f32.mrf.mxu2 }
 0x500   : > { %v2193_v47 = vadd.f32 %v2192_v62, %v5716_v48 }
 0x501   : > { %v2168_v56 = vpop.f32.mrf.mxu0 }
 0x507   : > { %v2194_v57 = vpop.f32.mrf.mxu2 }
 0x50a   : > { %v2218_v21 = vpop.f32.mrf.mxu0 }
 0x50b   : > { %v2219_v63 = vadd.f32 %v2218_v21, %v4650_v14 }
 0x50f   : > { %v2244_v6 = vpop.f32.mrf.mxu2 }
 0x510   : > { %v2245_v16 = vadd.f32 %v2244_v6, %v5718_v31 }
 0x512   : > { %v2220_v45 = vpop.f32.mrf.mxu0 }
 0x517   : > { %v2246_v38 = vpop.f32.mrf.mxu2 }
 0x518   : > { %v2512_v38 = vsel %vm2511_vm3, 1, %v5542_v52 }
 0x519   : > { %2514 = vperm.xlu1 %3755, %v2512_v38  }
 0x52b   : > { %v2376_v59 = vpop.f32.mrf.mxu2 }
 0x530   : > { %v2179_v32 = vpop.f32.mrf.mxu1 }
 0x531   : > { %v2180_v20 = vadd.f32 %v2179_v32, %v2167_v54 }
 0x533   : > { %v3401_v27 = vmul.f32 -1.442695, %v2180_v20 }
 0x535   : > { %3853 = vpow2.f32 %v3401_v27  ;;  %v2331_v27 = vpop.permute.xlu0 %2330 }
 0x536   : > { %v2205_v17 = vpop.f32.mrf.mxu3  ;;  %vm2332_vm8 = vcmp.eq.s32.totalorder %v2331_v27, 1 }
 0x537   : > { %v2206_v10 = vadd.f32 %v2205_v17, %v2193_v47 }
 0x538   : > { %v2181_v7 = vpop.f32.mrf.mxu1 }
 0x539   : > { %v3402_v5 = vmul.f32 -1.442695, %v2206_v10 }
 0x53b   : > { %v3854_v3 = vpop.eup %3853  ;;  %3855 = vpow2.f32 %v3402_v5 }
 0x53c   : > { %v2264_v60 = vadd.f32 1.0, %v3854_v3 }
 0x53e   : > { %3857 = vrcp.f32 %v2264_v60  ;;  %v2207_v2 = vpop.f32.mrf.mxu3  ;;  %v2276_v34 = vand.u32 2147483648, %v2264_v60  ;;  %vm2270_vm12 = vweird.f32 %v2264_v60  ;;  %v2274_v58 = vand.u32 2147483647, %v2264_v60 }
 0x53f   : > { %v2378_v2 = vpop.f32.mrf.mxu2 }
 0x540   : > { %v2231_v18 = vpop.f32.mrf.mxu1  ;;  %v2277_v22 = vor.u32 1.1754944e-38, %v2276_v34  ;;  %vm2275_vm2 = vcmp.eq.f32.partialorder %v2274_v58, 8.507059e+37 }
 0x541   : > { %v3856_v12 = vpop.eup %3855  ;;  %v2232_v41 = vadd.f32 %v2231_v18, %v2219_v63 }
 0x542   : > { %v2283_v26 = vadd.f32 1.0, %v3856_v12 }
 0x544   : > { %v3858_v33 = vpop.eup %3857  ;;  %3859 = vrcp.f32 %v2283_v26  ;;  %v2295_v49 = vand.u32 2147483648, %v2283_v26  ;;  %v2293_v35 = vand.u32 2147483647, %v2283_v26  ;;  %vm2289_vm13 = vweird.f32 %v2283_v26 }
 0x545   : > { %v2266_v44 = vmul.f32 %v3858_v33, %v2264_v60  ;;  %vm2271_vm0 = vweird.f32 %v3858_v33  ;;  %v2350_v60 = vpop.f32.mrf.mxu0 }
 0x546   : > { %v2257_v50 = vpop.f32.mrf.mxu3  ;;  %vm2272_vm14 = vmor %vm2270_vm12, %vm2271_vm0  ;;  %v2296_v43 = vor.u32 1.1754944e-38, %v2295_v49  ;;  %vm2294_vm1 = vcmp.eq.f32.partialorder %v2293_v35, 8.507059e+37 }
 0x547   : > { %v2267_v55 = vsub.f32 1.0, %v2266_v44  ;;  %v2258_v19 = vadd.f32 %v2257_v50, %v2245_v16  ;;  %v2428_v8 = vpop.f32.mrf.mxu2 }
 0x548   : > { %v2233_v0 = vpop.f32.mrf.mxu1 }
 0x549   : > { %v3403_v11 = vmul.f32 -1.442695, %v2258_v19  ;;  %v2268_v24 = vmul.f32 %v3858_v33, %v2267_v55 }
 0x54a   : > { %v3860_v15 = vpop.eup %3859 }
 0x54b   : > { %v2285_v28 = vmul.f32 %v3860_v15, %v2283_v26  ;;  %3861 = vpow2.f32 %v3403_v11  ;;  %v2269_v53 = vadd.f32 %v3858_v33, %v2268_v24  ;;  %vm2290_vm11 = vweird.f32 %v3860_v15 }
 0x54c   : > { %3863 = vtanh.f32 %v2232_v41  ;;  %vm2291_vm15 = vmor %vm2289_vm13, %vm2290_vm11  ;;  %v2351_v26 = vadd.f32 %v2350_v60, %v5715_v36  ;;  %v2429_v36 = vadd.f32 %v2428_v8, %v5718_v31 }
 0x54d   : > { %v2286_v37 = vsub.f32 1.0, %v2285_v28  ;;  %v2273_v25 = vsel %vm2272_vm14, %v3858_v33, %v2269_v53  ;;  %v2352_v39 = vpop.f32.mrf.mxu0 }
 0x54e   : > { %v2259_v61 = vpop.f32.mrf.mxu3  ;;  %v2278_v30 = vsel %vm2275_vm2, %v2277_v22, %v2273_v25 }
 0x54f   : > { %v2287_v1 = vmul.f32 %v3860_v15, %v2286_v37  ;;  %v2430_v18 = vpop.f32.mrf.mxu2 }
 0x551   : > { %v3862_v46 = vpop.eup %3861  ;;  %v2288_v51 = vadd.f32 %v3860_v15, %v2287_v1 }
 0x552   : > { %v2303_v40 = vadd.f32 1.0, %v3862_v46  ;;  %v3864_v56 = vpop.eup %3863 }
 0x553   : > { %v2292_v4 = vsel %vm2291_vm15, %v3860_v15, %v2288_v51  ;;  %v2320_v57 = vmul.f32 %v3864_v56, %v2278_v30 }
 0x554   : > { %v2297_v23 = vsel %vm2294_vm1, %v2296_v43, %v2292_v4  ;;  %3865 = vrcp.f32 %v2303_v40  ;;  %v2315_v32 = vand.u32 2147483648, %v2303_v40  ;;  %v2313_v47 = vand.u32 2147483647, %v2303_v40 }
 0x555   : > { %v2319_v62 = vmul.f32 %v2297_v23, %v5145_v13  ;;  %vm2309_vm5 = vweird.f32 %v2303_v40  ;;  %v2402_v9 = vpop.f32.mrf.mxu0 }
 0x556   : > { %v2316_v42 = vor.u32 1.1754944e-38, %v2315_v32  ;;  %vm2314_vm7 = vcmp.eq.f32.partialorder %v2313_v47, 8.507059e+37 }
 0x557   : > { %v5213_v21 = vadd.f32 %v2320_v57, %v2319_v62 }
 0x559   : > { %3867 = vtanh.f32 %v5213_v21 }
 0x55a   : > { %v3866_v6 = vpop.eup %3865 }
 0x55b   : > { %v2305_v45 = vmul.f32 %v3866_v6, %v2303_v40  ;;  %vm2310_vm4 = vweird.f32 %v3866_v6 }
 0x55c   : > { %vm2311_vm6 = vmor %vm2309_vm5, %vm2310_vm4 }
 0x55d   : > { %v2306_v54 = vsub.f32 1.0, %v2305_v45  ;;  %v2404_v12 = vpop.f32.mrf.mxu0 }
 0x55f   : > { %v2307_v20 = vmul.f32 %v3866_v6, %v2306_v54  ;;  %v3868_v10 = vpop.eup %3867 }
 0x561   : > { %v2308_v13 = vadd.f32 %v3866_v6, %v2307_v20 }
 0x563   : > { %v2312_v17 = vsel %vm2311_vm6, %v3866_v6, %v2308_v13 }
 0x564   : > { %v2317_v7 = vsel %vm2314_vm7, %v2316_v42, %v2312_v17 }
 0x565   : > { %v2323_v52 = vmul.f32 %v3868_v10, %v2317_v7 }
 0x567   : > { %v2324_v5 = vpack.c.bf16 %v2323_v52, %v2323_v52  ;;  %v5218_v3 = vsel %vm2332_vm8, %v2323_v52, %v5158_v29  ;;  %v2377_v29 = vadd.f32 %v2376_v59, %v5716_v48  ;;  %v2403_v48 = vadd.f32 %v2402_v9, %v4650_v14 }
 0x569   : > { %3404 = vst [vmem:[#allocation5 + $0x18] sm:$0xf] %v2324_v5  ;;  %2362 = vmatmul.bf16.vlgmr.msra.gmra.mxu1 %v2324_v5  ;;  %2388 = vmatmul.bf16.vlgmr.msra.gmra.mxu3 %v2324_v5 }
 0x579   : > { %2414 = vmatmul.bf16.vlgmr.msrb.gmra.mxu1 %v2324_v5  ;;  %2440 = vmatmul.bf16.vlgmr.msrb.gmra.mxu3 %v2324_v5 }
 0x58b   : > { %v2515_v2 = vpop.permute.xlu1 %2514 }
 0x58c   : > { %vm2516_vm5 = vcmp.eq.s32.totalorder %v2515_v2, 1 }
 0x5e6   : > { %v2363_v16 = vpop.f32.mrf.mxu1 }
 0x5e7   : > { %v2364_v33 = vadd.f32 %v2363_v16, %v2351_v26  ;;  %v3649_v16 = vld [vmem:[%s5368_s7 + $0x38] sm:$0xff] (%p2521_p1) }
 0x5e8   : > { %2595 = vmatpush.bf16.msra.mxu0 (%p2521_p1), %v3649_v16 }
 0x5e9   : > { %v3407_v44 = vmul.f32 -1.442695, %v2364_v33  ;;  %v3648_v33 = vld [vmem:[%s5368_s7 + $0x30] sm:$0xff] (%p2521_p1) }
 0x5eb   : > { %3869 = vpow2.f32 %v3407_v44  ;;  %v3647_v44 = vld [vmem:[%s5368_s7 + $0x28] sm:$0xff] (%p2521_p1) }
 0x5ec   : > { %v2389_v50 = vpop.f32.mrf.mxu3  ;;  %2596 = vmatpush.bf16.msra.mxu0 (%p2521_p1), %v3648_v33 }
 0x5ed   : > { %v2390_v55 = vadd.f32 %v2389_v50, %v2377_v29  ;;  %v3657_v29 = vld [vmem:[%s5370_s9 + $0x38] sm:$0xff] (%p2521_p1)  ;;  %v3655_v50 = vld [vmem:[%s5370_s9 + $0x28] sm:$0xff] (%p2521_p1) }
 0x5ee   : > { %v2365_v19 = vpop.f32.mrf.mxu1  ;;  %2678 = vmatpush.bf16.msra.mxu1 (%p2521_p1), %v3657_v29 }
 0x5ef   : > { %v3408_v0 = vmul.f32 -1.442695, %v2390_v55  ;;  %v3646_v55 = vld [vmem:[%s5368_s7 + $0x20] sm:$0xff] (%p2521_p1) }
 0x5f0   : > { %2597 = vmatpush.bf16.msra.mxu0 (%p2521_p1), %v3647_v44  ;;  %v3654_v19 = vld [vmem:[%s5370_s9 + $0x20] sm:$0xff] (%p2521_p1) }
 0x5f1   : > { %v3870_v63 = vpop.eup %3869  ;;  %3871 = vpow2.f32 %v3408_v0  ;;  %v3645_v0 = vld [vmem:[%s5368_s7 + $0x18] sm:$0xff] (%p2521_p1) }
 0x5f2   : > { %v2448_v11 = vadd.f32 1.0, %v3870_v63  ;;  %v3653_v63 = vld [vmem:[%s5370_s9 + $0x18] sm:$0xff] (%p2521_p1) }
 0x5f4   : > { %3873 = vrcp.f32 %v2448_v11  ;;  %v2391_v15 = vpop.f32.mrf.mxu3  ;;  %v2460_v40 = vand.u32 2147483648, %v2448_v11  ;;  %vm2454_vm10 = vweird.f32 %v2448_v11  ;;  %v2458_v31 = vand.u32 2147483647, %v2448_v11  ;;  %2598 = vmatpush.bf16.msra.mxu0 (%p2521_p1), %v3646_v55 }
 0x5f5   : > { %v3652_v15 = vld [vmem:[%s5370_s9 + $0x10] sm:$0xff] (%p2521_p1) }
 0x5f6   : > { %v2415_v24 = vpop.f32.mrf.mxu1  ;;  %v2461_v56 = vor.u32 1.1754944e-38, %v2460_v40  ;;  %vm2459_vm13 = vcmp.eq.f32.partialorder %v2458_v31, 8.507059e+37  ;;  %v3887_v40 = vld [vmem:[%s5721_s24] ss:$0 sm:$0xff] (%p2521_p1)  ;;  %v3659_v31 = vld [vmem:[%s5720_s10 + $0x8] sm:$0xff] (%p2521_p1) }
 0x5f7   : > { %v3872_v28 = vpop.eup %3871  ;;  %v2416_v51 = vadd.f32 %v2415_v24, %v2403_v48  ;;  %v3643_v24 = vld [vmem:[%s5368_s7 + $0x8] sm:$0xff] (%p2521_p1)  ;;  %v3665_v48 = vld [vmem:[%s5720_s10 + $0x38] sm:$0xff] (%p2521_p1) }
 0x5f8   : > { %v2467_v37 = vadd.f32 1.0, %v3872_v28  ;;  %2599 = vmatpush.bf16.msra.mxu0 (%p2521_p1), %v3645_v0  ;;  %v3642_v28 = vld [vmem:[%s5368_s7] sm:$0xff] (%p2521_p1)  ;;  %2835 = vmatpush.bf16.msra.mxu3 (%p2521_p1), %v3665_v48 }
 0x5fa   : > { %v3874_v41 = vpop.eup %3873  ;;  %3875 = vrcp.f32 %v2467_v37  ;;  %v2479_v4 = vand.u32 2147483648, %v2467_v37  ;;  %v2477_v62 = vand.u32 2147483647, %v2467_v37  ;;  %vm2473_vm12 = vweird.f32 %v2467_v37 }
 0x5fb   : > { %v2450_v49 = vmul.f32 %v3874_v41, %v2448_v11  ;;  %vm2455_vm9 = vweird.f32 %v3874_v41  ;;  %v3644_v11 = vld [vmem:[%s5368_s7 + $0x10] sm:$0xff] (%p2521_p1) }
 0x5fc   : > { %v2441_v53 = vpop.f32.mrf.mxu3  ;;  %vm2456_vm0 = vmor %vm2454_vm10, %vm2455_vm9  ;;  %v2480_v38 = vor.u32 1.1754944e-38, %v2479_v4  ;;  %vm2478_vm15 = vcmp.eq.f32.partialorder %v2477_v62, 8.507059e+37  ;;  %2600 = vmatpush.bf16.msra.mxu0 (%p2521_p1), %v3644_v11 }
 0x5fd   : > { %v2451_v61 = vsub.f32 1.0, %v2450_v49  ;;  %v2442_v1 = vadd.f32 %v2441_v53, %v2429_v36  ;;  %v3651_v36 = vld [vmem:[%s5370_s9 + $0x8] sm:$0xff] (%p2521_p1)  ;;  %v3673_v49 = vld [vmem:[%s5719_s2 + $0x38] sm:$0xff] (%p2521_p1)  ;;  %v3672_v53 = vld [vmem:[%s5719_s2 + $0x30] sm:$0xff] (%p2521_p1) }
 0x5fe   : > { %v2417_v34 = vpop.f32.mrf.mxu1  ;;  %2774 = vmatpush.bf16.msra.mxu2 (%p2521_p1), %v3673_v49 }
 0x5ff   : > { %v2452_v35 = vmul.f32 %v3874_v41, %v2451_v61  ;;  %v3409_v58 = vmul.f32 -1.442695, %v2442_v1  ;;  %v3664_v61 = vld [vmem:[%s5720_s10 + $0x30] sm:$0xff] (%p2521_p1)  ;;  %v3671_v1 = vld [vmem:[%s5719_s2 + $0x28] sm:$0xff] (%p2521_p1) }
 0x600   : > { %v3876_v46 = vpop.eup %3875  ;;  %2601 = vmatpush.bf16.msra.mxu0 (%p2521_p1), %v3643_v24  ;;  %2836 = vmatpush.bf16.msra.mxu3 (%p2521_p1), %v3664_v61  ;;  %v3663_v34 = vld [vmem:[%s5720_s10 + $0x28] sm:$0xff] (%p2521_p1) }
 0x601   : > { %v2469_v43 = vmul.f32 %v3876_v46, %v2467_v37  ;;  %v2453_v25 = vadd.f32 %v3874_v41, %v2452_v35  ;;  %3877 = vpow2.f32 %v3409_v58  ;;  %vm2474_vm11 = vweird.f32 %v3876_v46  ;;  %v3670_v35 = vld [vmem:[%s5719_s2 + $0x20] sm:$0xff] (%p2521_p1) }
 0x602   : > { %3879 = vtanh.f32 %v2416_v51  ;;  %vm2475_vm14 = vmor %vm2473_vm12, %vm2474_vm11  ;;  %2775 = vmatpush.bf16.msra.mxu2 (%p2521_p1), %v3672_v53  ;;  %v3662_v58 = vld [vmem:[%s5720_s10 + $0x20] sm:$0xff] (%p2521_p1)  ;;  %v3661_v51 = vld [vmem:[%s5720_s10 + $0x18] sm:$0xff] (%p2521_p1) }
 0x603   : > { %v2470_v22 = vsub.f32 1.0, %v2469_v43  ;;  %v2457_v30 = vsel %vm2456_vm0, %v3874_v41, %v2453_v25  ;;  %v3650_v41 = vld [vmem:[%s5370_s9] sm:$0xff] (%p2521_p1)  ;;  %v3668_v43 = vld [vmem:[%s5719_s2 + $0x10] sm:$0xff] (%p2521_p1) }
 0x604   : > { %v2443_v14 = vpop.f32.mrf.mxu3  ;;  %v2462_v45 = vsel %vm2459_vm13, %v2461_v56, %v2457_v30  ;;  %2602 = vmatpush.bf16.msra.mxu0 (%p2521_p1), %v3642_v28  ;;  %2837 = vmatpush.bf16.msra.mxu3 (%p2521_p1), %v3663_v34  ;;  %v3660_v25 = vld [vmem:[%s5720_s10 + $0x10] sm:$0xff] (%p2521_p1)  ;;  %v2708_v30 = vld [vmem:[%s5722_s8] sm:$0xff] (%p2521_p1) }
 0x605   : > { %v2471_v23 = vmul.f32 %v3876_v46, %v2470_v22  ;;  %v3667_v22 = vld [vmem:[%s5719_s2 + $0x8] sm:$0xff] (%p2521_p1) }
 0x606   : > { %2776 = vmatpush.bf16.msra.mxu2 (%p2521_p1), %v3671_v1 }
 0x607   : > { %v3878_v57 = vpop.eup %3877  ;;  %v2472_v6 = vadd.f32 %v3876_v46, %v2471_v23  ;;  %v3666_v23 = vld [vmem:[%s5719_s2] sm:$0xff] (%p2521_p1) }
 0x608   : > { %v2487_v54 = vadd.f32 1.0, %v3878_v57  ;;  %v3880_v20 = vpop.eup %3879  ;;  %2838 = vmatpush.bf16.msra.mxu3 (%p2521_p1), %v3662_v58  ;;  %v2709_v57 = vpack.c.bf16 (%p2521_p1), %v2708_v30, %v2708_v30 }
 0x609   : > { %v2476_v32 = vsel %vm2475_vm14, %v3876_v46, %v2472_v6  ;;  %v2504_v13 = vmul.f32 %v3880_v20, %v2462_v45  ;;  %v3669_v46 = vld [vmem:[%s5719_s2 + $0x18] sm:$0xff] (%p2521_p1)  ;;  %v3681_v45 = vld [vmem:[#allocation8 + $0x38] sm:$0xff] (%p2521_p1) }
 0x60a   : > { %v2481_v47 = vsel %vm2478_vm15, %v2480_v38, %v2476_v32  ;;  %3881 = vrcp.f32 %v2487_v54  ;;  %v2499_v52 = vand.u32 2147483648, %v2487_v54  ;;  %v2497_v60 = vand.u32 2147483647, %v2487_v54  ;;  %2777 = vmatpush.bf16.msra.mxu2 (%p2521_p1), %v3670_v35  ;;  %v3658_v38 = vld [vmem:[%s5720_s10] sm:$0xff] (%p2521_p1)  ;;  %2923 = vmatpush.bf16.msrb.mxu0 (%p2521_p1), %v3681_v45  ;;  %v3678_v20 = vld [vmem:[#allocation8 + $0x20] sm:$0xff] (%p2521_p1) }
 0x60b   : > { %v2503_v27 = vmul.f32 %v2481_v47, %v5213_v21  ;;  %vm2493_vm2 = vweird.f32 %v2487_v54  ;;  %v3679_v32 = vld [vmem:[#allocation8 + $0x28] sm:$0xff] (%p2521_p1)  ;;  %v3677_v47 = vld [vmem:[#allocation8 + $0x18] sm:$0xff] (%p2521_p1) }
 0x60c   : > { %v2500_v39 = vor.u32 1.1754944e-38, %v2499_v52  ;;  %vm2498_vm4 = vcmp.eq.f32.partialorder %v2497_v60, 8.507059e+37  ;;  %2839 = vmatpush.bf16.msra.mxu3 (%p2521_p1), %v3661_v51  ;;  %v3675_v60 = vld [vmem:[#allocation8 + $0x8] sm:$0xff] (%p2521_p1) }
 0x60d   : > { %v2505_v42 = vadd.f32 %v2504_v13, %v2503_v27  ;;  %v3676_v27 = vld [vmem:[#allocation8 + $0x10] sm:$0xff] (%p2521_p1)  ;;  %v3888_v13 = vld [vmem:[%s5723_s16] ss:$0 sm:$0xff] (%p2521_p1) }
 0x60e   : > { %2778 = vmatpush.bf16.msra.mxu2 (%p2521_p1), %v3669_v46 }
 0x60f   : > { %2519 = vst [vmem:[#allocation3] sm:$0xff] %v2505_v42  ;;  %3883 = vtanh.f32 %v2505_v42 }
 0x610   : > { %v3882_v17 = vpop.eup %3881  ;;  %2840 = vmatpush.bf16.msra.mxu3 (%p2521_p1), %v3660_v25 }
 0x611   : > { %v2489_v10 = vmul.f32 %v3882_v17, %v2487_v54  ;;  %vm2494_vm1 = vweird.f32 %v3882_v17  ;;  %v3680_v54 = vld [vmem:[#allocation8 + $0x30] sm:$0xff] (%p2521_p1) }
 0x612   : > { %vm2495_vm3 = vmor %vm2493_vm2, %vm2494_vm1  ;;  %2779 = vmatpush.bf16.msra.mxu2 (%p2521_p1), %v3668_v43  ;;  %2924 = vmatpush.bf16.msrb.mxu0 (%p2521_p1), %v3680_v54 }
 0x613   : > { %v2490_v7 = vsub.f32 1.0, %v2489_v10 }
 0x614   : > { %2841 = vmatpush.bf16.msra.mxu3 (%p2521_p1), %v3659_v31 }
 0x615   : > { %v2491_v5 = vmul.f32 %v3882_v17, %v2490_v7  ;;  %v3884_v9 = vpop.eup %3883 }
 0x616   : > { %2780 = vmatpush.bf16.msra.mxu2 (%p2521_p1), %v3667_v22  ;;  %2925 = vmatpush.bf16.msrb.mxu0 (%p2521_p1), %v3679_v32 }
 0x617   : > { %v2492_v59 = vadd.f32 %v3882_v17, %v2491_v5 }
 0x618   : > { %2842 = vmatpush.bf16.msra.mxu3 (%p2521_p1), %v3658_v38 }
 0x619   : > { %v2496_v8 = vsel %vm2495_vm3, %v3882_v17, %v2492_v59  ;;  %v3674_v59 = vld [vmem:[#allocation8] sm:$0xff] (%p2521_p1) }
 0x61a   : > { %v2501_v21 = vsel %vm2498_vm4, %v2500_v39, %v2496_v8  ;;  %2781 = vmatpush.bf16.msra.mxu2 (%p2521_p1), %v3666_v23  ;;  %2926 = vmatpush.bf16.msrb.mxu0 (%p2521_p1), %v3678_v20  ;;  %v3889_v39 = vld [vmem:[%s5724_s18] ss:$0 sm:$0xff] (%p2521_p1) }
 0x61b   : > { %v2507_v18 = vmul.f32 %v3884_v9, %v2501_v21  ;;  %2525 = sbr.rel (!%p2521_p1) target bundleno = 2127 (0x84f), region = 104 }
 0x61d   : > { %v2508_v12 = vpack.c.bf16 %v2507_v18, %v2507_v18  ;;  %v2517_v26 = vsel %vm2516_vm5, %v2507_v18, %v5218_v3  ;;  %2518 = vst [vmem:[#allocation2] sm:$0xff] %v2507_v18  ;;  %v3656_v3 = vld [vmem:[%s5370_s9 + $0x30] sm:$0xff] (%p2521_p1)  ;;  %2782 = vmatmul.bf16.vlgmr.msra.gmra.mxu2 (%p2521_p1), %v2709_v57 }
 0x61e   : > { %2520 = vst [vmem:[#allocation4] sm:$0xff] %v2517_v26  ;;  %2679 = vmatpush.bf16.msra.mxu1 (%p2521_p1), %v3656_v3  ;;  %v2526_v37 = vpack.c.bf16 (%p2521_p1), %v2517_v26, %v2517_v26  ;;  %2927 = vmatpush.bf16.msrb.mxu0 (%p2521_p1), %v3677_v47  ;;  %v3890_v26 = vld [vmem:[%s5725_s21] ss:$0 sm:$0xff] (%p2521_p1) }
 0x61f   : > { %3410 = vst [vmem:[#allocation5 + $0x1c] sm:$0xf] %v2508_v12 }
 0x620   : > { %2603 = vmatmul.bf16.vlgmr.msra.gmra.mxu0 %v2526_v37 }
 0x622   : > { %2680 = vmatpush.bf16.msra.mxu1 %v3655_v50  ;;  %2928 = vmatpush.bf16.msrb.mxu0 %v3676_v27 }
 0x626   : > { %2681 = vmatpush.bf16.msra.mxu1 %v3654_v19  ;;  %2929 = vmatpush.bf16.msrb.mxu0 %v3675_v60 }
 0x62a   : > { %2682 = vmatpush.bf16.msra.mxu1 %v3653_v63  ;;  %2930 = vmatpush.bf16.msrb.mxu0 %v3674_v59 }
 0x62e   : > { %2683 = vmatpush.bf16.msra.mxu1 %v3652_v15 }
 0x632   : > { %2684 = vmatpush.bf16.msra.mxu1 %v3651_v36 }
 0x636   : > { %2685 = vmatpush.bf16.msra.mxu1 %v3650_v41 }
 0x69d   : > { %v2604_v4 = vpop.f32.mrf.mxu0 }
 0x69e   : > { %v2605_v14 = vadd.f32 %v3887_v40, %v2604_v4 }
 0x6a0   : > { %v2608_v62 = vmax.f32 %v2605_v14, 0.0  ;;  %v2783_v52 = vpop.f32.mrf.mxu2 }
 0x6a2   : > { %v2609_v56 = vpack.c.bf16 %v2608_v62, %v2608_v62 }
 0x6a4   : > { %2686 = vmatmul.bf16.vlgmr.msra.gmra.mxu1 %v2609_v56 }
 0x6a5   : > { %v2606_v6 = vpop.f32.mrf.mxu0 }
 0x6a8   : > { %v2785_v5 = vpop.f32.mrf.mxu2 }
 0x721   : > { %v2687_v42 = vpop.f32.mrf.mxu1 }
 0x722   : > { %v2688_v17 = vadd.f32 %v3888_v13, %v2687_v42 }
 0x724   : > { %v2691_v10 = vpack.c.bf16 %v2688_v17, %v2688_v17 }
 0x726   : > { %2843 = vmatmul.bf16.vlgmr.msra.gmra.mxu3 %v2691_v10 }
 0x729   : > { %v2689_v7 = vpop.f32.mrf.mxu1 }
 0x7a9   : > { %v2844_v2 = vpop.f32.mrf.mxu3 }
 0x7aa   : > { %v2845_v8 = vadd.f32 %v2844_v2, %v2783_v52 }
 0x7ac   : > { %v2852_v9 = vadd.f32 %v3889_v39, %v2845_v8 }
 0x7ae   : > { %v2853_v21 = vmax.f32 %v2852_v9, 0.0 }
 0x7b0   : > { %v2854_v18 = vpack.c.bf16 %v2853_v21, %v2853_v21 }
 0x7b1   : > { %v2846_v12 = vpop.f32.mrf.mxu3 }
 0x7b2   : > { %2931 = vmatmul.bf16.vlgmr.msrb.gmra.mxu0 %v2854_v18 }
 0x82f   : > { %v2932_v16 = vpop.f32.mrf.mxu0 }
 0x830   : > { %v2933_v33 = vadd.f32 %v3890_v26, %v2932_v16 }
 0x832   : > { %v3572_v29 = vmul.f32 -1.442695, %v2933_v33 }
 0x834   : > { %3891 = vpow2.f32 %v3572_v29 }
 0x837   : > { %v2934_v3 = vpop.f32.mrf.mxu0 }
 0x83a   : > { %v3892_v44 = vpop.eup %3891 }
 0x83b   : > { %v2939_v50 = vadd.f32 1.0, %v3892_v44 }
 0x83d   : > { %3893 = vrcp.f32 %v2939_v50  ;;  %v2951_v63 = vand.u32 2147483648, %v2939_v50  ;;  %v2949_v15 = vand.u32 2147483647, %v2939_v50  ;;  %vm2945_vm7 = vweird.f32 %v2939_v50 }
 0x83f   : > { %v2952_v28 = vor.u32 1.1754944e-38, %v2951_v63  ;;  %vm2950_vm9 = vcmp.eq.f32.partialorder %v2949_v15, 8.507059e+37 }
 0x843   : > { %v3894_v55 = vpop.eup %3893 }
 0x844   : > { %v2941_v19 = vmul.f32 %v3894_v55, %v2939_v50  ;;  %vm2946_vm6 = vweird.f32 %v3894_v55 }
 0x845   : > { %vm2947_vm8 = vmor %vm2945_vm7, %vm2946_vm6 }
 0x846   : > { %v2942_v0 = vsub.f32 1.0, %v2941_v19 }
 0x848   : > { %v2943_v11 = vmul.f32 %v3894_v55, %v2942_v0 }
 0x84a   : > { %v2944_v24 = vadd.f32 %v3894_v55, %v2943_v11 }
 0x84c   : > { %v2948_v37 = vsel %vm2947_vm8, %v3894_v55, %v2944_v24 }
 0x84d   : > { %v2953_v36 = vsel %vm2950_vm9, %v2952_v28, %v2948_v37 }
 0x84e   : > { %2955 = vst [vmem:[%s5726_s17] sm:$0xff] %v2953_v36 }
 0x84f PF: > { %s30_s26 = sadd.s32 1, %s4009_s26   ;;  %s5727_s13 = sld [smem:[#allocation12_spill]] }
 0x850   : > { %p27_p4 = scmp.ge.s32.totalorder %s30_s26, 4   ;;  %s5728_s21 = smov %s3993_s22 }
 0x851   : > { %s5729_s22 = smov %s3997_s23  ;;  %s5730_s23 = smov %s4173_s20 }
 0x852   : > { %s5731_s24 = smov %s4005_s25  ;;  %29 = sbr.rel (!%p27_p4) target bundleno = 16 (0x10), region = 163 }
 0x855   : > { %s5732_s25 = smov %s5727_s13 }
 0x857   :  { %2967 = vsyncpa [#allocation7], 1 }
 0x858   :  { %2969 = vsyncpa [#allocation7 + $0x1], 1 }
 0x859   :  { %2970 = vsyncpa [#allocation9], 1 }

</bundles_post_ra>
